<compile_context>
chip_gen: v6e
topology: v6e:2x2x1
jax: 0.10.0
libtpu: 0.0.40
codegen_flags: <defaults>
</compile_context>

<pallas_src>
import functools

import jax
import jax.numpy as jnp
from jax import lax
from jax.experimental import pallas as pl
from jax.experimental.pallas import tpu as pltpu

_BN_EPS = 1e-5
_LANES = 128


# ----------------------------------------------------------------------------
# Pallas kernels (each launched with grid=(1,); every operand is one VMEM block)
# ----------------------------------------------------------------------------

def _matmul_bias_kernel(x_ref, w_ref, b_ref, o_ref):
    """o = x @ w + b   (single full-size MXU matmul, f32 accumulation)."""
    o_ref[...] = (
        jnp.dot(x_ref[...], w_ref[...], preferred_element_type=jnp.float32)
        + b_ref[...]
    )


def _sum_stats_kernel(y1_ref, y2_ref, o_ref):
    """Per-lane sum / sum-of-squares of (y1 + y2).

    y*_ref: (M, 128) lane-dense views of an NDHWC tensor; lane l carries
    channel (l % C).  o_ref: (2, 128): row 0 = sum, row 1 = sum of squares.
    """
    s = y1_ref[...] + y2_ref[...]
    o_ref[0:1, :] = jnp.sum(s, axis=0, keepdims=True)
    o_ref[1:2, :] = jnp.sum(s * s, axis=0, keepdims=True)


def _add_affine_relu_kernel(y1_ref, y2_ref, a_ref, b_ref, o_ref):
    """relu((y1 + y2) * a + b); a/b are per-channel affines lane-tiled to 128."""
    s = y1_ref[...] + y2_ref[...]
    o_ref[...] = jnp.maximum(s * a_ref[...] + b_ref[...], 0.0)


# ----------------------------------------------------------------------------
# Pallas-call wrappers
# ----------------------------------------------------------------------------

def _full_spec(shape):
    """BlockSpec covering the whole array as a single block (grid=(1,))."""
    return pl.BlockSpec(shape, lambda i: (0,) * len(shape))


def matmul_bias(x, w, b):
    """x:(M,K) @ w:(K,Nout) + b:(Nout,) in one Pallas call / one MXU pass."""
    M, K = x.shape
    Nout = w.shape[1]
    return pl.pallas_call(
        _matmul_bias_kernel,
        out_shape=jax.ShapeDtypeStruct((M, Nout), jnp.float32),
        grid=(1,),
        in_specs=[_full_spec((M, K)), _full_spec((K, Nout)),
                  _full_spec((1, Nout))],
        out_specs=_full_spec((M, Nout)),
        compiler_params=pltpu.CompilerParams(
            dimension_semantics=("arbitrary",)),
    )(x, w, b.reshape(1, Nout))


def conv3d_same(x, w, b):
    """3x3x3 Conv3d, padding=1, stride=1.

    x: (N, D, H, W, Cin); w: (Cout, Cin, 3, 3, 3) torch layout; b: (Cout,).
    All 27 taps folded into the matmul K dim; batch folded into M.
    """
    N, D, H, W, Cin = x.shape
    Cout = w.shape[0]
    S = D * H * W
    xp = jnp.pad(x, ((0, 0), (1, 1), (1, 1), (1, 1), (0, 0)))
    # im2col slab (N*S, 27*Cin) -- XLA layout glue, consumed by ONE matmul.
    cols = jnp.concatenate(
        [xp[:, kd:kd + D, kh:kh + H, kw:kw + W, :].reshape(N * S, Cin)
         for kd in range(3) for kh in range(3) for kw in range(3)],
        axis=-1)
    wt = jnp.transpose(w, (2, 3, 4, 1, 0)).reshape(27 * Cin, Cout)
    out = matmul_bias(cols, wt, b)
    return out.reshape(N, D, H, W, Cout)


def conv_transpose3d(x, w, b, k):
    """ConvTranspose3d with kernel==stride==k (no overlap).

    x: (N, D, H, W, Cin); w: (Cin, Cout, k, k, k) torch layout; b: (Cout,).
    All k^3 taps folded into the matmul output dim; batch folded into M.
    """
    N, D, H, W, Cin = x.shape
    Cout = w.shape[1]
    K3 = k ** 3
    S = D * H * W
    xf = x.reshape(N * S, Cin)
    wt = jnp.transpose(w, (0, 2, 3, 4, 1)).reshape(Cin, K3 * Cout)
    bt = jnp.tile(b, K3)                                   # column tap*Cout+co
    out = matmul_bias(xf, wt, bt)                          # (N*S, K3*Cout)
    # Interleave taps into output positions (XLA layout glue).
    out = out.reshape(N, D, H, W, k, k, k, Cout)
    out = jnp.transpose(out, (0, 1, 4, 2, 5, 3, 6, 7))
    return out.reshape(N, D * k, H * k, W * k, Cout)


def bn_add_relu(y1, y2, gamma, beta):
    """relu(BatchNorm3d(y1 + y2)) with train-mode batch stats (biased var).

    Two lane-dense Pallas passes: (1) stats of the sum, (2) add+affine+ReLU.
    """
    N, D, H, W, C = y1.shape
    total = y1.size
    assert _LANES % C == 0, "channel count must divide 128 for lane tiling"
    assert total % _LANES == 0, "flattened size must be a multiple of 128"
    rep = _LANES // C
    M = total // _LANES
    y1f = y1.reshape(M, _LANES)
    y2f = y2.reshape(M, _LANES)

    # Pass 1: per-lane sum / sum-of-squares of (y1 + y2).
    stats = pl.pallas_call(
        _sum_stats_kernel,
        out_shape=jax.ShapeDtypeStruct((2, _LANES), jnp.float32),
        grid=(1,),
        in_specs=[_full_spec((M, _LANES)), _full_spec((M, _LANES))],
        out_specs=_full_spec((2, _LANES)),
    )(y1f, y2f)

    # Lane l carries channel l % C -> fold lanes into channels (tiny, plain JAX).
    per_c = stats.reshape(2, rep, C).sum(axis=1)
    cnt = float(N * D * H * W)
    mean = per_c[0] / cnt
    var = per_c[1] / cnt - mean * mean        # biased var, as PyTorch train BN
    a = gamma * lax.rsqrt(var + _BN_EPS)
    bb = beta - mean * a
    a_l = jnp.tile(a, rep).reshape(1, _LANES)
    b_l = jnp.tile(bb, rep).reshape(1, _LANES)

    # Pass 2: fused add + BN affine + ReLU (lane-dense, full-width stores).
    out = pl.pallas_call(
        _add_affine_relu_kernel,
        out_shape=jax.ShapeDtypeStruct((M, _LANES), jnp.float32),
        grid=(1,),
        in_specs=[_full_spec((M, _LANES)), _full_spec((M, _LANES)),
                  _full_spec((1, _LANES)), _full_spec((1, _LANES))],
        out_specs=_full_spec((M, _LANES)),
    )(y1f, y2f, a_l, b_l)
    return out.reshape(N, D, H, W, C)


# ----------------------------------------------------------------------------
# OctUp forward (all hot-path compute in Pallas; reshapes are XLA glue)
# ----------------------------------------------------------------------------

def oct_up_forward(p, x_h, x_l):
    y_h1 = conv_transpose3d(x_h, p["up_HH_w"], p["up_HH_b"], 2)
    y_h2 = conv_transpose3d(x_l, p["up_LH_w"], p["up_LH_b"], 4)
    y_l1 = conv_transpose3d(x_l, p["up_LL_w"], p["up_LL_b"], 2)
    y_l2 = conv3d_same(x_h, p["up_HL_w"], p["up_HL_b"])
    y_h = bn_add_relu(y_h1, y_h2, p["BN_H_gamma"], p["BN_H_beta"])
    y_l = bn_add_relu(y_l1, y_l2, p["BN_L_gamma"], p["BN_L_beta"])
    return y_h, y_l


# ----------------------------------------------------------------------------
# Deterministic parameter construction (synthetic; torch weight layouts)
# ----------------------------------------------------------------------------

def init_params(key, num_in, alphax=0.5):
    in_h = int(num_in * alphax)
    in_l = num_in - in_h
    keys = iter(jax.random.split(key, 16))

    def rnd(shape, scale=0.1):
        return (scale * jax.random.normal(next(keys), shape)).astype(jnp.float32)

    p = {
        "up_HH_w": rnd((in_h, in_h, 2, 2, 2)), "up_HH_b": rnd((in_h,), 0.05),
        "up_LH_w": rnd((in_l, in_h, 4, 4, 4)), "up_LH_b": rnd((in_h,), 0.05),
        "up_LL_w": rnd((in_l, in_l, 2, 2, 2)), "up_LL_b": rnd((in_l,), 0.05),
        "up_HL_w": rnd((in_l, in_h, 3, 3, 3)), "up_HL_b": rnd((in_l,), 0.05),
        "BN_H_gamma": 1.0 + rnd((in_h,), 0.05), "BN_H_beta": rnd((in_h,), 0.05),
        "BN_L_gamma": 1.0 + rnd((in_l,), 0.05), "BN_L_beta": rnd((in_l,), 0.05),
    }
    return p, in_h, in_l


# ----------------------------------------------------------------------------
# Plain-JAX reference (lax convs) for a correctness cross-check, NCDHW layout
# ----------------------------------------------------------------------------

def _ref_conv3d(x, w, b):
    y = lax.conv_general_dilated(
        x, w, window_strides=(1, 1, 1), padding=[(1, 1)] * 3,
        dimension_numbers=("NCDHW", "OIDHW", "NCDHW"),
        precision=lax.Precision.HIGHEST)
    return y + b.reshape(1, -1, 1, 1, 1)


def _ref_conv_transpose3d(x, w, b, k):
    rhs = jnp.flip(jnp.transpose(w, (1, 0, 2, 3, 4)), axis=(2, 3, 4))
    y = lax.conv_general_dilated(
        x, rhs, window_strides=(1, 1, 1), padding=[(k - 1, k - 1)] * 3,
        lhs_dilation=(k, k, k),
        dimension_numbers=("NCDHW", "OIDHW", "NCDHW"),
        precision=lax.Precision.HIGHEST)
    return y + b.reshape(1, -1, 1, 1, 1)


def _ref_bn_relu(x, gamma, beta):
    mean = x.mean(axis=(0, 2, 3, 4), keepdims=True)
    var = ((x - mean) ** 2).mean(axis=(0, 2, 3, 4), keepdims=True)
    y = (x - mean) * lax.rsqrt(var + _BN_EPS)
    y = y * gamma.reshape(1, -1, 1, 1, 1) + beta.reshape(1, -1, 1, 1, 1)
    return jnp.maximum(y, 0.0)


def oct_up_reference(p, x_h, x_l):
    y_h1 = _ref_conv_transpose3d(x_h, p["up_HH_w"], p["up_HH_b"], 2)
    y_h2 = _ref_conv_transpose3d(x_l, p["up_LH_w"], p["up_LH_b"], 4)
    y_l1 = _ref_conv_transpose3d(x_l, p["up_LL_w"], p["up_LL_b"], 2)
    y_l2 = _ref_conv3d(x_h, p["up_HL_w"], p["up_HL_b"])
    y_h = _ref_bn_relu(y_h1 + y_h2, p["BN_H_gamma"], p["BN_H_beta"])
    y_l = _ref_bn_relu(y_l1 + y_l2, p["BN_L_gamma"], p["BN_L_beta"])
    return y_h, y_l


# ----------------------------------------------------------------------------
# Driver
# ----------------------------------------------------------------------------

if __name__ == "__main__":
    num_in, N = 8, 2
    key = jax.random.PRNGKey(0)
    pkey, kh, kl = jax.random.split(key, 3)
    params, in_h, in_l = init_params(pkey, num_in)

    # PyTorch-convention NCDHW inputs: high-freq at full res, low-freq at half.
    x_h = jax.random.normal(kh, (N, in_h, 8, 8, 8), jnp.float32)
    x_l = jax.random.normal(kl, (N, in_l, 4, 4, 4), jnp.float32)

    to_ndhwc = lambda t: jnp.transpose(t, (0, 2, 3, 4, 1))
    to_ncdhw = lambda t: jnp.transpose(t, (0, 4, 1, 2, 3))

    fwd = jax.jit(functools.partial(oct_up_forward, params))
    y_h, y_l = fwd(to_ndhwc(x_h), to_ndhwc(x_l))
    y_h, y_l = to_ncdhw(y_h), to_ncdhw(y_l)
    jax.block_until_ready((y_h, y_l))

    assert y_h.shape == (N, in_h, 16, 16, 16), y_h.shape
    assert y_l.shape == (N, in_l, 8, 8, 8), y_l.shape
    assert bool(jnp.isfinite(y_h).all()) and bool(jnp.isfinite(y_l).all())

    # Cross-check against the plain-JAX reference of the same module.
    r_h, r_l = oct_up_reference(params, x_h, x_l)
    err_h = float(jnp.max(jnp.abs(y_h - r_h)))
    err_l = float(jnp.max(jnp.abs(y_l - r_l)))
    assert err_h < 3e-2 and err_l < 3e-2, (err_h, err_l)

    print("KERNEL_OK")
</pallas_src>

<mosaic_0001>
module attributes {stable_mosaic.version = 11 : i64} {
  func.func @_matmul_bias_kernel(%arg0: i32, %arg1: memref<1024x108xf32, #tpu.memory_space<vmem>>, %arg2: memref<108x4xf32, #tpu.memory_space<vmem>>, %arg3: memref<1x4xf32, #tpu.memory_space<vmem>>, %arg4: memref<1024x4xf32, #tpu.memory_space<vmem>>) attributes {dimension_semantics = [#tpu.dimension_semantics<arbitrary>], iteration_bounds = array<i64: 1>, scalar_prefetch = 0 : i64, scratch_operands = 0 : i64, tpu.core_type = #tpu.core_type<tc>, window_params = [{pipeline_mode = #tpu.pipeline_mode<synchronous>, transform_indices = @transform_0, window_bounds = array<i64: 1024, 108>}, {pipeline_mode = #tpu.pipeline_mode<synchronous>, transform_indices = @transform_1, window_bounds = array<i64: 108, 4>}, {pipeline_mode = #tpu.pipeline_mode<synchronous>, transform_indices = @transform_2, window_bounds = array<i64: 1, 4>}, {pipeline_mode = #tpu.pipeline_mode<synchronous>, transform_indices = @transform_3, window_bounds = array<i64: 1024, 4>}]} {
    %c0 = arith.constant 0 : index
    %c0_0 = arith.constant 0 : index
    %0 = vector.load %arg1[%c0, %c0_0] : memref<1024x108xf32, #tpu.memory_space<vmem>>, vector<1024x108xf32>
    %c0_1 = arith.constant 0 : index
    %c0_2 = arith.constant 0 : index
    %1 = vector.load %arg2[%c0_1, %c0_2] : memref<108x4xf32, #tpu.memory_space<vmem>>, vector<108x4xf32>
    %cst = arith.constant dense<0.000000e+00> : vector<1024x4xf32>
    %2 = tpu.matmul %0, %1, %cst {dimension_numbers = #tpu.dot_dimension_numbers<[1], [0], [0], [1], [0, 0, 1, 1], [], []>} : vector<1024x108xf32>, vector<108x4xf32>, vector<1024x4xf32> -> vector<1024x4xf32>
    %c0_3 = arith.constant 0 : index
    %c0_4 = arith.constant 0 : index
    %3 = vector.load %arg3[%c0_3, %c0_4] : memref<1x4xf32, #tpu.memory_space<vmem>>, vector<1x4xf32>
    %4 = vector.broadcast %3 : vector<1x4xf32> to vector<1024x4xf32>
    %5 = arith.addf %2, %4 : vector<1024x4xf32>
    %c0_5 = arith.constant 0 : index
    %c0_6 = arith.constant 0 : index
    %6 = vector.load %arg4[%c0_5, %c0_6] : memref<1024x4xf32, #tpu.memory_space<vmem>>, vector<1024x4xf32>
    tpu.vector_store %arg4[%c0_5, %c0_6], %5 {strides = array<i32>} : memref<1024x4xf32, #tpu.memory_space<vmem>>, vector<1024x4xf32>,
    return
  }
  func.func @transform_0(%arg0: i32) -> (i32, i32) {
    %c0_i32 = arith.constant 0 : i32
    %c0_i32_0 = arith.constant 0 : i32
    %c0_i32_1 = arith.constant 0 : i32
    return %c0_i32, %c0_i32_0 : i32, i32
  }
  func.func @transform_1(%arg0: i32) -> (i32, i32) {
    %c0_i32 = arith.constant 0 : i32
    %c0_i32_0 = arith.constant 0 : i32
    %c0_i32_1 = arith.constant 0 : i32
    return %c0_i32, %c0_i32_0 : i32, i32
  }
  func.func @transform_2(%arg0: i32) -> (i32, i32) {
    %c0_i32 = arith.constant 0 : i32
    %c0_i32_0 = arith.constant 0 : i32
    %c0_i32_1 = arith.constant 0 : i32
    return %c0_i32, %c0_i32_0 : i32, i32
  }
  func.func @transform_3(%arg0: i32) -> (i32, i32) {
    %c0_i32 = arith.constant 0 : i32
    %c0_i32_0 = arith.constant 0 : i32
    %c0_i32_1 = arith.constant 0 : i32
    return %c0_i32, %c0_i32_0 : i32, i32
  }
}

module attributes {stable_mosaic.version = 11 : i64} {
  func.func @_matmul_bias_kernel(%arg0: i32, %arg1: memref<128x4xf32, #tpu.memory_space<vmem>>, %arg2: memref<4x32xf32, #tpu.memory_space<vmem>>, %arg3: memref<1x32xf32, #tpu.memory_space<vmem>>, %arg4: memref<128x32xf32, #tpu.memory_space<vmem>>) attributes {dimension_semantics = [#tpu.dimension_semantics<arbitrary>], iteration_bounds = array<i64: 1>, scalar_prefetch = 0 : i64, scratch_operands = 0 : i64, tpu.core_type = #tpu.core_type<tc>, window_params = [{pipeline_mode = #tpu.pipeline_mode<synchronous>, transform_indices = @transform_0, window_bounds = array<i64: 128, 4>}, {pipeline_mode = #tpu.pipeline_mode<synchronous>, transform_indices = @transform_1, window_bounds = array<i64: 4, 32>}, {pipeline_mode = #tpu.pipeline_mode<synchronous>, transform_indices = @transform_2, window_bounds = array<i64: 1, 32>}, {pipeline_mode = #tpu.pipeline_mode<synchronous>, transform_indices = @transform_3, window_bounds = array<i64: 128, 32>}]} {
    %c0 = arith.constant 0 : index
    %c0_0 = arith.constant 0 : index
    %0 = vector.load %arg1[%c0, %c0_0] : memref<128x4xf32, #tpu.memory_space<vmem>>, vector<128x4xf32>
    %c0_1 = arith.constant 0 : index
    %c0_2 = arith.constant 0 : index
    %1 = vector.load %arg2[%c0_1, %c0_2] : memref<4x32xf32, #tpu.memory_space<vmem>>, vector<4x32xf32>
    %cst = arith.constant dense<0.000000e+00> : vector<128x32xf32>
    %2 = tpu.matmul %0, %1, %cst {dimension_numbers = #tpu.dot_dimension_numbers<[1], [0], [0], [1], [0, 0, 1, 1], [], []>} : vector<128x4xf32>, vector<4x32xf32>, vector<128x32xf32> -> vector<128x32xf32>
    %c0_3 = arith.constant 0 : index
    %c0_4 = arith.constant 0 : index
    %3 = vector.load %arg3[%c0_3, %c0_4] : memref<1x32xf32, #tpu.memory_space<vmem>>, vector<1x32xf32>
    %4 = vector.broadcast %3 : vector<1x32xf32> to vector<128x32xf32>
    %5 = arith.addf %2, %4 : vector<128x32xf32>
    %c0_5 = arith.constant 0 : index
    %c0_6 = arith.constant 0 : index
    %6 = vector.load %arg4[%c0_5, %c0_6] : memref<128x32xf32, #tpu.memory_space<vmem>>, vector<128x32xf32>
    tpu.vector_store %arg4[%c0_5, %c0_6], %5 {strides = array<i32>} : memref<128x32xf32, #tpu.memory_space<vmem>>, vector<128x32xf32>,
    return
  }
  func.func @transform_0(%arg0: i32) -> (i32, i32) {
    %c0_i32 = arith.constant 0 : i32
    %c0_i32_0 = arith.constant 0 : i32
    %c0_i32_1 = arith.constant 0 : i32
    return %c0_i32, %c0_i32_0 : i32, i32
  }
  func.func @transform_1(%arg0: i32) -> (i32, i32) {
    %c0_i32 = arith.constant 0 : i32
    %c0_i32_0 = arith.constant 0 : i32
    %c0_i32_1 = arith.constant 0 : i32
    return %c0_i32, %c0_i32_0 : i32, i32
  }
  func.func @transform_2(%arg0: i32) -> (i32, i32) {
    %c0_i32 = arith.constant 0 : i32
    %c0_i32_0 = arith.constant 0 : i32
    %c0_i32_1 = arith.constant 0 : i32
    return %c0_i32, %c0_i32_0 : i32, i32
  }
  func.func @transform_3(%arg0: i32) -> (i32, i32) {
    %c0_i32 = arith.constant 0 : i32
    %c0_i32_0 = arith.constant 0 : i32
    %c0_i32_1 = arith.constant 0 : i32
    return %c0_i32, %c0_i32_0 : i32, i32
  }
}

module attributes {stable_mosaic.version = 11 : i64} {
  func.func @_sum_stats_kernel(%arg0: i32, %arg1: memref<32x128xf32, #tpu.memory_space<vmem>>, %arg2: memref<32x128xf32, #tpu.memory_space<vmem>>, %arg3: memref<2x128xf32, #tpu.memory_space<vmem>>) attributes {dimension_semantics = [#tpu.dimension_semantics<arbitrary>], iteration_bounds = array<i64: 1>, scalar_prefetch = 0 : i64, scratch_operands = 0 : i64, tpu.core_type = #tpu.core_type<tc>, window_params = [{pipeline_mode = #tpu.pipeline_mode<synchronous>, transform_indices = @transform_0, window_bounds = array<i64: 32, 128>}, {pipeline_mode = #tpu.pipeline_mode<synchronous>, transform_indices = @transform_1, window_bounds = array<i64: 32, 128>}, {pipeline_mode = #tpu.pipeline_mode<synchronous>, transform_indices = @transform_2, window_bounds = array<i64: 2, 128>}]} {
    %c0 = arith.constant 0 : index
    %c0_0 = arith.constant 0 : index
    %0 = vector.load %arg1[%c0, %c0_0] : memref<32x128xf32, #tpu.memory_space<vmem>>, vector<32x128xf32>
    %c0_1 = arith.constant 0 : index
    %c0_2 = arith.constant 0 : index
    %1 = vector.load %arg2[%c0_1, %c0_2] : memref<32x128xf32, #tpu.memory_space<vmem>>, vector<32x128xf32>
    %2 = arith.addf %0, %1 : vector<32x128xf32>
    %cst = arith.constant dense<0.000000e+00> : vector<128xf32>
    %3 = vector.multi_reduction <add>, %2, %cst [0] : vector<32x128xf32> to vector<128xf32>
    %4 = vector.shape_cast %3 : vector<128xf32> to vector<1x128xf32>
    %c0_3 = arith.constant 0 : index
    %c0_4 = arith.constant 0 : index
    %5 = vector.load %arg3[%c0_3, %c0_4] : memref<2x128xf32, #tpu.memory_space<vmem>>, vector<1x128xf32>
    tpu.vector_store %arg3[%c0_3, %c0_4], %4 {strides = array<i32>} : memref<2x128xf32, #tpu.memory_space<vmem>>, vector<1x128xf32>,
    %6 = arith.mulf %2, %2 : vector<32x128xf32>
    %cst_5 = arith.constant dense<0.000000e+00> : vector<128xf32>
    %7 = vector.multi_reduction <add>, %6, %cst_5 [0] : vector<32x128xf32> to vector<128xf32>
    %8 = vector.shape_cast %7 : vector<128xf32> to vector<1x128xf32>
    %c1 = arith.constant 1 : index
    %c0_6 = arith.constant 0 : index
    %9 = vector.load %arg3[%c1, %c0_6] : memref<2x128xf32, #tpu.memory_space<vmem>>, vector<1x128xf32>
    tpu.vector_store %arg3[%c1, %c0_6], %8 {strides = array<i32>} : memref<2x128xf32, #tpu.memory_space<vmem>>, vector<1x128xf32>,
    return
  }
  func.func @transform_0(%arg0: i32) -> (i32, i32) {
    %c0_i32 = arith.constant 0 : i32
    %c0_i32_0 = arith.constant 0 : i32
    %c0_i32_1 = arith.constant 0 : i32
    return %c0_i32, %c0_i32_0 : i32, i32
  }
  func.func @transform_1(%arg0: i32) -> (i32, i32) {
    %c0_i32 = arith.constant 0 : i32
    %c0_i32_0 = arith.constant 0 : i32
    %c0_i32_1 = arith.constant 0 : i32
    return %c0_i32, %c0_i32_0 : i32, i32
  }
  func.func @transform_2(%arg0: i32) -> (i32, i32) {
    %c0_i32 = arith.constant 0 : i32
    %c0_i32_0 = arith.constant 0 : i32
    %c0_i32_1 = arith.constant 0 : i32
    return %c0_i32, %c0_i32_0 : i32, i32
  }
}

module attributes {stable_mosaic.version = 11 : i64} {
  func.func @_add_affine_relu_kernel(%arg0: i32, %arg1: memref<32x128xf32, #tpu.memory_space<vmem>>, %arg2: memref<32x128xf32, #tpu.memory_space<vmem>>, %arg3: memref<1x128xf32, #tpu.memory_space<vmem>>, %arg4: memref<1x128xf32, #tpu.memory_space<vmem>>, %arg5: memref<32x128xf32, #tpu.memory_space<vmem>>) attributes {dimension_semantics = [#tpu.dimension_semantics<arbitrary>], iteration_bounds = array<i64: 1>, scalar_prefetch = 0 : i64, scratch_operands = 0 : i64, tpu.core_type = #tpu.core_type<tc>, window_params = [{pipeline_mode = #tpu.pipeline_mode<synchronous>, transform_indices = @transform_0, window_bounds = array<i64: 32, 128>}, {pipeline_mode = #tpu.pipeline_mode<synchronous>, transform_indices = @transform_1, window_bounds = array<i64: 32, 128>}, {pipeline_mode = #tpu.pipeline_mode<synchronous>, transform_indices = @transform_2, window_bounds = array<i64: 1, 128>}, {pipeline_mode = #tpu.pipeline_mode<synchronous>, transform_indices = @transform_3, window_bounds = array<i64: 1, 128>}, {pipeline_mode = #tpu.pipeline_mode<synchronous>, transform_indices = @transform_4, window_bounds = array<i64: 32, 128>}]} {
    %c0 = arith.constant 0 : index
    %c0_0 = arith.constant 0 : index
    %0 = vector.load %arg1[%c0, %c0_0] : memref<32x128xf32, #tpu.memory_space<vmem>>, vector<32x128xf32>
    %c0_1 = arith.constant 0 : index
    %c0_2 = arith.constant 0 : index
    %1 = vector.load %arg2[%c0_1, %c0_2] : memref<32x128xf32, #tpu.memory_space<vmem>>, vector<32x128xf32>
    %2 = arith.addf %0, %1 : vector<32x128xf32>
    %c0_3 = arith.constant 0 : index
    %c0_4 = arith.constant 0 : index
    %3 = vector.load %arg3[%c0_3, %c0_4] : memref<1x128xf32, #tpu.memory_space<vmem>>, vector<1x128xf32>
    %4 = vector.broadcast %3 : vector<1x128xf32> to vector<32x128xf32>
    %5 = arith.mulf %2, %4 : vector<32x128xf32>
    %c0_5 = arith.constant 0 : index
    %c0_6 = arith.constant 0 : index
    %6 = vector.load %arg4[%c0_5, %c0_6] : memref<1x128xf32, #tpu.memory_space<vmem>>, vector<1x128xf32>
    %7 = vector.broadcast %6 : vector<1x128xf32> to vector<32x128xf32>
    %8 = arith.addf %5, %7 : vector<32x128xf32>
    %cst = arith.constant 0.000000e+00 : f32
    %9 = vector.broadcast %cst : f32 to vector<32x128xf32>
    %10 = arith.maximumf %8, %9 : vector<32x128xf32>
    %c0_7 = arith.constant 0 : index
    %c0_8 = arith.constant 0 : index
    %11 = vector.load %arg5[%c0_7, %c0_8] : memref<32x128xf32, #tpu.memory_space<vmem>>, vector<32x128xf32>
    tpu.vector_store %arg5[%c0_7, %c0_8], %10 {strides = array<i32>} : memref<32x128xf32, #tpu.memory_space<vmem>>, vector<32x128xf32>,
    return
  }
  func.func @transform_0(%arg0: i32) -> (i32, i32) {
    %c0_i32 = arith.constant 0 : i32
    %c0_i32_0 = arith.constant 0 : i32
    %c0_i32_1 = arith.constant 0 : i32
    return %c0_i32, %c0_i32_0 : i32, i32
  }
  func.func @transform_1(%arg0: i32) -> (i32, i32) {
    %c0_i32 = arith.constant 0 : i32
    %c0_i32_0 = arith.constant 0 : i32
    %c0_i32_1 = arith.constant 0 : i32
    return %c0_i32, %c0_i32_0 : i32, i32
  }
  func.func @transform_2(%arg0: i32) -> (i32, i32) {
    %c0_i32 = arith.constant 0 : i32
    %c0_i32_0 = arith.constant 0 : i32
    %c0_i32_1 = arith.constant 0 : i32
    return %c0_i32, %c0_i32_0 : i32, i32
  }
  func.func @transform_3(%arg0: i32) -> (i32, i32) {
    %c0_i32 = arith.constant 0 : i32
    %c0_i32_0 = arith.constant 0 : i32
    %c0_i32_1 = arith.constant 0 : i32
    return %c0_i32, %c0_i32_0 : i32, i32
  }
  func.func @transform_4(%arg0: i32) -> (i32, i32) {
    %c0_i32 = arith.constant 0 : i32
    %c0_i32_0 = arith.constant 0 : i32
    %c0_i32_1 = arith.constant 0 : i32
    return %c0_i32, %c0_i32_0 : i32, i32
  }
}

module attributes {stable_mosaic.version = 11 : i64} {
  func.func @_matmul_bias_kernel(%arg0: i32, %arg1: memref<128x4xf32, #tpu.memory_space<vmem>>, %arg2: memref<4x256xf32, #tpu.memory_space<vmem>>, %arg3: memref<1x256xf32, #tpu.memory_space<vmem>>, %arg4: memref<128x256xf32, #tpu.memory_space<vmem>>) attributes {dimension_semantics = [#tpu.dimension_semantics<arbitrary>], iteration_bounds = array<i64: 1>, scalar_prefetch = 0 : i64, scratch_operands = 0 : i64, tpu.core_type = #tpu.core_type<tc>, window_params = [{pipeline_mode = #tpu.pipeline_mode<synchronous>, transform_indices = @transform_0, window_bounds = array<i64: 128, 4>}, {pipeline_mode = #tpu.pipeline_mode<synchronous>, transform_indices = @transform_1, window_bounds = array<i64: 4, 256>}, {pipeline_mode = #tpu.pipeline_mode<synchronous>, transform_indices = @transform_2, window_bounds = array<i64: 1, 256>}, {pipeline_mode = #tpu.pipeline_mode<synchronous>, transform_indices = @transform_3, window_bounds = array<i64: 128, 256>}]} {
    %c0 = arith.constant 0 : index
    %c0_0 = arith.constant 0 : index
    %0 = vector.load %arg1[%c0, %c0_0] : memref<128x4xf32, #tpu.memory_space<vmem>>, vector<128x4xf32>
    %c0_1 = arith.constant 0 : index
    %c0_2 = arith.constant 0 : index
    %1 = vector.load %arg2[%c0_1, %c0_2] : memref<4x256xf32, #tpu.memory_space<vmem>>, vector<4x256xf32>
    %cst = arith.constant dense<0.000000e+00> : vector<128x256xf32>
    %2 = tpu.matmul %0, %1, %cst {dimension_numbers = #tpu.dot_dimension_numbers<[1], [0], [0], [1], [0, 0, 1, 1], [], []>} : vector<128x4xf32>, vector<4x256xf32>, vector<128x256xf32> -> vector<128x256xf32>
    %c0_3 = arith.constant 0 : index
    %c0_4 = arith.constant 0 : index
    %3 = vector.load %arg3[%c0_3, %c0_4] : memref<1x256xf32, #tpu.memory_space<vmem>>, vector<1x256xf32>
    %4 = vector.broadcast %3 : vector<1x256xf32> to vector<128x256xf32>
    %5 = arith.addf %2, %4 : vector<128x256xf32>
    %c0_5 = arith.constant 0 : index
    %c0_6 = arith.constant 0 : index
    %6 = vector.load %arg4[%c0_5, %c0_6] : memref<128x256xf32, #tpu.memory_space<vmem>>, vector<128x256xf32>
    tpu.vector_store %arg4[%c0_5, %c0_6], %5 {strides = array<i32>} : memref<128x256xf32, #tpu.memory_space<vmem>>, vector<128x256xf32>,
    return
  }
  func.func @transform_0(%arg0: i32) -> (i32, i32) {
    %c0_i32 = arith.constant 0 : i32
    %c0_i32_0 = arith.constant 0 : i32
    %c0_i32_1 = arith.constant 0 : i32
    return %c0_i32, %c0_i32_0 : i32, i32
  }
  func.func @transform_1(%arg0: i32) -> (i32, i32) {
    %c0_i32 = arith.constant 0 : i32
    %c0_i32_0 = arith.constant 0 : i32
    %c0_i32_1 = arith.constant 0 : i32
    return %c0_i32, %c0_i32_0 : i32, i32
  }
  func.func @transform_2(%arg0: i32) -> (i32, i32) {
    %c0_i32 = arith.constant 0 : i32
    %c0_i32_0 = arith.constant 0 : i32
    %c0_i32_1 = arith.constant 0 : i32
    return %c0_i32, %c0_i32_0 : i32, i32
  }
  func.func @transform_3(%arg0: i32) -> (i32, i32) {
    %c0_i32 = arith.constant 0 : i32
    %c0_i32_0 = arith.constant 0 : i32
    %c0_i32_1 = arith.constant 0 : i32
    return %c0_i32, %c0_i32_0 : i32, i32
  }
}

module attributes {stable_mosaic.version = 11 : i64} {
  func.func @_matmul_bias_kernel(%arg0: i32, %arg1: memref<1024x4xf32, #tpu.memory_space<vmem>>, %arg2: memref<4x32xf32, #tpu.memory_space<vmem>>, %arg3: memref<1x32xf32, #tpu.memory_space<vmem>>, %arg4: memref<1024x32xf32, #tpu.memory_space<vmem>>) attributes {dimension_semantics = [#tpu.dimension_semantics<arbitrary>], iteration_bounds = array<i64: 1>, scalar_prefetch = 0 : i64, scratch_operands = 0 : i64, tpu.core_type = #tpu.core_type<tc>, window_params = [{pipeline_mode = #tpu.pipeline_mode<synchronous>, transform_indices = @transform_0, window_bounds = array<i64: 1024, 4>}, {pipeline_mode = #tpu.pipeline_mode<synchronous>, transform_indices = @transform_1, window_bounds = array<i64: 4, 32>}, {pipeline_mode = #tpu.pipeline_mode<synchronous>, transform_indices = @transform_2, window_bounds = array<i64: 1, 32>}, {pipeline_mode = #tpu.pipeline_mode<synchronous>, transform_indices = @transform_3, window_bounds = array<i64: 1024, 32>}]} {
    %c0 = arith.constant 0 : index
    %c0_0 = arith.constant 0 : index
    %0 = vector.load %arg1[%c0, %c0_0] : memref<1024x4xf32, #tpu.memory_space<vmem>>, vector<1024x4xf32>
    %c0_1 = arith.constant 0 : index
    %c0_2 = arith.constant 0 : index
    %1 = vector.load %arg2[%c0_1, %c0_2] : memref<4x32xf32, #tpu.memory_space<vmem>>, vector<4x32xf32>
    %cst = arith.constant dense<0.000000e+00> : vector<1024x32xf32>
    %2 = tpu.matmul %0, %1, %cst {dimension_numbers = #tpu.dot_dimension_numbers<[1], [0], [0], [1], [0, 0, 1, 1], [], []>} : vector<1024x4xf32>, vector<4x32xf32>, vector<1024x32xf32> -> vector<1024x32xf32>
    %c0_3 = arith.constant 0 : index
    %c0_4 = arith.constant 0 : index
    %3 = vector.load %arg3[%c0_3, %c0_4] : memref<1x32xf32, #tpu.memory_space<vmem>>, vector<1x32xf32>
    %4 = vector.broadcast %3 : vector<1x32xf32> to vector<1024x32xf32>
    %5 = arith.addf %2, %4 : vector<1024x32xf32>
    %c0_5 = arith.constant 0 : index
    %c0_6 = arith.constant 0 : index
    %6 = vector.load %arg4[%c0_5, %c0_6] : memref<1024x32xf32, #tpu.memory_space<vmem>>, vector<1024x32xf32>
    tpu.vector_store %arg4[%c0_5, %c0_6], %5 {strides = array<i32>} : memref<1024x32xf32, #tpu.memory_space<vmem>>, vector<1024x32xf32>,
    return
  }
  func.func @transform_0(%arg0: i32) -> (i32, i32) {
    %c0_i32 = arith.constant 0 : i32
    %c0_i32_0 = arith.constant 0 : i32
    %c0_i32_1 = arith.constant 0 : i32
    return %c0_i32, %c0_i32_0 : i32, i32
  }
  func.func @transform_1(%arg0: i32) -> (i32, i32) {
    %c0_i32 = arith.constant 0 : i32
    %c0_i32_0 = arith.constant 0 : i32
    %c0_i32_1 = arith.constant 0 : i32
    return %c0_i32, %c0_i32_0 : i32, i32
  }
  func.func @transform_2(%arg0: i32) -> (i32, i32) {
    %c0_i32 = arith.constant 0 : i32
    %c0_i32_0 = arith.constant 0 : i32
    %c0_i32_1 = arith.constant 0 : i32
    return %c0_i32, %c0_i32_0 : i32, i32
  }
  func.func @transform_3(%arg0: i32) -> (i32, i32) {
    %c0_i32 = arith.constant 0 : i32
    %c0_i32_0 = arith.constant 0 : i32
    %c0_i32_1 = arith.constant 0 : i32
    return %c0_i32, %c0_i32_0 : i32, i32
  }
}

module attributes {stable_mosaic.version = 11 : i64} {
  func.func @_sum_stats_kernel(%arg0: i32, %arg1: memref<256x128xf32, #tpu.memory_space<vmem>>, %arg2: memref<256x128xf32, #tpu.memory_space<vmem>>, %arg3: memref<2x128xf32, #tpu.memory_space<vmem>>) attributes {dimension_semantics = [#tpu.dimension_semantics<arbitrary>], iteration_bounds = array<i64: 1>, scalar_prefetch = 0 : i64, scratch_operands = 0 : i64, tpu.core_type = #tpu.core_type<tc>, window_params = [{pipeline_mode = #tpu.pipeline_mode<synchronous>, transform_indices = @transform_0, window_bounds = array<i64: 256, 128>}, {pipeline_mode = #tpu.pipeline_mode<synchronous>, transform_indices = @transform_1, window_bounds = array<i64: 256, 128>}, {pipeline_mode = #tpu.pipeline_mode<synchronous>, transform_indices = @transform_2, window_bounds = array<i64: 2, 128>}]} {
    %c0 = arith.constant 0 : index
    %c0_0 = arith.constant 0 : index
    %0 = vector.load %arg1[%c0, %c0_0] : memref<256x128xf32, #tpu.memory_space<vmem>>, vector<256x128xf32>
    %c0_1 = arith.constant 0 : index
    %c0_2 = arith.constant 0 : index
    %1 = vector.load %arg2[%c0_1, %c0_2] : memref<256x128xf32, #tpu.memory_space<vmem>>, vector<256x128xf32>
    %2 = arith.addf %0, %1 : vector<256x128xf32>
    %cst = arith.constant dense<0.000000e+00> : vector<128xf32>
    %3 = vector.multi_reduction <add>, %2, %cst [0] : vector<256x128xf32> to vector<128xf32>
    %4 = vector.shape_cast %3 : vector<128xf32> to vector<1x128xf32>
    %c0_3 = arith.constant 0 : index
    %c0_4 = arith.constant 0 : index
    %5 = vector.load %arg3[%c0_3, %c0_4] : memref<2x128xf32, #tpu.memory_space<vmem>>, vector<1x128xf32>
    tpu.vector_store %arg3[%c0_3, %c0_4], %4 {strides = array<i32>} : memref<2x128xf32, #tpu.memory_space<vmem>>, vector<1x128xf32>,
    %6 = arith.mulf %2, %2 : vector<256x128xf32>
    %cst_5 = arith.constant dense<0.000000e+00> : vector<128xf32>
    %7 = vector.multi_reduction <add>, %6, %cst_5 [0] : vector<256x128xf32> to vector<128xf32>
    %8 = vector.shape_cast %7 : vector<128xf32> to vector<1x128xf32>
    %c1 = arith.constant 1 : index
    %c0_6 = arith.constant 0 : index
    %9 = vector.load %arg3[%c1, %c0_6] : memref<2x128xf32, #tpu.memory_space<vmem>>, vector<1x128xf32>
    tpu.vector_store %arg3[%c1, %c0_6], %8 {strides = array<i32>} : memref<2x128xf32, #tpu.memory_space<vmem>>, vector<1x128xf32>,
    return
  }
  func.func @transform_0(%arg0: i32) -> (i32, i32) {
    %c0_i32 = arith.constant 0 : i32
    %c0_i32_0 = arith.constant 0 : i32
    %c0_i32_1 = arith.constant 0 : i32
    return %c0_i32, %c0_i32_0 : i32, i32
  }
  func.func @transform_1(%arg0: i32) -> (i32, i32) {
    %c0_i32 = arith.constant 0 : i32
    %c0_i32_0 = arith.constant 0 : i32
    %c0_i32_1 = arith.constant 0 : i32
    return %c0_i32, %c0_i32_0 : i32, i32
  }
  func.func @transform_2(%arg0: i32) -> (i32, i32) {
    %c0_i32 = arith.constant 0 : i32
    %c0_i32_0 = arith.constant 0 : i32
    %c0_i32_1 = arith.constant 0 : i32
    return %c0_i32, %c0_i32_0 : i32, i32
  }
}

module attributes {stable_mosaic.version = 11 : i64} {
  func.func @_add_affine_relu_kernel(%arg0: i32, %arg1: memref<256x128xf32, #tpu.memory_space<vmem>>, %arg2: memref<256x128xf32, #tpu.memory_space<vmem>>, %arg3: memref<1x128xf32, #tpu.memory_space<vmem>>, %arg4: memref<1x128xf32, #tpu.memory_space<vmem>>, %arg5: memref<256x128xf32, #tpu.memory_space<vmem>>) attributes {dimension_semantics = [#tpu.dimension_semantics<arbitrary>], iteration_bounds = array<i64: 1>, scalar_prefetch = 0 : i64, scratch_operands = 0 : i64, tpu.core_type = #tpu.core_type<tc>, window_params = [{pipeline_mode = #tpu.pipeline_mode<synchronous>, transform_indices = @transform_0, window_bounds = array<i64: 256, 128>}, {pipeline_mode = #tpu.pipeline_mode<synchronous>, transform_indices = @transform_1, window_bounds = array<i64: 256, 128>}, {pipeline_mode = #tpu.pipeline_mode<synchronous>, transform_indices = @transform_2, window_bounds = array<i64: 1, 128>}, {pipeline_mode = #tpu.pipeline_mode<synchronous>, transform_indices = @transform_3, window_bounds = array<i64: 1, 128>}, {pipeline_mode = #tpu.pipeline_mode<synchronous>, transform_indices = @transform_4, window_bounds = array<i64: 256, 128>}]} {
    %c0 = arith.constant 0 : index
    %c0_0 = arith.constant 0 : index
    %0 = vector.load %arg1[%c0, %c0_0] : memref<256x128xf32, #tpu.memory_space<vmem>>, vector<256x128xf32>
    %c0_1 = arith.constant 0 : index
    %c0_2 = arith.constant 0 : index
    %1 = vector.load %arg2[%c0_1, %c0_2] : memref<256x128xf32, #tpu.memory_space<vmem>>, vector<256x128xf32>
    %2 = arith.addf %0, %1 : vector<256x128xf32>
    %c0_3 = arith.constant 0 : index
    %c0_4 = arith.constant 0 : index
    %3 = vector.load %arg3[%c0_3, %c0_4] : memref<1x128xf32, #tpu.memory_space<vmem>>, vector<1x128xf32>
    %4 = vector.broadcast %3 : vector<1x128xf32> to vector<256x128xf32>
    %5 = arith.mulf %2, %4 : vector<256x128xf32>
    %c0_5 = arith.constant 0 : index
    %c0_6 = arith.constant 0 : index
    %6 = vector.load %arg4[%c0_5, %c0_6] : memref<1x128xf32, #tpu.memory_space<vmem>>, vector<1x128xf32>
    %7 = vector.broadcast %6 : vector<1x128xf32> to vector<256x128xf32>
    %8 = arith.addf %5, %7 : vector<256x128xf32>
    %cst = arith.constant 0.000000e+00 : f32
    %9 = vector.broadcast %cst : f32 to vector<256x128xf32>
    %10 = arith.maximumf %8, %9 : vector<256x128xf32>
    %c0_7 = arith.constant 0 : index
    %c0_8 = arith.constant 0 : index
    %11 = vector.load %arg5[%c0_7, %c0_8] : memref<256x128xf32, #tpu.memory_space<vmem>>, vector<256x128xf32>
    tpu.vector_store %arg5[%c0_7, %c0_8], %10 {strides = array<i32>} : memref<256x128xf32, #tpu.memory_space<vmem>>, vector<256x128xf32>,
    return
  }
  func.func @transform_0(%arg0: i32) -> (i32, i32) {
    %c0_i32 = arith.constant 0 : i32
    %c0_i32_0 = arith.constant 0 : i32
    %c0_i32_1 = arith.constant 0 : i32
    return %c0_i32, %c0_i32_0 : i32, i32
  }
  func.func @transform_1(%arg0: i32) -> (i32, i32) {
    %c0_i32 = arith.constant 0 : i32
    %c0_i32_0 = arith.constant 0 : i32
    %c0_i32_1 = arith.constant 0 : i32
    return %c0_i32, %c0_i32_0 : i32, i32
  }
  func.func @transform_2(%arg0: i32) -> (i32, i32) {
    %c0_i32 = arith.constant 0 : i32
    %c0_i32_0 = arith.constant 0 : i32
    %c0_i32_1 = arith.constant 0 : i32
    return %c0_i32, %c0_i32_0 : i32, i32
  }
  func.func @transform_3(%arg0: i32) -> (i32, i32) {
    %c0_i32 = arith.constant 0 : i32
    %c0_i32_0 = arith.constant 0 : i32
    %c0_i32_1 = arith.constant 0 : i32
    return %c0_i32, %c0_i32_0 : i32, i32
  }
  func.func @transform_4(%arg0: i32) -> (i32, i32) {
    %c0_i32 = arith.constant 0 : i32
    %c0_i32_0 = arith.constant 0 : i32
    %c0_i32_1 = arith.constant 0 : i32
    return %c0_i32, %c0_i32_0 : i32, i32
  }
}

</mosaic_0001>

<bundles_post_ra>
// kernel: oct_up_forward.11
= control target key start
LH: loop header
LB: loop body
LE: loop exit
PB: predicated region body
PF: predicated region fallthrough
CT: control target
= control target key end

     0   :  { %vm548_vm0 = vcmask 1043456   ;;  %vm163_vm1 = vcmask 883712   ;;  %vm1257_vm2 = vcmask 31744   ;;  %s3129_s1 = inlined_call_operand.vmem [shape: f32[108,4], index: 1, kind: input, shape index: {}]   ;;  %s3130_s0 = inlined_call_operand.vmem [shape: f32[1024,108], index: 0, kind: input, shape index: {}]   ;;  %s3131_s2 = inlined_call_operand.vmem [shape: f32[1,4], index: 2, kind: input, shape index: {}]   ;;  %s3132_s3 = inlined_call_operand.vmem [shape: f32[1024,4], index: 3, kind: output, shape index: {}]  }
   0x1   :  { %v155_v0 = vld [vmem:[%s3129_s1 + $0x68] sm:$0xf]  ;;  %v154_v1 = vld [vmem:[%s3129_s1 + $0x60] sm:$0xff]  ;;  %v153_v2 = vld [vmem:[%s3129_s1 + $0x58] sm:$0xff] }
   0x2   :  { %1662 = vmatprep.subr.msk.mxu0 %vm548_vm0, %v155_v0  ;;  %1882 = vmatprep.subr.msk.mxu1 %vm548_vm0, %v155_v0  ;;  %v152_v3 = vld [vmem:[%s3129_s1 + $0x50] sm:$0xff]  ;;  %v151_v4 = vld [vmem:[%s3129_s1 + $0x48] sm:$0xff]  ;;  %v150_v5 = vld [vmem:[%s3129_s1 + $0x40] sm:$0xff] }
   0x3   :  { %1663 = vmatpush3.msk.msra.mxu0 %vm548_vm0, %v155_v0  ;;  %1896 = vmatpush3.msk.msra.mxu1 %vm548_vm0, %v155_v0  ;;  %v149_v6 = vld [vmem:[%s3129_s1 + $0x38] sm:$0xff]  ;;  %v148_v7 = vld [vmem:[%s3129_s1 + $0x30] sm:$0xff]  ;;  %v147_v8 = vld [vmem:[%s3129_s1 + $0x28] sm:$0xff] }
   0x4   :  { %1664 = vmatprep.subr.mxu0 %v154_v1  ;;  %1883 = vmatprep.subr.mxu1 %v154_v1  ;;  %v146_v9 = vld [vmem:[%s3129_s1 + $0x20] sm:$0xff]  ;;  %v145_v10 = vld [vmem:[%s3129_s1 + $0x18] sm:$0xff]  ;;  %v144_v11 = vld [vmem:[%s3129_s1 + $0x10] sm:$0xff] }
   0x5   :  { %1665 = vmatpush3.msra.mxu0 %v154_v1  ;;  %1897 = vmatpush3.msra.mxu1 %v154_v1  ;;  %v143_v12 = vld [vmem:[%s3129_s1 + $0x8] sm:$0xff]  ;;  %v142_v13 = vld [vmem:[%s3129_s1] sm:$0xff]  ;;  %v16_v18 = vld [vmem:[%s3130_s0 + $0x10] sm:$0xff] }
   0x6   :  { %1666 = vmatprep.subr.mxu0 %v153_v2  ;;  %1884 = vmatprep.subr.mxu1 %v153_v2  ;;  %v14_v14 = vld [vmem:[%s3130_s0] sm:$0xff]  ;;  %v15_v16 = vld [vmem:[%s3130_s0 + $0x8] sm:$0xff]  ;;  %v80_v19 = vld [vmem:[%s3130_s0 + $0x210] sm:$0xff] }
   0x7   :  { %1667 = vmatpush3.msra.mxu0 %v153_v2  ;;  %1898 = vmatpush3.msra.mxu1 %v153_v2  ;;  %v78_v15 = vld [vmem:[%s3130_s0 + $0x200] sm:$0xff]  ;;  %v79_v17 = vld [vmem:[%s3130_s0 + $0x208] sm:$0xff]  ;;  %v17_v20 = vld [vmem:[%s3130_s0 + $0x18] sm:$0xff] }
   0x8   :  { %1668 = vmatprep.subr.mxu0 %v152_v3  ;;  %1885 = vmatprep.subr.mxu1 %v152_v3  ;;  %v81_v21 = vld [vmem:[%s3130_s0 + $0x218] sm:$0xff]  ;;  %v18_v22 = vld [vmem:[%s3130_s0 + $0x20] sm:$0xff]  ;;  %v19_v24 = vld [vmem:[%s3130_s0 + $0x28] sm:$0xff] }
   0x9   :  { %1669 = vmatpush3.msra.mxu0 %v152_v3  ;;  %1899 = vmatpush3.msra.mxu1 %v152_v3  ;;  %v82_v23 = vld [vmem:[%s3130_s0 + $0x220] sm:$0xff]  ;;  %v83_v25 = vld [vmem:[%s3130_s0 + $0x228] sm:$0xff]  ;;  %v20_v26 = vld [vmem:[%s3130_s0 + $0x30] sm:$0xff] }
   0xa   :  { %1670 = vmatprep.subr.mxu0 %v151_v4  ;;  %1886 = vmatprep.subr.mxu1 %v151_v4  ;;  %v84_v27 = vld [vmem:[%s3130_s0 + $0x230] sm:$0xff]  ;;  %v21_v28 = vld [vmem:[%s3130_s0 + $0x38] sm:$0xff]  ;;  %v22_v30 = vld [vmem:[%s3130_s0 + $0x40] sm:$0xff] }
   0xb   :  { %1671 = vmatpush3.msra.mxu0 %v151_v4  ;;  %1900 = vmatpush3.msra.mxu1 %v151_v4  ;;  %v85_v29 = vld [vmem:[%s3130_s0 + $0x238] sm:$0xff]  ;;  %v86_v31 = vld [vmem:[%s3130_s0 + $0x240] sm:$0xff]  ;;  %v23_v32 = vld [vmem:[%s3130_s0 + $0x48] sm:$0xff] }
   0xc   :  { %1672 = vmatprep.subr.mxu0 %v150_v5  ;;  %1887 = vmatprep.subr.mxu1 %v150_v5  ;;  %v87_v33 = vld [vmem:[%s3130_s0 + $0x248] sm:$0xff]  ;;  %v24_v34 = vld [vmem:[%s3130_s0 + $0x50] sm:$0xff]  ;;  %v25_v36 = vld [vmem:[%s3130_s0 + $0x58] sm:$0xff] }
   0xd   :  { %1673 = vmatpush3.msra.mxu0 %v150_v5  ;;  %1901 = vmatpush3.msra.mxu1 %v150_v5  ;;  %v88_v35 = vld [vmem:[%s3130_s0 + $0x250] sm:$0xff]  ;;  %v89_v37 = vld [vmem:[%s3130_s0 + $0x258] sm:$0xff]  ;;  %v26_v38 = vld [vmem:[%s3130_s0 + $0x60] sm:$0xff] }
   0xe   :  { %1674 = vmatprep.subr.mxu0 %v149_v6  ;;  %1888 = vmatprep.subr.mxu1 %v149_v6  ;;  %v90_v39 = vld [vmem:[%s3130_s0 + $0x260] sm:$0xff]  ;;  %v27_v40 = vld [vmem:[%s3130_s0 + $0x68] sm:$0xff]  ;;  %v28_v42 = vld [vmem:[%s3130_s0 + $0x70] sm:$0xff] }
   0xf   :  { %1675 = vmatpush3.msra.mxu0 %v149_v6  ;;  %1902 = vmatpush3.msra.mxu1 %v149_v6  ;;  %v91_v41 = vld [vmem:[%s3130_s0 + $0x268] sm:$0xff]  ;;  %v92_v43 = vld [vmem:[%s3130_s0 + $0x270] sm:$0xff]  ;;  %v29_v44 = vld [vmem:[%s3130_s0 + $0x78] sm:$0xff] }
  0x10   :  { %1676 = vmatprep.subr.mxu0 %v148_v7  ;;  %1889 = vmatprep.subr.mxu1 %v148_v7  ;;  %v93_v45 = vld [vmem:[%s3130_s0 + $0x278] sm:$0xff]  ;;  %v30_v46 = vld [vmem:[%s3130_s0 + $0x80] sm:$0xff]  ;;  %v31_v48 = vld [vmem:[%s3130_s0 + $0x88] sm:$0xff] }
  0x11   :  { %1677 = vmatpush3.msra.mxu0 %v148_v7  ;;  %1903 = vmatpush3.msra.mxu1 %v148_v7  ;;  %v94_v47 = vld [vmem:[%s3130_s0 + $0x280] sm:$0xff]  ;;  %v95_v49 = vld [vmem:[%s3130_s0 + $0x288] sm:$0xff]  ;;  %v32_v50 = vld [vmem:[%s3130_s0 + $0x90] sm:$0xff] }
  0x12   :  { %1678 = vmatprep.subr.mxu0 %v147_v8  ;;  %1890 = vmatprep.subr.mxu1 %v147_v8  ;;  %v96_v51 = vld [vmem:[%s3130_s0 + $0x290] sm:$0xff]  ;;  %v33_v52 = vld [vmem:[%s3130_s0 + $0x98] sm:$0xff]  ;;  %v34_v54 = vld [vmem:[%s3130_s0 + $0xa0] sm:$0xff] }
  0x13   :  { %1679 = vmatpush3.msra.mxu0 %v147_v8  ;;  %1904 = vmatpush3.msra.mxu1 %v147_v8  ;;  %v97_v53 = vld [vmem:[%s3130_s0 + $0x298] sm:$0xff]  ;;  %v98_v55 = vld [vmem:[%s3130_s0 + $0x2a0] sm:$0xff]  ;;  %v35_v56 = vld [vmem:[%s3130_s0 + $0xa8] sm:$0xff] }
  0x14   :  { %1680 = vmatprep.subr.mxu0 %v146_v9  ;;  %1891 = vmatprep.subr.mxu1 %v146_v9  ;;  %v99_v57 = vld [vmem:[%s3130_s0 + $0x2a8] sm:$0xff]  ;;  %v36_v58 = vld [vmem:[%s3130_s0 + $0xb0] sm:$0xff]  ;;  %v37_v60 = vld [vmem:[%s3130_s0 + $0xb8] sm:$0xff] }
  0x15   :  { %1681 = vmatpush3.msra.mxu0 %v146_v9  ;;  %1905 = vmatpush3.msra.mxu1 %v146_v9  ;;  %v100_v59 = vld [vmem:[%s3130_s0 + $0x2b0] sm:$0xff]  ;;  %v101_v61 = vld [vmem:[%s3130_s0 + $0x2b8] sm:$0xff]  ;;  %v38_v62 = vld [vmem:[%s3130_s0 + $0xc0] sm:$0xff] }
  0x16   :  { %1682 = vmatprep.subr.mxu0 %v145_v10  ;;  %1892 = vmatprep.subr.mxu1 %v145_v10  ;;  %v102_v63 = vld [vmem:[%s3130_s0 + $0x2c0] sm:$0xff]  ;;  %v39_v0 = vld [vmem:[%s3130_s0 + $0xc8] sm:$0xff]  ;;  %v40_v2 = vld [vmem:[%s3130_s0 + $0xd0] sm:$0xff] }
  0x17   :  { %1683 = vmatpush3.msra.mxu0 %v145_v10  ;;  %1906 = vmatpush3.msra.mxu1 %v145_v10  ;;  %v103_v1 = vld [vmem:[%s3130_s0 + $0x2c8] sm:$0xff]  ;;  %v104_v3 = vld [vmem:[%s3130_s0 + $0x2d0] sm:$0xff]  ;;  %v41_v4 = vld [vmem:[%s3130_s0 + $0xd8] sm:$0xff] }
  0x18   :  { %1684 = vmatprep.subr.mxu0 %v144_v11  ;;  %1893 = vmatprep.subr.mxu1 %v144_v11  ;;  %v105_v5 = vld [vmem:[%s3130_s0 + $0x2d8] sm:$0xff]  ;;  %v42_v6 = vld [vmem:[%s3130_s0 + $0xe0] sm:$0xff]  ;;  %v43_v8 = vld [vmem:[%s3130_s0 + $0xe8] sm:$0xff] }
  0x19   :  { %1685 = vmatpush3.msra.mxu0 %v144_v11  ;;  %1907 = vmatpush3.msra.mxu1 %v144_v11  ;;  %v106_v7 = vld [vmem:[%s3130_s0 + $0x2e0] sm:$0xff]  ;;  %v107_v9 = vld [vmem:[%s3130_s0 + $0x2e8] sm:$0xff]  ;;  %v44_v10 = vld [vmem:[%s3130_s0 + $0xf0] sm:$0xff] }
  0x1a   :  { %1686 = vmatprep.subr.mxu0 %v143_v12  ;;  %1894 = vmatprep.subr.mxu1 %v143_v12  ;;  %v108_v11 = vld [vmem:[%s3130_s0 + $0x2f0] sm:$0xff] }
  0x1b   :  { %1687 = vmatpush3.msra.mxu0 %v143_v12  ;;  %1908 = vmatpush3.msra.mxu1 %v143_v12  ;;  %v45_v12 = vld [vmem:[%s3130_s0 + $0xf8] sm:$0xff] }
  0x1c   :  { %1688 = vmatprep.subr.mxu0 %v142_v13  ;;  %1895 = vmatprep.subr.mxu1 %v142_v13 }
  0x1d   :  { %1689 = vmatpush3.msra.mxu0 %v142_v13  ;;  %1909 = vmatpush3.msra.mxu1 %v142_v13  ;;  %v109_v13 = vld [vmem:[%s3130_s0 + $0x2f8] sm:$0xff] }
  0x1e   :  { %1690 = vmatprep.mubr.msk.f32.mxu0 %vm163_vm1, %v14_v14  ;;  %1786 = vmatprep.mubr.msk.f32.mxu1 %vm163_vm1, %v78_v15  ;;  %v46_v14 = vld [vmem:[%s3130_s0 + $0x100] sm:$0xff] }
  0x1f   :  { %1691 = vmatmul.mubr.msk.f32.vlgmr.msra.gmra.mxu0 %vm163_vm1, %v15_v16  ;;  %1787 = vmatmul.mubr.msk.f32.vlgmr.msra.gmra.mxu1 %vm163_vm1, %v79_v17  ;;  %v110_v15 = vld [vmem:[%s3130_s0 + $0x300] sm:$0xff]  ;;  %v47_v16 = vld [vmem:[%s3130_s0 + $0x108] sm:$0xff] }
  0x20   :  { %1693 = vmatprep.mubr.msk.f32.mxu0 %vm163_vm1, %v16_v18  ;;  %1789 = vmatprep.mubr.msk.f32.mxu1 %vm163_vm1, %v80_v19  ;;  %v111_v17 = vld [vmem:[%s3130_s0 + $0x308] sm:$0xff]  ;;  %v48_v18 = vld [vmem:[%s3130_s0 + $0x110] sm:$0xff] }
  0x21   :  { %v112_v19 = vld [vmem:[%s3130_s0 + $0x310] sm:$0xff] }
  0x23   :  { %1694 = vmatmul.mubr.msk.f32.gmra.mxu0 %vm163_vm1, %v17_v20  ;;  %1790 = vmatmul.mubr.msk.f32.gmra.mxu1 %vm163_vm1, %v81_v21  ;;  %v49_v20 = vld [vmem:[%s3130_s0 + $0x118] sm:$0xff] }
  0x24   :  { %1696 = vmatprep.mubr.msk.f32.mxu0 %vm163_vm1, %v18_v22  ;;  %1792 = vmatprep.mubr.msk.f32.mxu1 %vm163_vm1, %v82_v23  ;;  %v113_v21 = vld [vmem:[%s3130_s0 + $0x318] sm:$0xff]  ;;  %v50_v22 = vld [vmem:[%s3130_s0 + $0x120] sm:$0xff] }
  0x25   :  { %v114_v23 = vld [vmem:[%s3130_s0 + $0x320] sm:$0xff] }
  0x27   :  { %1697 = vmatmul.mubr.msk.f32.gmra.mxu0 %vm163_vm1, %v19_v24  ;;  %1793 = vmatmul.mubr.msk.f32.gmra.mxu1 %vm163_vm1, %v83_v25  ;;  %v51_v24 = vld [vmem:[%s3130_s0 + $0x128] sm:$0xff] }
  0x28   :  { %1699 = vmatprep.mubr.msk.f32.mxu0 %vm163_vm1, %v20_v26  ;;  %1795 = vmatprep.mubr.msk.f32.mxu1 %vm163_vm1, %v84_v27  ;;  %v115_v25 = vld [vmem:[%s3130_s0 + $0x328] sm:$0xff]  ;;  %v52_v26 = vld [vmem:[%s3130_s0 + $0x130] sm:$0xff] }
  0x29   :  { %v116_v27 = vld [vmem:[%s3130_s0 + $0x330] sm:$0xff] }
  0x2b   :  { %1700 = vmatmul.mubr.msk.f32.gmra.mxu0 %vm163_vm1, %v21_v28  ;;  %1796 = vmatmul.mubr.msk.f32.gmra.mxu1 %vm163_vm1, %v85_v29  ;;  %v53_v28 = vld [vmem:[%s3130_s0 + $0x138] sm:$0xff] }
  0x2c   :  { %1702 = vmatprep.mubr.msk.f32.mxu0 %vm163_vm1, %v22_v30  ;;  %1798 = vmatprep.mubr.msk.f32.mxu1 %vm163_vm1, %v86_v31  ;;  %v117_v29 = vld [vmem:[%s3130_s0 + $0x338] sm:$0xff]  ;;  %v54_v30 = vld [vmem:[%s3130_s0 + $0x140] sm:$0xff] }
  0x2d   :  { %v118_v31 = vld [vmem:[%s3130_s0 + $0x340] sm:$0xff] }
  0x2f   :  { %1703 = vmatmul.mubr.msk.f32.gmra.mxu0 %vm163_vm1, %v23_v32  ;;  %1799 = vmatmul.mubr.msk.f32.gmra.mxu1 %vm163_vm1, %v87_v33  ;;  %v55_v32 = vld [vmem:[%s3130_s0 + $0x148] sm:$0xff] }
  0x30   :  { %1705 = vmatprep.mubr.msk.f32.mxu0 %vm163_vm1, %v24_v34  ;;  %1801 = vmatprep.mubr.msk.f32.mxu1 %vm163_vm1, %v88_v35  ;;  %v119_v33 = vld [vmem:[%s3130_s0 + $0x348] sm:$0xff]  ;;  %v56_v34 = vld [vmem:[%s3130_s0 + $0x150] sm:$0xff] }
  0x31   :  { %v120_v35 = vld [vmem:[%s3130_s0 + $0x350] sm:$0xff] }
  0x33   :  { %1706 = vmatmul.mubr.msk.f32.gmra.mxu0 %vm163_vm1, %v25_v36  ;;  %1802 = vmatmul.mubr.msk.f32.gmra.mxu1 %vm163_vm1, %v89_v37  ;;  %v57_v36 = vld [vmem:[%s3130_s0 + $0x158] sm:$0xff] }
  0x34   :  { %1708 = vmatprep.mubr.msk.f32.mxu0 %vm163_vm1, %v26_v38  ;;  %1804 = vmatprep.mubr.msk.f32.mxu1 %vm163_vm1, %v90_v39  ;;  %v121_v37 = vld [vmem:[%s3130_s0 + $0x358] sm:$0xff]  ;;  %v58_v38 = vld [vmem:[%s3130_s0 + $0x160] sm:$0xff] }
  0x35   :  { %v122_v39 = vld [vmem:[%s3130_s0 + $0x360] sm:$0xff] }
  0x37   :  { %1709 = vmatmul.mubr.msk.f32.gmra.mxu0 %vm163_vm1, %v27_v40  ;;  %1805 = vmatmul.mubr.msk.f32.gmra.mxu1 %vm163_vm1, %v91_v41  ;;  %v59_v40 = vld [vmem:[%s3130_s0 + $0x168] sm:$0xff] }
  0x38   :  { %1711 = vmatprep.mubr.msk.f32.mxu0 %vm163_vm1, %v28_v42  ;;  %1807 = vmatprep.mubr.msk.f32.mxu1 %vm163_vm1, %v92_v43  ;;  %v123_v41 = vld [vmem:[%s3130_s0 + $0x368] sm:$0xff]  ;;  %v60_v42 = vld [vmem:[%s3130_s0 + $0x170] sm:$0xff] }
  0x39   :  { %v124_v43 = vld [vmem:[%s3130_s0 + $0x370] sm:$0xff] }
  0x3b   :  { %1712 = vmatmul.mubr.msk.f32.gmra.mxu0 %vm163_vm1, %v29_v44  ;;  %1808 = vmatmul.mubr.msk.f32.gmra.mxu1 %vm163_vm1, %v93_v45  ;;  %v61_v44 = vld [vmem:[%s3130_s0 + $0x178] sm:$0xff] }
  0x3c   :  { %1714 = vmatprep.mubr.msk.f32.mxu0 %vm163_vm1, %v30_v46  ;;  %1810 = vmatprep.mubr.msk.f32.mxu1 %vm163_vm1, %v94_v47  ;;  %v125_v45 = vld [vmem:[%s3130_s0 + $0x378] sm:$0xff]  ;;  %v62_v46 = vld [vmem:[%s3130_s0 + $0x180] sm:$0xff] }
  0x3d   :  { %v126_v47 = vld [vmem:[%s3130_s0 + $0x380] sm:$0xff] }
  0x3f   :  { %1715 = vmatmul.mubr.msk.f32.gmra.mxu0 %vm163_vm1, %v31_v48  ;;  %1811 = vmatmul.mubr.msk.f32.gmra.mxu1 %vm163_vm1, %v95_v49  ;;  %v63_v48 = vld [vmem:[%s3130_s0 + $0x188] sm:$0xff] }
  0x40   :  { %1717 = vmatprep.mubr.msk.f32.mxu0 %vm163_vm1, %v32_v50  ;;  %1813 = vmatprep.mubr.msk.f32.mxu1 %vm163_vm1, %v96_v51  ;;  %v127_v49 = vld [vmem:[%s3130_s0 + $0x388] sm:$0xff]  ;;  %v64_v50 = vld [vmem:[%s3130_s0 + $0x190] sm:$0xff] }
  0x41   :  { %v128_v51 = vld [vmem:[%s3130_s0 + $0x390] sm:$0xff] }
  0x43   :  { %1718 = vmatmul.mubr.msk.f32.gmra.mxu0 %vm163_vm1, %v33_v52  ;;  %1814 = vmatmul.mubr.msk.f32.gmra.mxu1 %vm163_vm1, %v97_v53  ;;  %v65_v52 = vld [vmem:[%s3130_s0 + $0x198] sm:$0xff] }
  0x44   :  { %1720 = vmatprep.mubr.msk.f32.mxu0 %vm163_vm1, %v34_v54  ;;  %1816 = vmatprep.mubr.msk.f32.mxu1 %vm163_vm1, %v98_v55  ;;  %v129_v53 = vld [vmem:[%s3130_s0 + $0x398] sm:$0xff]  ;;  %v66_v54 = vld [vmem:[%s3130_s0 + $0x1a0] sm:$0xff] }
  0x45   :  { %v130_v55 = vld [vmem:[%s3130_s0 + $0x3a0] sm:$0xff] }
  0x47   :  { %1721 = vmatmul.mubr.msk.f32.gmra.mxu0 %vm163_vm1, %v35_v56  ;;  %1817 = vmatmul.mubr.msk.f32.gmra.mxu1 %vm163_vm1, %v99_v57  ;;  %v67_v56 = vld [vmem:[%s3130_s0 + $0x1a8] sm:$0xff] }
  0x48   :  { %1723 = vmatprep.mubr.msk.f32.mxu0 %vm163_vm1, %v36_v58  ;;  %1819 = vmatprep.mubr.msk.f32.mxu1 %vm163_vm1, %v100_v59  ;;  %v131_v57 = vld [vmem:[%s3130_s0 + $0x3a8] sm:$0xff]  ;;  %v68_v58 = vld [vmem:[%s3130_s0 + $0x1b0] sm:$0xff] }
  0x49   :  { %v132_v59 = vld [vmem:[%s3130_s0 + $0x3b0] sm:$0xff] }
  0x4b   :  { %1724 = vmatmul.mubr.msk.f32.gmra.mxu0 %vm163_vm1, %v37_v60  ;;  %1820 = vmatmul.mubr.msk.f32.gmra.mxu1 %vm163_vm1, %v101_v61  ;;  %v69_v60 = vld [vmem:[%s3130_s0 + $0x1b8] sm:$0xff] }
  0x4c   :  { %1726 = vmatprep.mubr.msk.f32.mxu0 %vm163_vm1, %v38_v62  ;;  %1822 = vmatprep.mubr.msk.f32.mxu1 %vm163_vm1, %v102_v63  ;;  %v133_v61 = vld [vmem:[%s3130_s0 + $0x3b8] sm:$0xff]  ;;  %v70_v62 = vld [vmem:[%s3130_s0 + $0x1c0] sm:$0xff] }
  0x4d   :  { %v134_v63 = vld [vmem:[%s3130_s0 + $0x3c0] sm:$0xff] }
  0x4f   :  { %1727 = vmatmul.mubr.msk.f32.gmra.mxu0 %vm163_vm1, %v39_v0  ;;  %1823 = vmatmul.mubr.msk.f32.gmra.mxu1 %vm163_vm1, %v103_v1  ;;  %v71_v0 = vld [vmem:[%s3130_s0 + $0x1c8] sm:$0xff] }
  0x50   :  { %1729 = vmatprep.mubr.msk.f32.mxu0 %vm163_vm1, %v40_v2  ;;  %1825 = vmatprep.mubr.msk.f32.mxu1 %vm163_vm1, %v104_v3  ;;  %v135_v1 = vld [vmem:[%s3130_s0 + $0x3c8] sm:$0xff]  ;;  %v72_v2 = vld [vmem:[%s3130_s0 + $0x1d0] sm:$0xff] }
  0x51   :  { %v136_v3 = vld [vmem:[%s3130_s0 + $0x3d0] sm:$0xff] }
  0x53   :  { %1730 = vmatmul.mubr.msk.f32.gmra.mxu0 %vm163_vm1, %v41_v4  ;;  %1826 = vmatmul.mubr.msk.f32.gmra.mxu1 %vm163_vm1, %v105_v5  ;;  %v73_v4 = vld [vmem:[%s3130_s0 + $0x1d8] sm:$0xff] }
  0x54   :  { %1732 = vmatprep.mubr.msk.f32.mxu0 %vm163_vm1, %v42_v6  ;;  %1828 = vmatprep.mubr.msk.f32.mxu1 %vm163_vm1, %v106_v7  ;;  %v137_v5 = vld [vmem:[%s3130_s0 + $0x3d8] sm:$0xff]  ;;  %v74_v6 = vld [vmem:[%s3130_s0 + $0x1e0] sm:$0xff] }
  0x55   :  { %v138_v7 = vld [vmem:[%s3130_s0 + $0x3e0] sm:$0xff] }
  0x57   :  { %1733 = vmatmul.mubr.msk.f32.gmra.mxu0 %vm163_vm1, %v43_v8  ;;  %1829 = vmatmul.mubr.msk.f32.gmra.mxu1 %vm163_vm1, %v107_v9  ;;  %v75_v8 = vld [vmem:[%s3130_s0 + $0x1e8] sm:$0xff] }
  0x58   :  { %1735 = vmatprep.mubr.msk.f32.mxu0 %vm163_vm1, %v44_v10  ;;  %1831 = vmatprep.mubr.msk.f32.mxu1 %vm163_vm1, %v108_v11  ;;  %v139_v9 = vld [vmem:[%s3130_s0 + $0x3e8] sm:$0xff]  ;;  %v76_v10 = vld [vmem:[%s3130_s0 + $0x1f0] sm:$0xff] }
  0x59   :  { %v140_v11 = vld [vmem:[%s3130_s0 + $0x3f0] sm:$0xff] }
  0x5b   :  { %1736 = vmatmul.mubr.msk.f32.gmra.mxu0 %vm163_vm1, %v45_v12  ;;  %1832 = vmatmul.mubr.msk.f32.gmra.mxu1 %vm163_vm1, %v109_v13  ;;  %v77_v12 = vld [vmem:[%s3130_s0 + $0x1f8] sm:$0xff] }
  0x5c   :  { %1738 = vmatprep.mubr.msk.f32.mxu0 %vm163_vm1, %v46_v14  ;;  %1834 = vmatprep.mubr.msk.f32.mxu1 %vm163_vm1, %v110_v15  ;;  %v141_v13 = vld [vmem:[%s3130_s0 + $0x3f8] sm:$0xff]  ;;  %v2487_v14 = vld [vmem:[%s3131_s2] ss:$0 sm:$0xff] }
  0x5f   :  { %1739 = vmatmul.mubr.msk.f32.gmra.mxu0 %vm163_vm1, %v47_v16  ;;  %1835 = vmatmul.mubr.msk.f32.gmra.mxu1 %vm163_vm1, %v111_v17 }
  0x60   :  { %1741 = vmatprep.mubr.msk.f32.mxu0 %vm163_vm1, %v48_v18  ;;  %1837 = vmatprep.mubr.msk.f32.mxu1 %vm163_vm1, %v112_v19 }
  0x63   :  { %1742 = vmatmul.mubr.msk.f32.gmra.mxu0 %vm163_vm1, %v49_v20  ;;  %1838 = vmatmul.mubr.msk.f32.gmra.mxu1 %vm163_vm1, %v113_v21 }
  0x64   :  { %1744 = vmatprep.mubr.msk.f32.mxu0 %vm163_vm1, %v50_v22  ;;  %1840 = vmatprep.mubr.msk.f32.mxu1 %vm163_vm1, %v114_v23 }
  0x67   :  { %1745 = vmatmul.mubr.msk.f32.gmra.mxu0 %vm163_vm1, %v51_v24  ;;  %1841 = vmatmul.mubr.msk.f32.gmra.mxu1 %vm163_vm1, %v115_v25 }
  0x68   :  { %1747 = vmatprep.mubr.msk.f32.mxu0 %vm163_vm1, %v52_v26  ;;  %1843 = vmatprep.mubr.msk.f32.mxu1 %vm163_vm1, %v116_v27 }
  0x6b   :  { %1748 = vmatmul.mubr.msk.f32.gmra.mxu0 %vm163_vm1, %v53_v28  ;;  %1844 = vmatmul.mubr.msk.f32.gmra.mxu1 %vm163_vm1, %v117_v29 }
  0x6c   :  { %1750 = vmatprep.mubr.msk.f32.mxu0 %vm163_vm1, %v54_v30  ;;  %1846 = vmatprep.mubr.msk.f32.mxu1 %vm163_vm1, %v118_v31 }
  0x6f   :  { %1751 = vmatmul.mubr.msk.f32.gmra.mxu0 %vm163_vm1, %v55_v32  ;;  %1847 = vmatmul.mubr.msk.f32.gmra.mxu1 %vm163_vm1, %v119_v33 }
  0x70   :  { %1753 = vmatprep.mubr.msk.f32.mxu0 %vm163_vm1, %v56_v34  ;;  %1849 = vmatprep.mubr.msk.f32.mxu1 %vm163_vm1, %v120_v35 }
  0x73   :  { %1754 = vmatmul.mubr.msk.f32.gmra.mxu0 %vm163_vm1, %v57_v36  ;;  %1850 = vmatmul.mubr.msk.f32.gmra.mxu1 %vm163_vm1, %v121_v37 }
  0x74   :  { %1756 = vmatprep.mubr.msk.f32.mxu0 %vm163_vm1, %v58_v38  ;;  %1852 = vmatprep.mubr.msk.f32.mxu1 %vm163_vm1, %v122_v39 }
  0x77   :  { %1757 = vmatmul.mubr.msk.f32.gmra.mxu0 %vm163_vm1, %v59_v40  ;;  %1853 = vmatmul.mubr.msk.f32.gmra.mxu1 %vm163_vm1, %v123_v41 }
  0x78   :  { %1759 = vmatprep.mubr.msk.f32.mxu0 %vm163_vm1, %v60_v42  ;;  %1855 = vmatprep.mubr.msk.f32.mxu1 %vm163_vm1, %v124_v43 }
  0x7b   :  { %1760 = vmatmul.mubr.msk.f32.gmra.mxu0 %vm163_vm1, %v61_v44  ;;  %1856 = vmatmul.mubr.msk.f32.gmra.mxu1 %vm163_vm1, %v125_v45 }
  0x7c   :  { %1762 = vmatprep.mubr.msk.f32.mxu0 %vm163_vm1, %v62_v46  ;;  %1858 = vmatprep.mubr.msk.f32.mxu1 %vm163_vm1, %v126_v47 }
  0x7f   :  { %1763 = vmatmul.mubr.msk.f32.gmra.mxu0 %vm163_vm1, %v63_v48  ;;  %1859 = vmatmul.mubr.msk.f32.gmra.mxu1 %vm163_vm1, %v127_v49 }
  0x80   :  { %1765 = vmatprep.mubr.msk.f32.mxu0 %vm163_vm1, %v64_v50  ;;  %1861 = vmatprep.mubr.msk.f32.mxu1 %vm163_vm1, %v128_v51 }
  0x83   :  { %1766 = vmatmul.mubr.msk.f32.gmra.mxu0 %vm163_vm1, %v65_v52  ;;  %1862 = vmatmul.mubr.msk.f32.gmra.mxu1 %vm163_vm1, %v129_v53 }
  0x84   :  { %1768 = vmatprep.mubr.msk.f32.mxu0 %vm163_vm1, %v66_v54  ;;  %1864 = vmatprep.mubr.msk.f32.mxu1 %vm163_vm1, %v130_v55 }
  0x87   :  { %1769 = vmatmul.mubr.msk.f32.gmra.mxu0 %vm163_vm1, %v67_v56  ;;  %1865 = vmatmul.mubr.msk.f32.gmra.mxu1 %vm163_vm1, %v131_v57 }
  0x88   :  { %1771 = vmatprep.mubr.msk.f32.mxu0 %vm163_vm1, %v68_v58  ;;  %1867 = vmatprep.mubr.msk.f32.mxu1 %vm163_vm1, %v132_v59 }
  0x8b   :  { %1772 = vmatmul.mubr.msk.f32.gmra.mxu0 %vm163_vm1, %v69_v60  ;;  %1868 = vmatmul.mubr.msk.f32.gmra.mxu1 %vm163_vm1, %v133_v61 }
  0x8c   :  { %1774 = vmatprep.mubr.msk.f32.mxu0 %vm163_vm1, %v70_v62  ;;  %1870 = vmatprep.mubr.msk.f32.mxu1 %vm163_vm1, %v134_v63 }
  0x8f   :  { %1775 = vmatmul.mubr.msk.f32.gmra.mxu0 %vm163_vm1, %v71_v0  ;;  %1871 = vmatmul.mubr.msk.f32.gmra.mxu1 %vm163_vm1, %v135_v1 }
  0x90   :  { %1777 = vmatprep.mubr.msk.f32.mxu0 %vm163_vm1, %v72_v2  ;;  %1873 = vmatprep.mubr.msk.f32.mxu1 %vm163_vm1, %v136_v3 }
  0x93   :  { %1778 = vmatmul.mubr.msk.f32.gmra.mxu0 %vm163_vm1, %v73_v4  ;;  %1874 = vmatmul.mubr.msk.f32.gmra.mxu1 %vm163_vm1, %v137_v5 }
  0x94   :  { %1780 = vmatprep.mubr.msk.f32.mxu0 %vm163_vm1, %v74_v6  ;;  %1876 = vmatprep.mubr.msk.f32.mxu1 %vm163_vm1, %v138_v7 }
  0x97   :  { %1781 = vmatmul.mubr.msk.f32.gmra.mxu0 %vm163_vm1, %v75_v8  ;;  %1877 = vmatmul.mubr.msk.f32.gmra.mxu1 %vm163_vm1, %v139_v9 }
  0x98   :  { %1783 = vmatprep.mubr.msk.f32.mxu0 %vm163_vm1, %v76_v10  ;;  %1879 = vmatprep.mubr.msk.f32.mxu1 %vm163_vm1, %v140_v11 }
  0x9b   :  { %1784 = vmatmul.mubr.msk.f32.gmra.mxu0 %vm163_vm1, %v77_v12  ;;  %1880 = vmatmul.mubr.msk.f32.gmra.mxu1 %vm163_vm1, %v141_v13 }
  0xdf   :  { %v1692_v15 = vpop.f32.mrf.mxu0  ;;  %v1788_v16 = vpop.f32.mrf.mxu1 }
  0xe0   :  { %v624_v17 = vadd.f32 %v1692_v15, %v2487_v14  ;;  %v944_v18 = vadd.f32 %v1788_v16, %v2487_v14 }
  0xe1   :  { %v618_v19 = vpop.f32.mrf.mxu0  ;;  %v938_v20 = vpop.f32.mrf.mxu1 }
  0xe2   :  { %1259 = vst.msk [vmem:[%s3132_s3 + $0x8] sm:$0xff] %vm1257_vm2, %v624_v17  ;;  %1323 = vst.msk [vmem:[%s3132_s3 + $0x208] sm:$0xff] %vm1257_vm2, %v944_v18  ;;  %v619_v21 = vadd.f32 %v2487_v14, %v618_v19  ;;  %v939_v22 = vadd.f32 %v2487_v14, %v938_v20 }
  0xe3   :  { %v1695_v23 = vpop.f32.mrf.mxu0  ;;  %v1791_v24 = vpop.f32.mrf.mxu1 }
  0xe4   :  { %1258 = vst.msk [vmem:[%s3132_s3] sm:$0xff] %vm1257_vm2, %v619_v21  ;;  %1322 = vst.msk [vmem:[%s3132_s3 + $0x200] sm:$0xff] %vm1257_vm2, %v939_v22  ;;  %v634_v25 = vadd.f32 %v1695_v23, %v2487_v14  ;;  %v954_v26 = vadd.f32 %v1791_v24, %v2487_v14 }
  0xe5   :  { %v628_v27 = vpop.f32.mrf.mxu0  ;;  %v948_v28 = vpop.f32.mrf.mxu1 }
  0xe6   :  { %1261 = vst.msk [vmem:[%s3132_s3 + $0x18] sm:$0xff] %vm1257_vm2, %v634_v25  ;;  %1325 = vst.msk [vmem:[%s3132_s3 + $0x218] sm:$0xff] %vm1257_vm2, %v954_v26  ;;  %v629_v29 = vadd.f32 %v2487_v14, %v628_v27  ;;  %v949_v30 = vadd.f32 %v2487_v14, %v948_v28 }
  0xe7   :  { %v1698_v31 = vpop.f32.mrf.mxu0  ;;  %v1794_v32 = vpop.f32.mrf.mxu1 }
  0xe8   :  { %1260 = vst.msk [vmem:[%s3132_s3 + $0x10] sm:$0xff] %vm1257_vm2, %v629_v29  ;;  %1324 = vst.msk [vmem:[%s3132_s3 + $0x210] sm:$0xff] %vm1257_vm2, %v949_v30  ;;  %v644_v33 = vadd.f32 %v1698_v31, %v2487_v14  ;;  %v964_v34 = vadd.f32 %v1794_v32, %v2487_v14 }
  0xe9   :  { %v638_v35 = vpop.f32.mrf.mxu0  ;;  %v958_v36 = vpop.f32.mrf.mxu1 }
  0xea   :  { %1263 = vst.msk [vmem:[%s3132_s3 + $0x28] sm:$0xff] %vm1257_vm2, %v644_v33  ;;  %1327 = vst.msk [vmem:[%s3132_s3 + $0x228] sm:$0xff] %vm1257_vm2, %v964_v34  ;;  %v639_v37 = vadd.f32 %v2487_v14, %v638_v35  ;;  %v959_v38 = vadd.f32 %v2487_v14, %v958_v36 }
  0xeb   :  { %v1701_v39 = vpop.f32.mrf.mxu0  ;;  %v1797_v40 = vpop.f32.mrf.mxu1 }
  0xec   :  { %1262 = vst.msk [vmem:[%s3132_s3 + $0x20] sm:$0xff] %vm1257_vm2, %v639_v37  ;;  %1326 = vst.msk [vmem:[%s3132_s3 + $0x220] sm:$0xff] %vm1257_vm2, %v959_v38  ;;  %v654_v41 = vadd.f32 %v1701_v39, %v2487_v14  ;;  %v974_v42 = vadd.f32 %v1797_v40, %v2487_v14 }
  0xed   :  { %v648_v43 = vpop.f32.mrf.mxu0  ;;  %v968_v44 = vpop.f32.mrf.mxu1 }
  0xee   :  { %1265 = vst.msk [vmem:[%s3132_s3 + $0x38] sm:$0xff] %vm1257_vm2, %v654_v41  ;;  %1329 = vst.msk [vmem:[%s3132_s3 + $0x238] sm:$0xff] %vm1257_vm2, %v974_v42  ;;  %v649_v45 = vadd.f32 %v2487_v14, %v648_v43  ;;  %v969_v46 = vadd.f32 %v2487_v14, %v968_v44 }
  0xef   :  { %v1704_v47 = vpop.f32.mrf.mxu0  ;;  %v1800_v48 = vpop.f32.mrf.mxu1 }
  0xf0   :  { %1264 = vst.msk [vmem:[%s3132_s3 + $0x30] sm:$0xff] %vm1257_vm2, %v649_v45  ;;  %1328 = vst.msk [vmem:[%s3132_s3 + $0x230] sm:$0xff] %vm1257_vm2, %v969_v46  ;;  %v664_v49 = vadd.f32 %v1704_v47, %v2487_v14  ;;  %v984_v50 = vadd.f32 %v1800_v48, %v2487_v14 }
  0xf1   :  { %v658_v51 = vpop.f32.mrf.mxu0  ;;  %v978_v52 = vpop.f32.mrf.mxu1 }
  0xf2   :  { %1267 = vst.msk [vmem:[%s3132_s3 + $0x48] sm:$0xff] %vm1257_vm2, %v664_v49  ;;  %1331 = vst.msk [vmem:[%s3132_s3 + $0x248] sm:$0xff] %vm1257_vm2, %v984_v50  ;;  %v659_v53 = vadd.f32 %v2487_v14, %v658_v51  ;;  %v979_v54 = vadd.f32 %v2487_v14, %v978_v52 }
  0xf3   :  { %v1707_v55 = vpop.f32.mrf.mxu0  ;;  %v1803_v56 = vpop.f32.mrf.mxu1 }
  0xf4   :  { %1266 = vst.msk [vmem:[%s3132_s3 + $0x40] sm:$0xff] %vm1257_vm2, %v659_v53  ;;  %1330 = vst.msk [vmem:[%s3132_s3 + $0x240] sm:$0xff] %vm1257_vm2, %v979_v54  ;;  %v674_v57 = vadd.f32 %v1707_v55, %v2487_v14  ;;  %v994_v58 = vadd.f32 %v1803_v56, %v2487_v14 }
  0xf5   :  { %v668_v59 = vpop.f32.mrf.mxu0  ;;  %v988_v60 = vpop.f32.mrf.mxu1 }
  0xf6   :  { %1269 = vst.msk [vmem:[%s3132_s3 + $0x58] sm:$0xff] %vm1257_vm2, %v674_v57  ;;  %1333 = vst.msk [vmem:[%s3132_s3 + $0x258] sm:$0xff] %vm1257_vm2, %v994_v58  ;;  %v669_v61 = vadd.f32 %v2487_v14, %v668_v59  ;;  %v989_v62 = vadd.f32 %v2487_v14, %v988_v60 }
  0xf7   :  { %v1710_v63 = vpop.f32.mrf.mxu0  ;;  %v1806_v0 = vpop.f32.mrf.mxu1 }
  0xf8   :  { %1268 = vst.msk [vmem:[%s3132_s3 + $0x50] sm:$0xff] %vm1257_vm2, %v669_v61  ;;  %1332 = vst.msk [vmem:[%s3132_s3 + $0x250] sm:$0xff] %vm1257_vm2, %v989_v62  ;;  %v684_v1 = vadd.f32 %v1710_v63, %v2487_v14  ;;  %v1004_v2 = vadd.f32 %v1806_v0, %v2487_v14 }
  0xf9   :  { %v678_v3 = vpop.f32.mrf.mxu0  ;;  %v998_v4 = vpop.f32.mrf.mxu1 }
  0xfa   :  { %1271 = vst.msk [vmem:[%s3132_s3 + $0x68] sm:$0xff] %vm1257_vm2, %v684_v1  ;;  %1335 = vst.msk [vmem:[%s3132_s3 + $0x268] sm:$0xff] %vm1257_vm2, %v1004_v2  ;;  %v679_v5 = vadd.f32 %v2487_v14, %v678_v3  ;;  %v999_v6 = vadd.f32 %v2487_v14, %v998_v4 }
  0xfb   :  { %v1713_v7 = vpop.f32.mrf.mxu0  ;;  %v1809_v8 = vpop.f32.mrf.mxu1 }
  0xfc   :  { %1270 = vst.msk [vmem:[%s3132_s3 + $0x60] sm:$0xff] %vm1257_vm2, %v679_v5  ;;  %1334 = vst.msk [vmem:[%s3132_s3 + $0x260] sm:$0xff] %vm1257_vm2, %v999_v6  ;;  %v694_v9 = vadd.f32 %v1713_v7, %v2487_v14  ;;  %v1014_v10 = vadd.f32 %v1809_v8, %v2487_v14 }
  0xfd   :  { %v688_v11 = vpop.f32.mrf.mxu0  ;;  %v1008_v12 = vpop.f32.mrf.mxu1 }
  0xfe   :  { %1273 = vst.msk [vmem:[%s3132_s3 + $0x78] sm:$0xff] %vm1257_vm2, %v694_v9  ;;  %1337 = vst.msk [vmem:[%s3132_s3 + $0x278] sm:$0xff] %vm1257_vm2, %v1014_v10  ;;  %v689_v13 = vadd.f32 %v2487_v14, %v688_v11  ;;  %v1009_v15 = vadd.f32 %v2487_v14, %v1008_v12 }
  0xff   :  { %v1716_v16 = vpop.f32.mrf.mxu0  ;;  %v1812_v17 = vpop.f32.mrf.mxu1 }
 0x100   :  { %1272 = vst.msk [vmem:[%s3132_s3 + $0x70] sm:$0xff] %vm1257_vm2, %v689_v13  ;;  %1336 = vst.msk [vmem:[%s3132_s3 + $0x270] sm:$0xff] %vm1257_vm2, %v1009_v15  ;;  %v704_v18 = vadd.f32 %v1716_v16, %v2487_v14  ;;  %v1024_v19 = vadd.f32 %v1812_v17, %v2487_v14 }
 0x101   :  { %v698_v20 = vpop.f32.mrf.mxu0  ;;  %v1018_v21 = vpop.f32.mrf.mxu1 }
 0x102   :  { %1275 = vst.msk [vmem:[%s3132_s3 + $0x88] sm:$0xff] %vm1257_vm2, %v704_v18  ;;  %1339 = vst.msk [vmem:[%s3132_s3 + $0x288] sm:$0xff] %vm1257_vm2, %v1024_v19  ;;  %v699_v22 = vadd.f32 %v2487_v14, %v698_v20  ;;  %v1019_v23 = vadd.f32 %v2487_v14, %v1018_v21 }
 0x103   :  { %v1719_v24 = vpop.f32.mrf.mxu0  ;;  %v1815_v25 = vpop.f32.mrf.mxu1 }
 0x104   :  { %1274 = vst.msk [vmem:[%s3132_s3 + $0x80] sm:$0xff] %vm1257_vm2, %v699_v22  ;;  %1338 = vst.msk [vmem:[%s3132_s3 + $0x280] sm:$0xff] %vm1257_vm2, %v1019_v23  ;;  %v714_v26 = vadd.f32 %v1719_v24, %v2487_v14  ;;  %v1034_v27 = vadd.f32 %v1815_v25, %v2487_v14 }
 0x105   :  { %v708_v28 = vpop.f32.mrf.mxu0  ;;  %v1028_v29 = vpop.f32.mrf.mxu1 }
 0x106   :  { %1277 = vst.msk [vmem:[%s3132_s3 + $0x98] sm:$0xff] %vm1257_vm2, %v714_v26  ;;  %1341 = vst.msk [vmem:[%s3132_s3 + $0x298] sm:$0xff] %vm1257_vm2, %v1034_v27  ;;  %v709_v30 = vadd.f32 %v2487_v14, %v708_v28  ;;  %v1029_v31 = vadd.f32 %v2487_v14, %v1028_v29 }
 0x107   :  { %v1722_v32 = vpop.f32.mrf.mxu0  ;;  %v1818_v33 = vpop.f32.mrf.mxu1 }
 0x108   :  { %1276 = vst.msk [vmem:[%s3132_s3 + $0x90] sm:$0xff] %vm1257_vm2, %v709_v30  ;;  %1340 = vst.msk [vmem:[%s3132_s3 + $0x290] sm:$0xff] %vm1257_vm2, %v1029_v31  ;;  %v724_v34 = vadd.f32 %v1722_v32, %v2487_v14  ;;  %v1044_v35 = vadd.f32 %v1818_v33, %v2487_v14 }
 0x109   :  { %v718_v36 = vpop.f32.mrf.mxu0  ;;  %v1038_v37 = vpop.f32.mrf.mxu1 }
 0x10a   :  { %1279 = vst.msk [vmem:[%s3132_s3 + $0xa8] sm:$0xff] %vm1257_vm2, %v724_v34  ;;  %1343 = vst.msk [vmem:[%s3132_s3 + $0x2a8] sm:$0xff] %vm1257_vm2, %v1044_v35  ;;  %v719_v38 = vadd.f32 %v2487_v14, %v718_v36  ;;  %v1039_v39 = vadd.f32 %v2487_v14, %v1038_v37 }
 0x10b   :  { %v1725_v40 = vpop.f32.mrf.mxu0  ;;  %v1821_v41 = vpop.f32.mrf.mxu1 }
 0x10c   :  { %1278 = vst.msk [vmem:[%s3132_s3 + $0xa0] sm:$0xff] %vm1257_vm2, %v719_v38  ;;  %1342 = vst.msk [vmem:[%s3132_s3 + $0x2a0] sm:$0xff] %vm1257_vm2, %v1039_v39  ;;  %v734_v42 = vadd.f32 %v1725_v40, %v2487_v14  ;;  %v1054_v43 = vadd.f32 %v1821_v41, %v2487_v14 }
 0x10d   :  { %v728_v44 = vpop.f32.mrf.mxu0  ;;  %v1048_v45 = vpop.f32.mrf.mxu1 }
 0x10e   :  { %1281 = vst.msk [vmem:[%s3132_s3 + $0xb8] sm:$0xff] %vm1257_vm2, %v734_v42  ;;  %1345 = vst.msk [vmem:[%s3132_s3 + $0x2b8] sm:$0xff] %vm1257_vm2, %v1054_v43  ;;  %v729_v46 = vadd.f32 %v2487_v14, %v728_v44  ;;  %v1049_v47 = vadd.f32 %v2487_v14, %v1048_v45 }
 0x10f   :  { %v1728_v48 = vpop.f32.mrf.mxu0  ;;  %v1824_v49 = vpop.f32.mrf.mxu1 }
 0x110   :  { %1280 = vst.msk [vmem:[%s3132_s3 + $0xb0] sm:$0xff] %vm1257_vm2, %v729_v46  ;;  %1344 = vst.msk [vmem:[%s3132_s3 + $0x2b0] sm:$0xff] %vm1257_vm2, %v1049_v47  ;;  %v744_v50 = vadd.f32 %v1728_v48, %v2487_v14  ;;  %v1064_v51 = vadd.f32 %v1824_v49, %v2487_v14 }
 0x111   :  { %v738_v52 = vpop.f32.mrf.mxu0  ;;  %v1058_v53 = vpop.f32.mrf.mxu1 }
 0x112   :  { %1283 = vst.msk [vmem:[%s3132_s3 + $0xc8] sm:$0xff] %vm1257_vm2, %v744_v50  ;;  %1347 = vst.msk [vmem:[%s3132_s3 + $0x2c8] sm:$0xff] %vm1257_vm2, %v1064_v51  ;;  %v739_v54 = vadd.f32 %v2487_v14, %v738_v52  ;;  %v1059_v55 = vadd.f32 %v2487_v14, %v1058_v53 }
 0x113   :  { %v1731_v56 = vpop.f32.mrf.mxu0  ;;  %v1827_v57 = vpop.f32.mrf.mxu1 }
 0x114   :  { %1282 = vst.msk [vmem:[%s3132_s3 + $0xc0] sm:$0xff] %vm1257_vm2, %v739_v54  ;;  %1346 = vst.msk [vmem:[%s3132_s3 + $0x2c0] sm:$0xff] %vm1257_vm2, %v1059_v55  ;;  %v754_v58 = vadd.f32 %v1731_v56, %v2487_v14  ;;  %v1074_v59 = vadd.f32 %v1827_v57, %v2487_v14 }
 0x115   :  { %v748_v60 = vpop.f32.mrf.mxu0  ;;  %v1068_v61 = vpop.f32.mrf.mxu1 }
 0x116   :  { %1285 = vst.msk [vmem:[%s3132_s3 + $0xd8] sm:$0xff] %vm1257_vm2, %v754_v58  ;;  %1349 = vst.msk [vmem:[%s3132_s3 + $0x2d8] sm:$0xff] %vm1257_vm2, %v1074_v59  ;;  %v749_v62 = vadd.f32 %v2487_v14, %v748_v60  ;;  %v1069_v63 = vadd.f32 %v2487_v14, %v1068_v61 }
 0x117   :  { %v1734_v0 = vpop.f32.mrf.mxu0  ;;  %v1830_v1 = vpop.f32.mrf.mxu1 }
 0x118   :  { %1284 = vst.msk [vmem:[%s3132_s3 + $0xd0] sm:$0xff] %vm1257_vm2, %v749_v62  ;;  %1348 = vst.msk [vmem:[%s3132_s3 + $0x2d0] sm:$0xff] %vm1257_vm2, %v1069_v63  ;;  %v764_v2 = vadd.f32 %v1734_v0, %v2487_v14  ;;  %v1084_v3 = vadd.f32 %v1830_v1, %v2487_v14 }
 0x119   :  { %v758_v4 = vpop.f32.mrf.mxu0  ;;  %v1078_v5 = vpop.f32.mrf.mxu1 }
 0x11a   :  { %1287 = vst.msk [vmem:[%s3132_s3 + $0xe8] sm:$0xff] %vm1257_vm2, %v764_v2  ;;  %1351 = vst.msk [vmem:[%s3132_s3 + $0x2e8] sm:$0xff] %vm1257_vm2, %v1084_v3  ;;  %v759_v6 = vadd.f32 %v2487_v14, %v758_v4  ;;  %v1079_v7 = vadd.f32 %v2487_v14, %v1078_v5 }
 0x11b   :  { %v1737_v8 = vpop.f32.mrf.mxu0  ;;  %v1833_v9 = vpop.f32.mrf.mxu1 }
 0x11c   :  { %1286 = vst.msk [vmem:[%s3132_s3 + $0xe0] sm:$0xff] %vm1257_vm2, %v759_v6  ;;  %1350 = vst.msk [vmem:[%s3132_s3 + $0x2e0] sm:$0xff] %vm1257_vm2, %v1079_v7  ;;  %v774_v10 = vadd.f32 %v1737_v8, %v2487_v14  ;;  %v1094_v11 = vadd.f32 %v1833_v9, %v2487_v14 }
 0x11d   :  { %v768_v12 = vpop.f32.mrf.mxu0  ;;  %v1088_v13 = vpop.f32.mrf.mxu1 }
 0x11e   :  { %1289 = vst.msk [vmem:[%s3132_s3 + $0xf8] sm:$0xff] %vm1257_vm2, %v774_v10  ;;  %1353 = vst.msk [vmem:[%s3132_s3 + $0x2f8] sm:$0xff] %vm1257_vm2, %v1094_v11  ;;  %v769_v15 = vadd.f32 %v2487_v14, %v768_v12  ;;  %v1089_v16 = vadd.f32 %v2487_v14, %v1088_v13 }
 0x11f   :  { %v1740_v17 = vpop.f32.mrf.mxu0  ;;  %v1836_v18 = vpop.f32.mrf.mxu1 }
 0x120   :  { %1288 = vst.msk [vmem:[%s3132_s3 + $0xf0] sm:$0xff] %vm1257_vm2, %v769_v15  ;;  %1352 = vst.msk [vmem:[%s3132_s3 + $0x2f0] sm:$0xff] %vm1257_vm2, %v1089_v16  ;;  %v784_v19 = vadd.f32 %v1740_v17, %v2487_v14  ;;  %v1104_v20 = vadd.f32 %v1836_v18, %v2487_v14 }
 0x121   :  { %v778_v21 = vpop.f32.mrf.mxu0  ;;  %v1098_v22 = vpop.f32.mrf.mxu1 }
 0x122   :  { %1291 = vst.msk [vmem:[%s3132_s3 + $0x108] sm:$0xff] %vm1257_vm2, %v784_v19  ;;  %1355 = vst.msk [vmem:[%s3132_s3 + $0x308] sm:$0xff] %vm1257_vm2, %v1104_v20  ;;  %v779_v23 = vadd.f32 %v2487_v14, %v778_v21  ;;  %v1099_v24 = vadd.f32 %v2487_v14, %v1098_v22 }
 0x123   :  { %v1743_v25 = vpop.f32.mrf.mxu0  ;;  %v1839_v26 = vpop.f32.mrf.mxu1 }
 0x124   :  { %1290 = vst.msk [vmem:[%s3132_s3 + $0x100] sm:$0xff] %vm1257_vm2, %v779_v23  ;;  %1354 = vst.msk [vmem:[%s3132_s3 + $0x300] sm:$0xff] %vm1257_vm2, %v1099_v24  ;;  %v794_v27 = vadd.f32 %v1743_v25, %v2487_v14  ;;  %v1114_v28 = vadd.f32 %v1839_v26, %v2487_v14 }
 0x125   :  { %v788_v29 = vpop.f32.mrf.mxu0  ;;  %v1108_v30 = vpop.f32.mrf.mxu1 }
 0x126   :  { %1293 = vst.msk [vmem:[%s3132_s3 + $0x118] sm:$0xff] %vm1257_vm2, %v794_v27  ;;  %1357 = vst.msk [vmem:[%s3132_s3 + $0x318] sm:$0xff] %vm1257_vm2, %v1114_v28  ;;  %v789_v31 = vadd.f32 %v2487_v14, %v788_v29  ;;  %v1109_v32 = vadd.f32 %v2487_v14, %v1108_v30 }
 0x127   :  { %v1746_v33 = vpop.f32.mrf.mxu0  ;;  %v1842_v34 = vpop.f32.mrf.mxu1 }
 0x128   :  { %1292 = vst.msk [vmem:[%s3132_s3 + $0x110] sm:$0xff] %vm1257_vm2, %v789_v31  ;;  %1356 = vst.msk [vmem:[%s3132_s3 + $0x310] sm:$0xff] %vm1257_vm2, %v1109_v32  ;;  %v804_v35 = vadd.f32 %v1746_v33, %v2487_v14  ;;  %v1124_v36 = vadd.f32 %v1842_v34, %v2487_v14 }
 0x129   :  { %v798_v37 = vpop.f32.mrf.mxu0  ;;  %v1118_v38 = vpop.f32.mrf.mxu1 }
 0x12a   :  { %1295 = vst.msk [vmem:[%s3132_s3 + $0x128] sm:$0xff] %vm1257_vm2, %v804_v35  ;;  %1359 = vst.msk [vmem:[%s3132_s3 + $0x328] sm:$0xff] %vm1257_vm2, %v1124_v36  ;;  %v799_v39 = vadd.f32 %v2487_v14, %v798_v37  ;;  %v1119_v40 = vadd.f32 %v2487_v14, %v1118_v38 }
 0x12b   :  { %v1749_v41 = vpop.f32.mrf.mxu0  ;;  %v1845_v42 = vpop.f32.mrf.mxu1 }
 0x12c   :  { %1294 = vst.msk [vmem:[%s3132_s3 + $0x120] sm:$0xff] %vm1257_vm2, %v799_v39  ;;  %1358 = vst.msk [vmem:[%s3132_s3 + $0x320] sm:$0xff] %vm1257_vm2, %v1119_v40  ;;  %v814_v43 = vadd.f32 %v1749_v41, %v2487_v14  ;;  %v1134_v44 = vadd.f32 %v1845_v42, %v2487_v14 }
 0x12d   :  { %v808_v45 = vpop.f32.mrf.mxu0  ;;  %v1128_v46 = vpop.f32.mrf.mxu1 }
 0x12e   :  { %1297 = vst.msk [vmem:[%s3132_s3 + $0x138] sm:$0xff] %vm1257_vm2, %v814_v43  ;;  %1361 = vst.msk [vmem:[%s3132_s3 + $0x338] sm:$0xff] %vm1257_vm2, %v1134_v44  ;;  %v809_v47 = vadd.f32 %v2487_v14, %v808_v45  ;;  %v1129_v48 = vadd.f32 %v2487_v14, %v1128_v46 }
 0x12f   :  { %v1752_v49 = vpop.f32.mrf.mxu0  ;;  %v1848_v50 = vpop.f32.mrf.mxu1 }
 0x130   :  { %1296 = vst.msk [vmem:[%s3132_s3 + $0x130] sm:$0xff] %vm1257_vm2, %v809_v47  ;;  %1360 = vst.msk [vmem:[%s3132_s3 + $0x330] sm:$0xff] %vm1257_vm2, %v1129_v48  ;;  %v824_v51 = vadd.f32 %v1752_v49, %v2487_v14  ;;  %v1144_v52 = vadd.f32 %v1848_v50, %v2487_v14 }
 0x131   :  { %v818_v53 = vpop.f32.mrf.mxu0  ;;  %v1138_v54 = vpop.f32.mrf.mxu1 }
 0x132   :  { %1299 = vst.msk [vmem:[%s3132_s3 + $0x148] sm:$0xff] %vm1257_vm2, %v824_v51  ;;  %1363 = vst.msk [vmem:[%s3132_s3 + $0x348] sm:$0xff] %vm1257_vm2, %v1144_v52  ;;  %v819_v55 = vadd.f32 %v2487_v14, %v818_v53  ;;  %v1139_v56 = vadd.f32 %v2487_v14, %v1138_v54 }
 0x133   :  { %v1755_v57 = vpop.f32.mrf.mxu0  ;;  %v1851_v58 = vpop.f32.mrf.mxu1 }
 0x134   :  { %1298 = vst.msk [vmem:[%s3132_s3 + $0x140] sm:$0xff] %vm1257_vm2, %v819_v55  ;;  %1362 = vst.msk [vmem:[%s3132_s3 + $0x340] sm:$0xff] %vm1257_vm2, %v1139_v56  ;;  %v834_v59 = vadd.f32 %v1755_v57, %v2487_v14  ;;  %v1154_v60 = vadd.f32 %v1851_v58, %v2487_v14 }
 0x135   :  { %v828_v61 = vpop.f32.mrf.mxu0  ;;  %v1148_v62 = vpop.f32.mrf.mxu1 }
 0x136   :  { %1301 = vst.msk [vmem:[%s3132_s3 + $0x158] sm:$0xff] %vm1257_vm2, %v834_v59  ;;  %1365 = vst.msk [vmem:[%s3132_s3 + $0x358] sm:$0xff] %vm1257_vm2, %v1154_v60  ;;  %v829_v63 = vadd.f32 %v2487_v14, %v828_v61  ;;  %v1149_v0 = vadd.f32 %v2487_v14, %v1148_v62 }
 0x137   :  { %v1758_v1 = vpop.f32.mrf.mxu0  ;;  %v1854_v2 = vpop.f32.mrf.mxu1 }
 0x138   :  { %1300 = vst.msk [vmem:[%s3132_s3 + $0x150] sm:$0xff] %vm1257_vm2, %v829_v63  ;;  %1364 = vst.msk [vmem:[%s3132_s3 + $0x350] sm:$0xff] %vm1257_vm2, %v1149_v0  ;;  %v844_v3 = vadd.f32 %v1758_v1, %v2487_v14  ;;  %v1164_v4 = vadd.f32 %v1854_v2, %v2487_v14 }
 0x139   :  { %v838_v5 = vpop.f32.mrf.mxu0  ;;  %v1158_v6 = vpop.f32.mrf.mxu1 }
 0x13a   :  { %1303 = vst.msk [vmem:[%s3132_s3 + $0x168] sm:$0xff] %vm1257_vm2, %v844_v3  ;;  %1367 = vst.msk [vmem:[%s3132_s3 + $0x368] sm:$0xff] %vm1257_vm2, %v1164_v4  ;;  %v839_v7 = vadd.f32 %v2487_v14, %v838_v5  ;;  %v1159_v8 = vadd.f32 %v2487_v14, %v1158_v6 }
 0x13b   :  { %v1761_v9 = vpop.f32.mrf.mxu0  ;;  %v1857_v10 = vpop.f32.mrf.mxu1 }
 0x13c   :  { %1302 = vst.msk [vmem:[%s3132_s3 + $0x160] sm:$0xff] %vm1257_vm2, %v839_v7  ;;  %1366 = vst.msk [vmem:[%s3132_s3 + $0x360] sm:$0xff] %vm1257_vm2, %v1159_v8  ;;  %v854_v11 = vadd.f32 %v1761_v9, %v2487_v14  ;;  %v1174_v12 = vadd.f32 %v1857_v10, %v2487_v14 }
 0x13d   :  { %v848_v13 = vpop.f32.mrf.mxu0  ;;  %v1168_v15 = vpop.f32.mrf.mxu1 }
 0x13e   :  { %1305 = vst.msk [vmem:[%s3132_s3 + $0x178] sm:$0xff] %vm1257_vm2, %v854_v11  ;;  %1369 = vst.msk [vmem:[%s3132_s3 + $0x378] sm:$0xff] %vm1257_vm2, %v1174_v12  ;;  %v849_v16 = vadd.f32 %v2487_v14, %v848_v13  ;;  %v1169_v17 = vadd.f32 %v2487_v14, %v1168_v15 }
 0x13f   :  { %v1764_v18 = vpop.f32.mrf.mxu0  ;;  %v1860_v19 = vpop.f32.mrf.mxu1 }
 0x140   :  { %1304 = vst.msk [vmem:[%s3132_s3 + $0x170] sm:$0xff] %vm1257_vm2, %v849_v16  ;;  %1368 = vst.msk [vmem:[%s3132_s3 + $0x370] sm:$0xff] %vm1257_vm2, %v1169_v17  ;;  %v864_v20 = vadd.f32 %v1764_v18, %v2487_v14  ;;  %v1184_v21 = vadd.f32 %v1860_v19, %v2487_v14 }
 0x141   :  { %v858_v22 = vpop.f32.mrf.mxu0  ;;  %v1178_v23 = vpop.f32.mrf.mxu1 }
 0x142   :  { %1307 = vst.msk [vmem:[%s3132_s3 + $0x188] sm:$0xff] %vm1257_vm2, %v864_v20  ;;  %1371 = vst.msk [vmem:[%s3132_s3 + $0x388] sm:$0xff] %vm1257_vm2, %v1184_v21  ;;  %v859_v24 = vadd.f32 %v2487_v14, %v858_v22  ;;  %v1179_v25 = vadd.f32 %v2487_v14, %v1178_v23 }
 0x143   :  { %v1767_v26 = vpop.f32.mrf.mxu0  ;;  %v1863_v27 = vpop.f32.mrf.mxu1 }
 0x144   :  { %1306 = vst.msk [vmem:[%s3132_s3 + $0x180] sm:$0xff] %vm1257_vm2, %v859_v24  ;;  %1370 = vst.msk [vmem:[%s3132_s3 + $0x380] sm:$0xff] %vm1257_vm2, %v1179_v25  ;;  %v874_v28 = vadd.f32 %v1767_v26, %v2487_v14  ;;  %v1194_v29 = vadd.f32 %v1863_v27, %v2487_v14 }
 0x145   :  { %v868_v30 = vpop.f32.mrf.mxu0  ;;  %v1188_v31 = vpop.f32.mrf.mxu1 }
 0x146   :  { %1309 = vst.msk [vmem:[%s3132_s3 + $0x198] sm:$0xff] %vm1257_vm2, %v874_v28  ;;  %1373 = vst.msk [vmem:[%s3132_s3 + $0x398] sm:$0xff] %vm1257_vm2, %v1194_v29  ;;  %v869_v32 = vadd.f32 %v2487_v14, %v868_v30  ;;  %v1189_v33 = vadd.f32 %v2487_v14, %v1188_v31 }
 0x147   :  { %v1770_v34 = vpop.f32.mrf.mxu0  ;;  %v1866_v35 = vpop.f32.mrf.mxu1 }
 0x148   :  { %1308 = vst.msk [vmem:[%s3132_s3 + $0x190] sm:$0xff] %vm1257_vm2, %v869_v32  ;;  %1372 = vst.msk [vmem:[%s3132_s3 + $0x390] sm:$0xff] %vm1257_vm2, %v1189_v33  ;;  %v884_v36 = vadd.f32 %v1770_v34, %v2487_v14  ;;  %v1204_v37 = vadd.f32 %v1866_v35, %v2487_v14 }
 0x149   :  { %v878_v38 = vpop.f32.mrf.mxu0  ;;  %v1198_v39 = vpop.f32.mrf.mxu1 }
 0x14a   :  { %1311 = vst.msk [vmem:[%s3132_s3 + $0x1a8] sm:$0xff] %vm1257_vm2, %v884_v36  ;;  %1375 = vst.msk [vmem:[%s3132_s3 + $0x3a8] sm:$0xff] %vm1257_vm2, %v1204_v37  ;;  %v879_v40 = vadd.f32 %v2487_v14, %v878_v38  ;;  %v1199_v41 = vadd.f32 %v2487_v14, %v1198_v39 }
 0x14b   :  { %v1773_v42 = vpop.f32.mrf.mxu0  ;;  %v1869_v43 = vpop.f32.mrf.mxu1 }
 0x14c   :  { %1310 = vst.msk [vmem:[%s3132_s3 + $0x1a0] sm:$0xff] %vm1257_vm2, %v879_v40  ;;  %1374 = vst.msk [vmem:[%s3132_s3 + $0x3a0] sm:$0xff] %vm1257_vm2, %v1199_v41  ;;  %v894_v44 = vadd.f32 %v1773_v42, %v2487_v14  ;;  %v1214_v45 = vadd.f32 %v1869_v43, %v2487_v14 }
 0x14d   :  { %v888_v46 = vpop.f32.mrf.mxu0  ;;  %v1208_v47 = vpop.f32.mrf.mxu1 }
 0x14e   :  { %1313 = vst.msk [vmem:[%s3132_s3 + $0x1b8] sm:$0xff] %vm1257_vm2, %v894_v44  ;;  %1377 = vst.msk [vmem:[%s3132_s3 + $0x3b8] sm:$0xff] %vm1257_vm2, %v1214_v45  ;;  %v889_v48 = vadd.f32 %v2487_v14, %v888_v46  ;;  %v1209_v49 = vadd.f32 %v2487_v14, %v1208_v47 }
 0x14f   :  { %v1776_v50 = vpop.f32.mrf.mxu0  ;;  %v1872_v51 = vpop.f32.mrf.mxu1 }
 0x150   :  { %1312 = vst.msk [vmem:[%s3132_s3 + $0x1b0] sm:$0xff] %vm1257_vm2, %v889_v48  ;;  %1376 = vst.msk [vmem:[%s3132_s3 + $0x3b0] sm:$0xff] %vm1257_vm2, %v1209_v49  ;;  %v904_v52 = vadd.f32 %v1776_v50, %v2487_v14  ;;  %v1224_v53 = vadd.f32 %v1872_v51, %v2487_v14 }
 0x151   :  { %v898_v54 = vpop.f32.mrf.mxu0  ;;  %v1218_v55 = vpop.f32.mrf.mxu1 }
 0x152   :  { %1315 = vst.msk [vmem:[%s3132_s3 + $0x1c8] sm:$0xff] %vm1257_vm2, %v904_v52  ;;  %1379 = vst.msk [vmem:[%s3132_s3 + $0x3c8] sm:$0xff] %vm1257_vm2, %v1224_v53  ;;  %v899_v56 = vadd.f32 %v2487_v14, %v898_v54  ;;  %v1219_v57 = vadd.f32 %v2487_v14, %v1218_v55 }
 0x153   :  { %v1779_v58 = vpop.f32.mrf.mxu0  ;;  %v1875_v59 = vpop.f32.mrf.mxu1 }
 0x154   :  { %1314 = vst.msk [vmem:[%s3132_s3 + $0x1c0] sm:$0xff] %vm1257_vm2, %v899_v56  ;;  %1378 = vst.msk [vmem:[%s3132_s3 + $0x3c0] sm:$0xff] %vm1257_vm2, %v1219_v57  ;;  %v914_v60 = vadd.f32 %v1779_v58, %v2487_v14  ;;  %v1234_v61 = vadd.f32 %v1875_v59, %v2487_v14 }
 0x155   :  { %v908_v62 = vpop.f32.mrf.mxu0  ;;  %v1228_v63 = vpop.f32.mrf.mxu1 }
 0x156   :  { %1317 = vst.msk [vmem:[%s3132_s3 + $0x1d8] sm:$0xff] %vm1257_vm2, %v914_v60  ;;  %1381 = vst.msk [vmem:[%s3132_s3 + $0x3d8] sm:$0xff] %vm1257_vm2, %v1234_v61  ;;  %v909_v0 = vadd.f32 %v2487_v14, %v908_v62  ;;  %v1229_v1 = vadd.f32 %v2487_v14, %v1228_v63 }
 0x157   :  { %v1782_v2 = vpop.f32.mrf.mxu0  ;;  %v1878_v3 = vpop.f32.mrf.mxu1 }
 0x158   :  { %1316 = vst.msk [vmem:[%s3132_s3 + $0x1d0] sm:$0xff] %vm1257_vm2, %v909_v0  ;;  %1380 = vst.msk [vmem:[%s3132_s3 + $0x3d0] sm:$0xff] %vm1257_vm2, %v1229_v1  ;;  %v924_v4 = vadd.f32 %v1782_v2, %v2487_v14  ;;  %v1244_v5 = vadd.f32 %v1878_v3, %v2487_v14 }
 0x159   :  { %v918_v6 = vpop.f32.mrf.mxu0  ;;  %v1238_v7 = vpop.f32.mrf.mxu1 }
 0x15a   :  { %1319 = vst.msk [vmem:[%s3132_s3 + $0x1e8] sm:$0xff] %vm1257_vm2, %v924_v4  ;;  %1383 = vst.msk [vmem:[%s3132_s3 + $0x3e8] sm:$0xff] %vm1257_vm2, %v1244_v5  ;;  %v919_v8 = vadd.f32 %v2487_v14, %v918_v6  ;;  %v1239_v9 = vadd.f32 %v2487_v14, %v1238_v7 }
 0x15b   :  { %v1785_v10 = vpop.f32.mrf.mxu0  ;;  %v1881_v11 = vpop.f32.mrf.mxu1 }
 0x15c   :  { %1318 = vst.msk [vmem:[%s3132_s3 + $0x1e0] sm:$0xff] %vm1257_vm2, %v919_v8  ;;  %1382 = vst.msk [vmem:[%s3132_s3 + $0x3e0] sm:$0xff] %vm1257_vm2, %v1239_v9  ;;  %v934_v12 = vadd.f32 %v1785_v10, %v2487_v14  ;;  %v1254_v13 = vadd.f32 %v1881_v11, %v2487_v14 }
 0x15d   :  { %v928_v15 = vpop.f32.mrf.mxu0  ;;  %v1248_v16 = vpop.f32.mrf.mxu1 }
 0x15e   :  { %1321 = vst.msk [vmem:[%s3132_s3 + $0x1f8] sm:$0xff] %vm1257_vm2, %v934_v12  ;;  %1385 = vst.msk [vmem:[%s3132_s3 + $0x3f8] sm:$0xff] %vm1257_vm2, %v1254_v13  ;;  %v929_v17 = vadd.f32 %v2487_v14, %v928_v15  ;;  %v1249_v18 = vadd.f32 %v2487_v14, %v1248_v16 }
 0x160   :  { %1320 = vst.msk [vmem:[%s3132_s3 + $0x1f0] sm:$0xff] %vm1257_vm2, %v929_v17  ;;  %1384 = vst.msk [vmem:[%s3132_s3 + $0x3f0] sm:$0xff] %vm1257_vm2, %v1249_v18 }

// kernel: tile.42
= control target key start
LH: loop header
LB: loop body
LE: loop exit
PB: predicated region body
PF: predicated region fallthrough
CT: control target
= control target key end

     0   :  { %s22_s0 = inlined_call_operand.vmem [shape: f32[4], index: 0, kind: input, shape index: {}]   ;;  %s23_s1 = inlined_call_operand.vmem [shape: f32[8,4], index: 1, kind: output, shape index: {}]  }
   0x1   :  { %v4_v0 = vld [vmem:[%s22_s0] ss:$0 sm:$0xff] }
   0x2   :  { %5 = vst [vmem:[%s23_s1] sm:$0xff] %v4_v0 }

// kernel: tile.43
= control target key start
LH: loop header
LB: loop body
LE: loop exit
PB: predicated region body
PF: predicated region fallthrough
CT: control target
= control target key end

     0   :  { %s69_s10 = smov 28   ;;  %s70_s11 = smov 20   ;;  %vm3_vm0 = vcmask 31744   ;;  %vm9_vm1 = vcmask 261344   ;;  %vm15_vm2 = vcmask 228544   ;;  %vm21_vm3 = vcmask 195744   ;;  %s113_s0 = inlined_call_operand.vmem [shape: f32[8,4], index: 0, kind: input, shape index: {}]   ;;  %s114_s1 = inlined_call_operand.vmem [shape: f32[1,32], index: 1, kind: output, shape index: {}]  }
   0x1   :  { %v55_v0 = vld [vmem:[%s113_s0 + $0x7] sm:$0x1]   ;;  %v57_v1 = vld [vmem:[%s113_s0 + $0x5] sm:$0x1]   ;;  %v56_v2 = vld [vmem:[%s113_s0 + $0x6] sm:$0x1]  }
   0x2   :  { %7 = vrot.lane.b32.xlu0 %v55_v0, %s69_s10  ;;  %19 = vrot.lane.b32.xlu1 %v57_v1, %s70_s11  ;;  %v58_v3 = vld [vmem:[%s113_s0 + $0x4] sm:$0x1]   ;;  %v2_v4 = vld [vmem:[%s113_s0] sm:$0x1]   ;;  %s71_s18 = smov 24   ;;  %s72_s19 = smov 16  }
   0x3   :  { %4 = vst.msk [vmem:[#allocation0] sm:$0x1] %vm3_vm0, %v2_v4   ;;  %v59_v5 = vld [vmem:[%s113_s0 + $0x3] sm:$0x1]   ;;  %v60_v6 = vld [vmem:[%s113_s0 + $0x2] sm:$0x1]  }
   0x4   :  { %s73_s24 = smov 12   ;;  %s74_s25 = smov 8   ;;  %v61_v7 = vld [vmem:[%s113_s0 + $0x1] sm:$0x1]   ;;  %vm27_vm4 = vcmask 162944   ;;  %vm33_vm5 = vcmask 130144  }
   0x5   :  { %s75_s0 = smov 4   ;;  %vm39_vm6 = vcmask 97344   ;;  %vm45_vm7 = vcmask 64544  }
   0x6   :  { %13 = vrot.lane.b32.xlu0 %v56_v2, %s71_s18  ;;  %25 = vrot.lane.b32.xlu1 %v58_v3, %s72_s19 }
   0xa   :  { %31 = vrot.lane.b32.xlu0 %v59_v5, %s73_s24  ;;  %37 = vrot.lane.b32.xlu1 %v60_v6, %s74_s25 }
   0xe   :  { %43 = vrot.lane.b32.xlu0 %v61_v7, %s75_s0 }
  0x74   :  { %v8_v8 = vpop.permute.xlu0 %7   ;;  %v20_v9 = vpop.permute.xlu1 %19  }
  0x75   :  { %10 = vst.msk [vmem:[#allocation0] sm:$0x1] %vm9_vm1, %v8_v8  }
  0x78   :  { %v14_v10 = vpop.permute.xlu0 %13   ;;  %v26_v11 = vpop.permute.xlu1 %25  }
  0x79   :  { %16 = vst.msk [vmem:[#allocation0] sm:$0x1] %vm15_vm2, %v14_v10  }
  0x7a   :  { %22 = vst.msk [vmem:[#allocation0] sm:$0x1] %vm21_vm3, %v20_v9  }
  0x7b   :  { %28 = vst.msk [vmem:[#allocation0] sm:$0x1] %vm27_vm4, %v26_v11  }
  0x7c   :  { %v32_v12 = vpop.permute.xlu0 %31   ;;  %v38_v13 = vpop.permute.xlu1 %37  }
  0x7d   :  { %34 = vst.msk [vmem:[#allocation0] sm:$0x1] %vm33_vm5, %v32_v12  }
  0x7e   :  { %40 = vst.msk [vmem:[#allocation0] sm:$0x1] %vm39_vm6, %v38_v13  }
  0x80   :  { %v44_v14 = vpop.permute.xlu0 %43  }
  0x81   :  { %46 = vst.msk [vmem:[#allocation0] sm:$0x1] %vm45_vm7, %v44_v14  }
  0x88   :  { %v51_v15 = vld [vmem:[#allocation0] sm:$0x1] }
  0x89   :  { %54 = vst [vmem:[%s114_s1] sm:$0x1] %v51_v15 }

// kernel: oct_up_forward.10
= control target key start
LH: loop header
LB: loop body
LE: loop exit
PB: predicated region body
PF: predicated region fallthrough
CT: control target
= control target key end

     0   :  { %vm87_vm0 = vcmask 1043456   ;;  %vm38_vm1 = vcmask 31744   ;;  %vm236_vm2 = vcmask 261120   ;;  %s474_s1 = inlined_call_operand.vmem [shape: f32[4,32], index: 1, kind: input, shape index: {}]   ;;  %s475_s0 = inlined_call_operand.vmem [shape: f32[128,4], index: 0, kind: input, shape index: {}]   ;;  %s476_s2 = inlined_call_operand.vmem [shape: f32[1,32], index: 2, kind: input, shape index: {}]   ;;  %s477_s3 = inlined_call_operand.vmem [shape: f32[128,32], index: 3, kind: output, shape index: {}]  }
   0x1   :  { %v30_v0 = vld [vmem:[%s474_s1] sm:$0xf]  ;;  %v15_v3 = vld [vmem:[%s475_s0 + $0x8] sm:$0xff]  ;;  %v16_v5 = vld [vmem:[%s475_s0 + $0x10] sm:$0xff] }
   0x2   :  { %v14_v1 = vld [vmem:[%s475_s0] sm:$0xff]  ;;  %292 = vmatprep.subr.msk.mxu0 %vm87_vm0, %v30_v0  ;;  %318 = vmatprep.subr.msk.mxu1 %vm87_vm0, %v30_v0  ;;  %v23_v4 = vld [vmem:[%s475_s0 + $0x48] sm:$0xff]  ;;  %v24_v6 = vld [vmem:[%s475_s0 + $0x50] sm:$0xff] }
   0x3   :  { %v22_v2 = vld [vmem:[%s475_s0 + $0x40] sm:$0xff]  ;;  %293 = vmatpush3.msk.msra.mxu0 %vm87_vm0, %v30_v0  ;;  %319 = vmatpush3.msk.msra.mxu1 %vm87_vm0, %v30_v0  ;;  %v17_v7 = vld [vmem:[%s475_s0 + $0x18] sm:$0xff]  ;;  %v19_v11 = vld [vmem:[%s475_s0 + $0x28] sm:$0xff] }
   0x4   :  { %294 = vmatprep.mubr.msk.f32.mxu0 %vm38_vm1, %v14_v1  ;;  %306 = vmatprep.mubr.msk.f32.mxu1 %vm38_vm1, %v22_v2  ;;  %v25_v8 = vld [vmem:[%s475_s0 + $0x58] sm:$0xff]  ;;  %v18_v9 = vld [vmem:[%s475_s0 + $0x20] sm:$0xff]  ;;  %v27_v12 = vld [vmem:[%s475_s0 + $0x68] sm:$0xff] }
   0x5   :  { %295 = vmatmul.mubr.msk.f32.vlgmr.msra.gmra.mxu0 %vm38_vm1, %v15_v3  ;;  %307 = vmatmul.mubr.msk.f32.vlgmr.msra.gmra.mxu1 %vm38_vm1, %v23_v4  ;;  %v26_v10 = vld [vmem:[%s475_s0 + $0x60] sm:$0xff]  ;;  %v20_v13 = vld [vmem:[%s475_s0 + $0x30] sm:$0xff]  ;;  %v21_v15 = vld [vmem:[%s475_s0 + $0x38] sm:$0xff] }
   0x6   :  { %297 = vmatprep.mubr.msk.f32.mxu0 %vm38_vm1, %v16_v5  ;;  %309 = vmatprep.mubr.msk.f32.mxu1 %vm38_vm1, %v24_v6  ;;  %v28_v14 = vld [vmem:[%s475_s0 + $0x70] sm:$0xff]  ;;  %v29_v16 = vld [vmem:[%s475_s0 + $0x78] sm:$0xff]  ;;  %v257_v17 = vld [vmem:[%s476_s2] ss:$0 sm:$0xff] }
   0x9   :  { %298 = vmatmul.mubr.msk.f32.gmra.mxu0 %vm38_vm1, %v17_v7  ;;  %310 = vmatmul.mubr.msk.f32.gmra.mxu1 %vm38_vm1, %v25_v8 }
   0xa   :  { %300 = vmatprep.mubr.msk.f32.mxu0 %vm38_vm1, %v18_v9  ;;  %312 = vmatprep.mubr.msk.f32.mxu1 %vm38_vm1, %v26_v10 }
   0xd   :  { %301 = vmatmul.mubr.msk.f32.gmra.mxu0 %vm38_vm1, %v19_v11  ;;  %313 = vmatmul.mubr.msk.f32.gmra.mxu1 %vm38_vm1, %v27_v12 }
   0xe   :  { %303 = vmatprep.mubr.msk.f32.mxu0 %vm38_vm1, %v20_v13  ;;  %315 = vmatprep.mubr.msk.f32.mxu1 %vm38_vm1, %v28_v14 }
  0x11   :  { %304 = vmatmul.mubr.msk.f32.gmra.mxu0 %vm38_vm1, %v21_v15  ;;  %316 = vmatmul.mubr.msk.f32.gmra.mxu1 %vm38_vm1, %v29_v16 }
  0xc5   :  { %v296_v18 = vpop.f32.mrf.mxu0  ;;  %v308_v19 = vpop.f32.mrf.mxu1 }
  0xc6   :  { %v163_v20 = vadd.f32 %v296_v18, %v257_v17  ;;  %v203_v21 = vadd.f32 %v308_v19, %v257_v17 }
  0xc7   :  { %v157_v22 = vpop.f32.mrf.mxu0  ;;  %v197_v23 = vpop.f32.mrf.mxu1 }
  0xc8   :  { %238 = vst.msk [vmem:[%s477_s3 + $0x8] sm:$0xff] %vm236_vm2, %v163_v20  ;;  %246 = vst.msk [vmem:[%s477_s3 + $0x48] sm:$0xff] %vm236_vm2, %v203_v21  ;;  %v158_v24 = vadd.f32 %v257_v17, %v157_v22  ;;  %v198_v25 = vadd.f32 %v257_v17, %v197_v23 }
  0xc9   :  { %v299_v26 = vpop.f32.mrf.mxu0  ;;  %v311_v27 = vpop.f32.mrf.mxu1 }
  0xca   :  { %237 = vst.msk [vmem:[%s477_s3] sm:$0xff] %vm236_vm2, %v158_v24  ;;  %245 = vst.msk [vmem:[%s477_s3 + $0x40] sm:$0xff] %vm236_vm2, %v198_v25  ;;  %v173_v28 = vadd.f32 %v299_v26, %v257_v17  ;;  %v213_v29 = vadd.f32 %v311_v27, %v257_v17 }
  0xcb   :  { %v167_v30 = vpop.f32.mrf.mxu0  ;;  %v207_v31 = vpop.f32.mrf.mxu1 }
  0xcc   :  { %240 = vst.msk [vmem:[%s477_s3 + $0x18] sm:$0xff] %vm236_vm2, %v173_v28  ;;  %248 = vst.msk [vmem:[%s477_s3 + $0x58] sm:$0xff] %vm236_vm2, %v213_v29  ;;  %v168_v32 = vadd.f32 %v257_v17, %v167_v30  ;;  %v208_v33 = vadd.f32 %v257_v17, %v207_v31 }
  0xcd   :  { %v302_v34 = vpop.f32.mrf.mxu0  ;;  %v314_v35 = vpop.f32.mrf.mxu1 }
  0xce   :  { %239 = vst.msk [vmem:[%s477_s3 + $0x10] sm:$0xff] %vm236_vm2, %v168_v32  ;;  %247 = vst.msk [vmem:[%s477_s3 + $0x50] sm:$0xff] %vm236_vm2, %v208_v33  ;;  %v183_v36 = vadd.f32 %v302_v34, %v257_v17  ;;  %v223_v37 = vadd.f32 %v314_v35, %v257_v17 }
  0xcf   :  { %v177_v38 = vpop.f32.mrf.mxu0  ;;  %v217_v39 = vpop.f32.mrf.mxu1 }
  0xd0   :  { %242 = vst.msk [vmem:[%s477_s3 + $0x28] sm:$0xff] %vm236_vm2, %v183_v36  ;;  %250 = vst.msk [vmem:[%s477_s3 + $0x68] sm:$0xff] %vm236_vm2, %v223_v37  ;;  %v178_v40 = vadd.f32 %v257_v17, %v177_v38  ;;  %v218_v41 = vadd.f32 %v257_v17, %v217_v39 }
  0xd1   :  { %v305_v42 = vpop.f32.mrf.mxu0  ;;  %v317_v43 = vpop.f32.mrf.mxu1 }
  0xd2   :  { %241 = vst.msk [vmem:[%s477_s3 + $0x20] sm:$0xff] %vm236_vm2, %v178_v40  ;;  %249 = vst.msk [vmem:[%s477_s3 + $0x60] sm:$0xff] %vm236_vm2, %v218_v41  ;;  %v193_v44 = vadd.f32 %v305_v42, %v257_v17  ;;  %v233_v45 = vadd.f32 %v317_v43, %v257_v17 }
  0xd3   :  { %v187_v46 = vpop.f32.mrf.mxu0  ;;  %v227_v47 = vpop.f32.mrf.mxu1 }
  0xd4   :  { %244 = vst.msk [vmem:[%s477_s3 + $0x38] sm:$0xff] %vm236_vm2, %v193_v44  ;;  %252 = vst.msk [vmem:[%s477_s3 + $0x78] sm:$0xff] %vm236_vm2, %v233_v45  ;;  %v188_v48 = vadd.f32 %v257_v17, %v187_v46  ;;  %v228_v49 = vadd.f32 %v257_v17, %v227_v47 }
  0xd6   :  { %243 = vst.msk [vmem:[%s477_s3 + $0x30] sm:$0xff] %vm236_vm2, %v188_v48  ;;  %251 = vst.msk [vmem:[%s477_s3 + $0x70] sm:$0xff] %vm236_vm2, %v228_v49 }

// kernel: oct_up_forward.14
= control target key start
LH: loop header
LB: loop body
LE: loop exit
PB: predicated region body
PF: predicated region fallthrough
CT: control target
= control target key end

     0   :  { %s96_s0 = inlined_call_operand.vmem [shape: f32[32,128], index: 0, kind: input, shape index: {}]   ;;  %s97_s1 = inlined_call_operand.vmem [shape: f32[32,128], index: 1, kind: input, shape index: {}]   ;;  %s98_s2 = inlined_call_operand.vmem [shape: f32[2,128], index: 2, kind: output, shape index: {}]  }
   0x1   :  { %v11_v0 = vld [vmem:[%s96_s0] sm:$0xff]  ;;  %v12_v1 = vld [vmem:[%s96_s0 + $0x8] sm:$0xff]  ;;  %v13_v2 = vld [vmem:[%s96_s0 + $0x10] sm:$0xff] }
   0x2   :  { %v14_v3 = vld [vmem:[%s96_s0 + $0x18] sm:$0xff]  ;;  %v15_v4 = vld [vmem:[%s97_s1] sm:$0xff]  ;;  %v16_v5 = vld [vmem:[%s97_s1 + $0x8] sm:$0xff] }
   0x3   :  { %v17_v6 = vld [vmem:[%s97_s1 + $0x10] sm:$0xff]  ;;  %v18_v7 = vld [vmem:[%s97_s1 + $0x18] sm:$0xff]  ;;  %v19_v8 = vadd.f32 %v15_v4, %v11_v0  ;;  %v20_v9 = vadd.f32 %v16_v5, %v12_v1 }
   0x4   :  { %v21_v10 = vadd.f32 %v17_v6, %v13_v2  ;;  %v22_v11 = vadd.f32 %v18_v7, %v14_v3 }
   0x5   :  { %v23_v12 = vadd.f32 %v20_v9, %v19_v8  ;;  %v33_v13 = vmul.f32 %v19_v8, %v19_v8  ;;  %v34_v14 = vmul.f32 %v20_v9, %v20_v9 }
   0x6   :  { %v35_v15 = vmul.f32 %v21_v10, %v21_v10  ;;  %v36_v17 = vmul.f32 %v22_v11, %v22_v11 }
   0x7   :  { %v24_v16 = vadd.f32 %v23_v12, %v21_v10  ;;  %v37_v18 = vadd.f32 %v34_v14, %v33_v13 }
   0x9   :  { %v25_v19 = vadd.f32 %v24_v16, %v22_v11  ;;  %v38_v20 = vadd.f32 %v37_v18, %v35_v15 }
   0xb   :  { %v26_v21 = vrot.slane %v25_v19, 4  ;;  %v39_v22 = vadd.f32 %v38_v20, %v36_v17 }
   0xd   :  { %v27_v23 = vadd.f32 %v26_v21, %v25_v19  ;;  %v40_v24 = vrot.slane %v39_v22, 4 }
   0xf   :  { %v28_v25 = vrot.slane %v27_v23, 2  ;;  %v41_v26 = vadd.f32 %v40_v24, %v39_v22 }
  0x11   :  { %v29_v27 = vadd.f32 %v28_v25, %v27_v23  ;;  %v42_v28 = vrot.slane %v41_v26, 2 }
  0x13   :  { %v30_v29 = vrot.slane %v29_v27, 1  ;;  %v43_v30 = vadd.f32 %v42_v28, %v41_v26 }
  0x15   :  { %v31_v31 = vadd.f32 %v30_v29, %v29_v27  ;;  %v44_v32 = vrot.slane %v43_v30, 1 }
  0x17   :  { %32 = vst [vmem:[%s98_s2] sm:$0x1] %v31_v31  ;;  %v45_v33 = vadd.f32 %v44_v32, %v43_v30 }
  0x19   :  { %46 = vst [vmem:[%s98_s2 + $0x1] sm:$0x1] %v45_v33 }

// kernel: tile.57
= control target key start
LH: loop header
LB: loop body
LE: loop exit
PB: predicated region body
PF: predicated region fallthrough
CT: control target
= control target key end

     0   :  { %s40_s0 = inlined_call_operand.vmem [shape: f32[4], index: 0, kind: input, shape index: {}]   ;;  %s41_s1 = inlined_call_operand.vmem [shape: f32[32,4], index: 1, kind: output, shape index: {}]  }
   0x1   :  { %v4_v0 = vld [vmem:[%s40_s0] ss:$0 sm:$0xff] }
   0x2   :  { %5 = vst [vmem:[%s41_s1] sm:$0xff] %v4_v0  ;;  %12 = vst [vmem:[%s41_s1 + $0x8] sm:$0xff] %v4_v0 }
   0x3   :  { %13 = vst [vmem:[%s41_s1 + $0x10] sm:$0xff] %v4_v0  ;;  %14 = vst [vmem:[%s41_s1 + $0x18] sm:$0xff] %v4_v0 }

// kernel: tile.58
= control target key start
LH: loop header
LB: loop body
LE: loop exit
PB: predicated region body
PF: predicated region fallthrough
CT: control target
= control target key end

     0   :  { %s261_s10 = smov 124   ;;  %s262_s11 = smov 116   ;;  %vm3_vm0 = vcmask 31744   ;;  %vm9_vm1 = vcmask 1048544   ;;  %vm15_vm2 = vcmask 1015744   ;;  %vm21_vm3 = vcmask 982944   ;;  %s401_s0 = inlined_call_operand.vmem [shape: f32[32,4], index: 0, kind: input, shape index: {}]   ;;  %s402_s1 = inlined_call_operand.vmem [shape: f32[1,128], index: 1, kind: output, shape index: {}]  }
   0x1   :  { %v199_v0 = vld [vmem:[%s401_s0 + $0x1f] sm:$0x1]   ;;  %v201_v1 = vld [vmem:[%s401_s0 + $0x1d] sm:$0x1]   ;;  %v200_v2 = vld [vmem:[%s401_s0 + $0x1e] sm:$0x1]  }
   0x2   :  { %7 = vrot.lane.b32.xlu0 %v199_v0, %s261_s10  ;;  %19 = vrot.lane.b32.xlu1 %v201_v1, %s262_s11  ;;  %v202_v3 = vld [vmem:[%s401_s0 + $0x1c] sm:$0x1]   ;;  %s263_s16 = smov 120   ;;  %s264_s17 = smov 112   ;;  %v203_v4 = vld [vmem:[%s401_s0 + $0x1b] sm:$0x1]  }
   0x3   :  { %v204_v5 = vld [vmem:[%s401_s0 + $0x1a] sm:$0x1]   ;;  %s265_s22 = smov 108   ;;  %s266_s23 = smov 104   ;;  %v205_v6 = vld [vmem:[%s401_s0 + $0x19] sm:$0x1]  }
   0x4   :  { %v206_v7 = vld [vmem:[%s401_s0 + $0x18] sm:$0x1]   ;;  %s267_s28 = smov 100   ;;  %s268_s29 = smov 96   ;;  %v207_v8 = vld [vmem:[%s401_s0 + $0x17] sm:$0x1]  }
   0x5   :  { %v208_v9 = vld [vmem:[%s401_s0 + $0x16] sm:$0x1]   ;;  %v2_v10 = vld [vmem:[%s401_s0] sm:$0x1]   ;;  %s269_s7 = smov 92   ;;  %s270_s8 = smov 88  }
   0x6   :  { %13 = vrot.lane.b32.xlu0 %v200_v2, %s263_s16  ;;  %25 = vrot.lane.b32.xlu1 %v202_v3, %s264_s17  ;;  %4 = vst.msk [vmem:[#allocation0] sm:$0x1] %vm3_vm0, %v2_v10   ;;  %v209_v11 = vld [vmem:[%s401_s0 + $0x15] sm:$0x1]   ;;  %v210_v12 = vld [vmem:[%s401_s0 + $0x14] sm:$0x1]  }
   0x7   :  { %s271_s13 = smov 84   ;;  %s272_s14 = smov 80   ;;  %v211_v13 = vld [vmem:[%s401_s0 + $0x13] sm:$0x1]   ;;  %v212_v14 = vld [vmem:[%s401_s0 + $0x12] sm:$0x1]  }
   0x8   :  { %s273_s19 = smov 76   ;;  %s274_s20 = smov 72   ;;  %v213_v15 = vld [vmem:[%s401_s0 + $0x11] sm:$0x1]   ;;  %v214_v16 = vld [vmem:[%s401_s0 + $0x10] sm:$0x1]  }
   0x9   :  { %s275_s25 = smov 68   ;;  %s276_s26 = smov 64   ;;  %v215_v17 = vld [vmem:[%s401_s0 + $0xf] sm:$0x1]   ;;  %v216_v18 = vld [vmem:[%s401_s0 + $0xe] sm:$0x1]  }
   0xa   :  { %31 = vrot.lane.b32.xlu0 %v203_v4, %s265_s22  ;;  %37 = vrot.lane.b32.xlu1 %v204_v5, %s266_s23  ;;  %s277_s2 = smov 60   ;;  %s278_s3 = smov 56   ;;  %v217_v19 = vld [vmem:[%s401_s0 + $0xd] sm:$0x1]   ;;  %v218_v20 = vld [vmem:[%s401_s0 + $0xc] sm:$0x1]  }
   0xb   :  { %s280_s9 = smov 48   ;;  %v219_v21 = vld [vmem:[%s401_s0 + $0xb] sm:$0x1]   ;;  %v220_v22 = vld [vmem:[%s401_s0 + $0xa] sm:$0x1]   ;;  %s282_s15 = smov 40  }
   0xc   :  { %v221_v23 = vld [vmem:[%s401_s0 + $0x9] sm:$0x1]   ;;  %v222_v24 = vld [vmem:[%s401_s0 + $0x8] sm:$0x1]   ;;  %s284_s21 = smov 32   ;;  %s286_s27 = smov 24  }
   0xd   :  { %v223_v25 = vld [vmem:[%s401_s0 + $0x7] sm:$0x1]   ;;  %v224_v26 = vld [vmem:[%s401_s0 + $0x6] sm:$0x1]   ;;  %v225_v27 = vld [vmem:[%s401_s0 + $0x5] sm:$0x1]  }
   0xe   :  { %43 = vrot.lane.b32.xlu0 %v205_v6, %s267_s28  ;;  %49 = vrot.lane.b32.xlu1 %v206_v7, %s268_s29  ;;  %v226_v28 = vld [vmem:[%s401_s0 + $0x4] sm:$0x1]   ;;  %s288_s4 = smov 16   ;;  %v227_v29 = vld [vmem:[%s401_s0 + $0x3] sm:$0x1]   ;;  %s290_s10 = smov 8  }
   0xf   :  { %v228_v30 = vld [vmem:[%s401_s0 + $0x2] sm:$0x1]   ;;  %v229_v31 = vld [vmem:[%s401_s0 + $0x1] sm:$0x1]   ;;  %s291_s0 = smov 4   ;;  %vm27_vm4 = vcmask 950144  }
  0x10   :  { %vm33_vm5 = vcmask 917344   ;;  %vm39_vm6 = vcmask 884544   ;;  %vm45_vm7 = vcmask 851744   ;;  %vm51_vm8 = vcmask 818944  }
  0x11   :  { %vm57_vm9 = vcmask 786144   ;;  %vm63_vm10 = vcmask 753344   ;;  %vm69_vm11 = vcmask 720544   ;;  %vm75_vm12 = vcmask 687744  }
  0x12   :  { %55 = vrot.lane.b32.xlu0 %v207_v8, %s269_s7  ;;  %61 = vrot.lane.b32.xlu1 %v208_v9, %s270_s8  ;;  %s279_s8 = smov 52   ;;  %vm81_vm13 = vcmask 654944   ;;  %vm87_vm14 = vcmask 622144   ;;  %vm93_vm15 = vcmask 589344   ;;  %vm99_vm0 = vcmask 556544  }
  0x16   :  { %67 = vrot.lane.b32.xlu0 %v209_v11, %s271_s13  ;;  %73 = vrot.lane.b32.xlu1 %v210_v12, %s272_s14  ;;  %s281_s14 = smov 44  }
  0x1a   :  { %79 = vrot.lane.b32.xlu0 %v211_v13, %s273_s19  ;;  %85 = vrot.lane.b32.xlu1 %v212_v14, %s274_s20  ;;  %s283_s20 = smov 36  }
  0x1e   :  { %91 = vrot.lane.b32.xlu0 %v213_v15, %s275_s25  ;;  %97 = vrot.lane.b32.xlu1 %v214_v16, %s276_s26  ;;  %s285_s26 = smov 28  }
  0x22   :  { %103 = vrot.lane.b32.xlu0 %v215_v17, %s277_s2  ;;  %109 = vrot.lane.b32.xlu1 %v216_v18, %s278_s3  ;;  %s287_s3 = smov 20  }
  0x26   :  { %115 = vrot.lane.b32.xlu0 %v217_v19, %s279_s8  ;;  %121 = vrot.lane.b32.xlu1 %v218_v20, %s280_s9  ;;  %s289_s9 = smov 12  }
  0x2a   :  { %127 = vrot.lane.b32.xlu0 %v219_v21, %s281_s14  ;;  %133 = vrot.lane.b32.xlu1 %v220_v22, %s282_s15 }
  0x2e   :  { %139 = vrot.lane.b32.xlu0 %v221_v23, %s283_s20  ;;  %145 = vrot.lane.b32.xlu1 %v222_v24, %s284_s21 }
  0x32   :  { %151 = vrot.lane.b32.xlu0 %v223_v25, %s285_s26  ;;  %157 = vrot.lane.b32.xlu1 %v224_v26, %s286_s27 }
  0x36   :  { %163 = vrot.lane.b32.xlu0 %v225_v27, %s287_s3  ;;  %169 = vrot.lane.b32.xlu1 %v226_v28, %s288_s4 }
  0x3a   :  { %175 = vrot.lane.b32.xlu0 %v227_v29, %s289_s9  ;;  %181 = vrot.lane.b32.xlu1 %v228_v30, %s290_s10 }
  0x3e   :  { %187 = vrot.lane.b32.xlu0 %v229_v31, %s291_s0 }
  0x74   :  { %v8_v32 = vpop.permute.xlu0 %7   ;;  %v20_v33 = vpop.permute.xlu1 %19  }
  0x75   :  { %10 = vst.msk [vmem:[#allocation0] sm:$0x1] %vm9_vm1, %v8_v32   ;;  %vm105_vm1 = vcmask 523744  }
  0x78   :  { %v14_v34 = vpop.permute.xlu0 %13   ;;  %v26_v35 = vpop.permute.xlu1 %25  }
  0x79   :  { %16 = vst.msk [vmem:[#allocation0] sm:$0x1] %vm15_vm2, %v14_v34   ;;  %vm111_vm2 = vcmask 490944  }
  0x7a   :  { %22 = vst.msk [vmem:[#allocation0] sm:$0x1] %vm21_vm3, %v20_v33   ;;  %vm117_vm3 = vcmask 458144  }
  0x7b   :  { %28 = vst.msk [vmem:[#allocation0] sm:$0x1] %vm27_vm4, %v26_v35   ;;  %vm123_vm4 = vcmask 425344  }
  0x7c   :  { %v32_v36 = vpop.permute.xlu0 %31   ;;  %v38_v37 = vpop.permute.xlu1 %37  }
  0x7d   :  { %34 = vst.msk [vmem:[#allocation0] sm:$0x1] %vm33_vm5, %v32_v36   ;;  %vm129_vm5 = vcmask 392544  }
  0x7e   :  { %40 = vst.msk [vmem:[#allocation0] sm:$0x1] %vm39_vm6, %v38_v37   ;;  %vm135_vm6 = vcmask 359744  }
  0x80   :  { %v44_v38 = vpop.permute.xlu0 %43   ;;  %v50_v39 = vpop.permute.xlu1 %49  }
  0x81   :  { %46 = vst.msk [vmem:[#allocation0] sm:$0x1] %vm45_vm7, %v44_v38   ;;  %vm141_vm7 = vcmask 326944  }
  0x82   :  { %52 = vst.msk [vmem:[#allocation0] sm:$0x1] %vm51_vm8, %v50_v39   ;;  %vm147_vm8 = vcmask 294144  }
  0x84   :  { %v56_v40 = vpop.permute.xlu0 %55   ;;  %v62_v41 = vpop.permute.xlu1 %61  }
  0x85   :  { %58 = vst.msk [vmem:[#allocation0] sm:$0x1] %vm57_vm9, %v56_v40   ;;  %vm153_vm9 = vcmask 261344  }
  0x86   :  { %64 = vst.msk [vmem:[#allocation0] sm:$0x1] %vm63_vm10, %v62_v41   ;;  %vm159_vm10 = vcmask 228544  }
  0x88   :  { %v68_v42 = vpop.permute.xlu0 %67   ;;  %v74_v43 = vpop.permute.xlu1 %73  }
  0x89   :  { %70 = vst.msk [vmem:[#allocation0] sm:$0x1] %vm69_vm11, %v68_v42   ;;  %vm165_vm11 = vcmask 195744  }
  0x8a   :  { %76 = vst.msk [vmem:[#allocation0] sm:$0x1] %vm75_vm12, %v74_v43   ;;  %vm171_vm12 = vcmask 162944  }
  0x8c   :  { %v80_v44 = vpop.permute.xlu0 %79   ;;  %v86_v45 = vpop.permute.xlu1 %85  }
  0x8d   :  { %82 = vst.msk [vmem:[#allocation0] sm:$0x1] %vm81_vm13, %v80_v44   ;;  %vm177_vm13 = vcmask 130144  }
  0x8e   :  { %88 = vst.msk [vmem:[#allocation0] sm:$0x1] %vm87_vm14, %v86_v45   ;;  %vm183_vm14 = vcmask 97344  }
  0x90   :  { %v92_v46 = vpop.permute.xlu0 %91   ;;  %v98_v47 = vpop.permute.xlu1 %97  }
  0x91   :  { %94 = vst.msk [vmem:[#allocation0] sm:$0x1] %vm93_vm15, %v92_v46   ;;  %vm189_vm15 = vcmask 64544  }
  0x92   :  { %100 = vst.msk [vmem:[#allocation0] sm:$0x1] %vm99_vm0, %v98_v47  }
  0x94   :  { %v104_v48 = vpop.permute.xlu0 %103   ;;  %v110_v49 = vpop.permute.xlu1 %109  }
  0x95   :  { %106 = vst.msk [vmem:[#allocation0] sm:$0x1] %vm105_vm1, %v104_v48  }
  0x96   :  { %112 = vst.msk [vmem:[#allocation0] sm:$0x1] %vm111_vm2, %v110_v49  }
  0x98   :  { %v116_v50 = vpop.permute.xlu0 %115   ;;  %v122_v51 = vpop.permute.xlu1 %121  }
  0x99   :  { %118 = vst.msk [vmem:[#allocation0] sm:$0x1] %vm117_vm3, %v116_v50  }
  0x9a   :  { %124 = vst.msk [vmem:[#allocation0] sm:$0x1] %vm123_vm4, %v122_v51  }
  0x9c   :  { %v128_v52 = vpop.permute.xlu0 %127   ;;  %v134_v53 = vpop.permute.xlu1 %133  }
  0x9d   :  { %130 = vst.msk [vmem:[#allocation0] sm:$0x1] %vm129_vm5, %v128_v52  }
  0x9e   :  { %136 = vst.msk [vmem:[#allocation0] sm:$0x1] %vm135_vm6, %v134_v53  }
  0xa0   :  { %v140_v54 = vpop.permute.xlu0 %139   ;;  %v146_v55 = vpop.permute.xlu1 %145  }
  0xa1   :  { %142 = vst.msk [vmem:[#allocation0] sm:$0x1] %vm141_vm7, %v140_v54  }
  0xa2   :  { %148 = vst.msk [vmem:[#allocation0] sm:$0x1] %vm147_vm8, %v146_v55  }
  0xa4   :  { %v152_v56 = vpop.permute.xlu0 %151   ;;  %v158_v57 = vpop.permute.xlu1 %157  }
  0xa5   :  { %154 = vst.msk [vmem:[#allocation0] sm:$0x1] %vm153_vm9, %v152_v56  }
  0xa6   :  { %160 = vst.msk [vmem:[#allocation0] sm:$0x1] %vm159_vm10, %v158_v57  }
  0xa8   :  { %v164_v58 = vpop.permute.xlu0 %163   ;;  %v170_v59 = vpop.permute.xlu1 %169  }
  0xa9   :  { %166 = vst.msk [vmem:[#allocation0] sm:$0x1] %vm165_vm11, %v164_v58  }
  0xaa   :  { %172 = vst.msk [vmem:[#allocation0] sm:$0x1] %vm171_vm12, %v170_v59  }
  0xac   :  { %v176_v60 = vpop.permute.xlu0 %175   ;;  %v182_v61 = vpop.permute.xlu1 %181  }
  0xad   :  { %178 = vst.msk [vmem:[#allocation0] sm:$0x1] %vm177_vm13, %v176_v60  }
  0xae   :  { %184 = vst.msk [vmem:[#allocation0] sm:$0x1] %vm183_vm14, %v182_v61  }
  0xb0   :  { %v188_v62 = vpop.permute.xlu0 %187  }
  0xb1   :  { %190 = vst.msk [vmem:[#allocation0] sm:$0x1] %vm189_vm15, %v188_v62  }
  0xb8   :  { %v195_v63 = vld [vmem:[#allocation0] sm:$0x1] }
  0xb9   :  { %198 = vst [vmem:[%s402_s1] sm:$0x1] %v195_v63 }

// kernel: oct_up_forward.15
= control target key start
LH: loop header
LB: loop body
LE: loop exit
PB: predicated region body
PF: predicated region fallthrough
CT: control target
= control target key end

     0   :  { %s132_s0 = inlined_call_operand.vmem [shape: f32[32,128], index: 0, kind: input, shape index: {}]   ;;  %s133_s1 = inlined_call_operand.vmem [shape: f32[32,128], index: 1, kind: input, shape index: {}]   ;;  %s134_s2 = inlined_call_operand.vmem [shape: f32[1,128], index: 2, kind: input, shape index: {}]   ;;  %s135_s3 = inlined_call_operand.vmem [shape: f32[1,128], index: 3, kind: input, shape index: {}]   ;;  %s136_s4 = inlined_call_operand.vmem [shape: f32[32,128], index: 4, kind: output, shape index: {}]  }
   0x1   :  { %v17_v0 = vld [vmem:[%s132_s0] sm:$0xff]  ;;  %v18_v5 = vld [vmem:[%s132_s0 + $0x8] sm:$0xff]  ;;  %v19_v8 = vld [vmem:[%s132_s0 + $0x10] sm:$0xff] }
   0x2   :  { %v21_v1 = vld [vmem:[%s133_s1] sm:$0xff]  ;;  %v22_v6 = vld [vmem:[%s133_s1 + $0x8] sm:$0xff]  ;;  %v23_v9 = vld [vmem:[%s133_s1 + $0x10] sm:$0xff] }
   0x3   :  { %v63_v2 = vld [vmem:[%s134_s2] ss:$0 sm:$0xff]  ;;  %v25_v3 = vadd.f32 %v21_v1, %v17_v0  ;;  %v26_v7 = vadd.f32 %v22_v6, %v18_v5  ;;  %v20_v10 = vld [vmem:[%s132_s0 + $0x18] sm:$0xff]  ;;  %v27_v12 = vadd.f32 %v23_v9, %v19_v8 }
   0x4   :  { %v64_v4 = vld [vmem:[%s135_s3] ss:$0 sm:$0xff]  ;;  %v24_v13 = vld [vmem:[%s133_s1 + $0x18] sm:$0xff] }
   0x5   :  { %v36_v11 = vmul.f32 %v63_v2, %v25_v3  ;;  %v37_v14 = vmul.f32 %v63_v2, %v26_v7  ;;  %v28_v15 = vadd.f32 %v24_v13, %v20_v10  ;;  %v38_v17 = vmul.f32 %v63_v2, %v27_v12 }
   0x7   :  { %v47_v16 = vadd.f32 %v64_v4, %v36_v11  ;;  %v48_v18 = vadd.f32 %v64_v4, %v37_v14  ;;  %v39_v19 = vmul.f32 %v63_v2, %v28_v15  ;;  %v49_v21 = vadd.f32 %v64_v4, %v38_v17 }
   0x9   :  { %v51_v20 = vmax.f32 %v47_v16, 0.0  ;;  %v52_v22 = vmax.f32 %v48_v18, 0.0  ;;  %v50_v23 = vadd.f32 %v64_v4, %v39_v19  ;;  %v53_v24 = vmax.f32 %v49_v21, 0.0 }
   0xb   :  { %55 = vst [vmem:[%s136_s4] sm:$0xff] %v51_v20  ;;  %56 = vst [vmem:[%s136_s4 + $0x8] sm:$0xff] %v52_v22  ;;  %v54_v25 = vmax.f32 %v50_v23, 0.0 }
   0xc   :  { %57 = vst [vmem:[%s136_s4 + $0x10] sm:$0xff] %v53_v24 }
   0xd   :  { %58 = vst [vmem:[%s136_s4 + $0x18] sm:$0xff] %v54_v25 }

// kernel: tile.38
= control target key start
LH: loop header
LB: loop body
LE: loop exit
PB: predicated region body
PF: predicated region fallthrough
CT: control target
= control target key end

     0   :  { %s64_s0 = inlined_call_operand.vmem [shape: f32[4], index: 0, kind: input, shape index: {}]   ;;  %s65_s1 = inlined_call_operand.vmem [shape: f32[64,4], index: 1, kind: output, shape index: {}]  }
   0x1   :  { %v4_v0 = vld [vmem:[%s64_s0] ss:$0 sm:$0xff] }
   0x2   :  { %5 = vst [vmem:[%s65_s1] sm:$0xff] %v4_v0  ;;  %20 = vst [vmem:[%s65_s1 + $0x8] sm:$0xff] %v4_v0 }
   0x3   :  { %21 = vst [vmem:[%s65_s1 + $0x10] sm:$0xff] %v4_v0  ;;  %22 = vst [vmem:[%s65_s1 + $0x18] sm:$0xff] %v4_v0 }
   0x4   :  { %23 = vst [vmem:[%s65_s1 + $0x20] sm:$0xff] %v4_v0  ;;  %24 = vst [vmem:[%s65_s1 + $0x28] sm:$0xff] %v4_v0 }
   0x5   :  { %25 = vst [vmem:[%s65_s1 + $0x30] sm:$0xff] %v4_v0  ;;  %26 = vst [vmem:[%s65_s1 + $0x38] sm:$0xff] %v4_v0 }

// kernel: tile.39
= control target key start
LH: loop header
LB: loop body
LE: loop exit
PB: predicated region body
PF: predicated region fallthrough
CT: control target
= control target key end

     0   :  { %vm5_vm0 = vcmask 1041409   ;;  %s428_s14 = smov 124   ;;  %s429_s21 = smov 116   ;;  %vm7_vm1 = vcmask 31744   ;;  %vm17_vm2 = vcmask 1048544   ;;  %vm27_vm3 = vcmask 1015744   ;;  %s699_s0 = inlined_call_operand.vmem [shape: f32[64,4], index: 0, kind: input, shape index: {}]   ;;  %s700_s1 = inlined_call_operand.vmem [shape: f32[1,256], index: 1, kind: output, shape index: {}]  }
   0x1   :  { %v334_v0 = vld [vmem:[%s699_s0 + $0x1f] sm:$0x1]   ;;  %v338_v3 = vld [vmem:[%s699_s0 + $0x1d] sm:$0x1]   ;;  %v336_v6 = vld [vmem:[%s699_s0 + $0x1e] sm:$0x1]  }
   0x2   :  { %v335_v1 = vld [vmem:[%s699_s0 + $0x3e] sm:$0x2]   ;;  %v339_v4 = vld [vmem:[%s699_s0 + $0x3c] sm:$0x2]   ;;  %v337_v7 = vld [vmem:[%s699_s0 + $0x3d] sm:$0x2]  }
   0x3   :  { %v14_v2 = vsel %vm5_vm0, %v335_v1, %v334_v0  ;;  %v34_v5 = vsel %vm5_vm0, %v339_v4, %v338_v3  ;;  %v340_v8 = vld [vmem:[%s699_s0 + $0x1c] sm:$0x1]   ;;  %v24_v9 = vsel %vm5_vm0, %v337_v7, %v336_v6  ;;  %v342_v12 = vld [vmem:[%s699_s0 + $0x1b] sm:$0x1]   ;;  %v344_v14 = vld [vmem:[%s699_s0 + $0x1a] sm:$0x1]  }
   0x4   :  { %15 = vrot.lane.b32.xlu0 %v14_v2, %s428_s14  ;;  %35 = vrot.lane.b32.xlu1 %v34_v5, %s429_s21  ;;  %v341_v10 = vld [vmem:[%s699_s0 + $0x3b] sm:$0x2]   ;;  %v343_v13 = vld [vmem:[%s699_s0 + $0x3a] sm:$0x2]   ;;  %s430_s3 = smov 120   ;;  %s431_s4 = smov 112  }
   0x5   :  { %v44_v11 = vsel %vm5_vm0, %v341_v10, %v340_v8  ;;  %v345_v15 = vld [vmem:[%s699_s0 + $0x39] sm:$0x2]   ;;  %v54_v16 = vsel %vm5_vm0, %v343_v13, %v342_v12  ;;  %v346_v18 = vld [vmem:[%s699_s0 + $0x19] sm:$0x1]   ;;  %v348_v20 = vld [vmem:[%s699_s0 + $0x18] sm:$0x1]  }
   0x6   :  { %v64_v17 = vsel %vm5_vm0, %v345_v15, %v344_v14  ;;  %v347_v19 = vld [vmem:[%s699_s0 + $0x38] sm:$0x2]   ;;  %v349_v21 = vld [vmem:[%s699_s0 + $0x37] sm:$0x2]   ;;  %s432_s13 = smov 108   ;;  %s433_s14 = smov 104  }
   0x7   :  { %v74_v22 = vsel %vm5_vm0, %v347_v19, %v346_v18  ;;  %v84_v23 = vsel %vm5_vm0, %v349_v21, %v348_v20  ;;  %v350_v24 = vld [vmem:[%s699_s0 + $0x17] sm:$0x1]   ;;  %v352_v26 = vld [vmem:[%s699_s0 + $0x16] sm:$0x1]   ;;  %s434_s23 = smov 100   ;;  %s435_s24 = smov 96  }
   0x8   :  { %25 = vrot.lane.b32.xlu0 %v24_v9, %s430_s3  ;;  %45 = vrot.lane.b32.xlu1 %v44_v11, %s431_s4  ;;  %v351_v25 = vld [vmem:[%s699_s0 + $0x36] sm:$0x2]   ;;  %v353_v27 = vld [vmem:[%s699_s0 + $0x35] sm:$0x2]   ;;  %s436_s4 = smov 92   ;;  %s437_s5 = smov 88  }
   0x9   :  { %v94_v28 = vsel %vm5_vm0, %v351_v25, %v350_v24  ;;  %v104_v29 = vsel %vm5_vm0, %v353_v27, %v352_v26  ;;  %v354_v30 = vld [vmem:[%s699_s0 + $0x15] sm:$0x1]   ;;  %v356_v32 = vld [vmem:[%s699_s0 + $0x14] sm:$0x1]   ;;  %v358_v36 = vld [vmem:[%s699_s0 + $0x13] sm:$0x1]  }
   0xa   :  { %v355_v31 = vld [vmem:[%s699_s0 + $0x34] sm:$0x2]   ;;  %v357_v33 = vld [vmem:[%s699_s0 + $0x33] sm:$0x2]   ;;  %v359_v37 = vld [vmem:[%s699_s0 + $0x32] sm:$0x2]  }
   0xb   :  { %v114_v34 = vsel %vm5_vm0, %v355_v31, %v354_v30  ;;  %v124_v35 = vsel %vm5_vm0, %v357_v33, %v356_v32  ;;  %v360_v38 = vld [vmem:[%s699_s0 + $0x12] sm:$0x1]   ;;  %s439_s15 = smov 80   ;;  %v134_v40 = vsel %vm5_vm0, %v359_v37, %v358_v36  ;;  %v362_v42 = vld [vmem:[%s699_s0 + $0x11] sm:$0x1]   ;;  %s441_s29 = smov 72  }
   0xc   :  { %55 = vrot.lane.b32.xlu0 %v54_v16, %s432_s13  ;;  %65 = vrot.lane.b32.xlu1 %v64_v17, %s433_s14  ;;  %v361_v39 = vld [vmem:[%s699_s0 + $0x31] sm:$0x2]   ;;  %s438_s14 = smov 84   ;;  %v363_v43 = vld [vmem:[%s699_s0 + $0x30] sm:$0x2]   ;;  %s442_s9 = smov 68  }
   0xd   :  { %v144_v41 = vsel %vm5_vm0, %v361_v39, %v360_v38  ;;  %v364_v44 = vld [vmem:[%s699_s0 + $0x10] sm:$0x1]   ;;  %v2_v46 = vld [vmem:[%s699_s0] sm:$0x1]   ;;  %v154_v48 = vsel %vm5_vm0, %v363_v43, %v362_v42  ;;  %v366_v51 = vld [vmem:[%s699_s0 + $0xf] sm:$0x1]  }
   0xe   :  { %v365_v45 = vld [vmem:[%s699_s0 + $0x2f] sm:$0x2]   ;;  %v333_v47 = vld [vmem:[%s699_s0 + $0x1f] sm:$0x2]   ;;  %v367_v52 = vld [vmem:[%s699_s0 + $0x2e] sm:$0x2]  }
   0xf   :  { %v6_v49 = vsel %vm5_vm0, %v333_v47, %v2_v46  ;;  %v164_v50 = vsel %vm5_vm0, %v365_v45, %v364_v44  ;;  %v368_v53 = vld [vmem:[%s699_s0 + $0xe] sm:$0x1]   ;;  %s443_s10 = smov 64   ;;  %v174_v55 = vsel %vm5_vm0, %v367_v52, %v366_v51  ;;  %v370_v57 = vld [vmem:[%s699_s0 + $0xd] sm:$0x1]   ;;  %s444_s19 = smov 60  }
  0x10   :  { %75 = vrot.lane.b32.xlu0 %v74_v22, %s434_s23  ;;  %85 = vrot.lane.b32.xlu1 %v84_v23, %s435_s24  ;;  %s440_s24 = smov 76   ;;  %8 = vst.msk [vmem:[#allocation0] ss:$8 sm:$0x3] %vm7_vm1, %v6_v49   ;;  %v369_v54 = vld [vmem:[%s699_s0 + $0x2d] sm:$0x2]  }
  0x11   :  { %v184_v56 = vsel %vm5_vm0, %v369_v54, %v368_v53  ;;  %v371_v58 = vld [vmem:[%s699_s0 + $0x2c] sm:$0x2]   ;;  %v372_v59 = vld [vmem:[%s699_s0 + $0xc] sm:$0x1]   ;;  %s445_s20 = smov 56   ;;  %s447_s30 = smov 48  }
  0x12   :  { %v373_v60 = vld [vmem:[%s699_s0 + $0x2b] sm:$0x2]   ;;  %v194_v61 = vsel %vm5_vm0, %v371_v58, %v370_v57  ;;  %v374_v63 = vld [vmem:[%s699_s0 + $0xb] sm:$0x1]   ;;  %v376_v1 = vld [vmem:[%s699_s0 + $0xa] sm:$0x1]  }
  0x13   :  { %v204_v62 = vsel %vm5_vm0, %v373_v60, %v372_v59  ;;  %v375_v0 = vld [vmem:[%s699_s0 + $0x2a] sm:$0x2]   ;;  %v377_v2 = vld [vmem:[%s699_s0 + $0x29] sm:$0x2]   ;;  %v378_v5 = vld [vmem:[%s699_s0 + $0x9] sm:$0x1]  }
  0x14   :  { %95 = vrot.lane.b32.xlu0 %v94_v28, %s436_s4  ;;  %105 = vrot.lane.b32.xlu1 %v104_v29, %s437_s5  ;;  %v214_v3 = vsel %vm5_vm0, %v375_v0, %v374_v63  ;;  %v224_v4 = vsel %vm5_vm0, %v377_v2, %v376_v1  ;;  %v379_v6 = vld [vmem:[%s699_s0 + $0x28] sm:$0x2]   ;;  %v380_v7 = vld [vmem:[%s699_s0 + $0x8] sm:$0x1]   ;;  %s449_s11 = smov 40   ;;  %s451_s21 = smov 32  }
  0x15   :  { %v381_v8 = vld [vmem:[%s699_s0 + $0x27] sm:$0x2]   ;;  %v234_v9 = vsel %vm5_vm0, %v379_v6, %v378_v5  ;;  %v382_v11 = vld [vmem:[%s699_s0 + $0x7] sm:$0x1]   ;;  %v384_v13 = vld [vmem:[%s699_s0 + $0x6] sm:$0x1]  }
  0x16   :  { %v244_v10 = vsel %vm5_vm0, %v381_v8, %v380_v7  ;;  %v383_v12 = vld [vmem:[%s699_s0 + $0x26] sm:$0x2]   ;;  %v385_v14 = vld [vmem:[%s699_s0 + $0x25] sm:$0x2]   ;;  %v386_v17 = vld [vmem:[%s699_s0 + $0x5] sm:$0x1]  }
  0x17   :  { %v254_v15 = vsel %vm5_vm0, %v383_v12, %v382_v11  ;;  %v264_v16 = vsel %vm5_vm0, %v385_v14, %v384_v13  ;;  %v387_v18 = vld [vmem:[%s699_s0 + $0x24] sm:$0x2]   ;;  %v388_v19 = vld [vmem:[%s699_s0 + $0x4] sm:$0x1]   ;;  %s453_s2 = smov 24   ;;  %s455_s12 = smov 16  }
  0x18   :  { %115 = vrot.lane.b32.xlu0 %v114_v34, %s438_s14  ;;  %125 = vrot.lane.b32.xlu1 %v124_v35, %s439_s15  ;;  %v389_v20 = vld [vmem:[%s699_s0 + $0x23] sm:$0x2]   ;;  %v274_v21 = vsel %vm5_vm0, %v387_v18, %v386_v17  ;;  %v390_v23 = vld [vmem:[%s699_s0 + $0x3] sm:$0x1]   ;;  %s457_s17 = smov 8   ;;  %s458_s18 = smov 4  }
  0x19   :  { %v284_v22 = vsel %vm5_vm0, %v389_v20, %v388_v19  ;;  %v391_v24 = vld [vmem:[%s699_s0 + $0x22] sm:$0x2]   ;;  %v392_v25 = vld [vmem:[%s699_s0 + $0x2] sm:$0x1]   ;;  %v394_v29 = vld [vmem:[%s699_s0 + $0x1] sm:$0x1]  }
  0x1a   :  { %v393_v26 = vld [vmem:[%s699_s0 + $0x21] sm:$0x2]   ;;  %v294_v27 = vsel %vm5_vm0, %v391_v24, %v390_v23  ;;  %v395_v30 = vld [vmem:[%s699_s0 + $0x20] sm:$0x2]   ;;  %s456_s0 = smov 12   ;;  %vm37_vm4 = vcmask 982944  }
  0x1b   :  { %v304_v28 = vsel %vm5_vm0, %v393_v26, %v392_v25  ;;  %v314_v31 = vsel %vm5_vm0, %v395_v30, %v394_v29  ;;  %vm47_vm5 = vcmask 950144   ;;  %vm57_vm6 = vcmask 917344  }
  0x1c   :  { %135 = vrot.lane.b32.xlu0 %v134_v40, %s440_s24  ;;  %145 = vrot.lane.b32.xlu1 %v144_v41, %s441_s29  ;;  %s446_s29 = smov 52   ;;  %vm67_vm7 = vcmask 884544   ;;  %vm77_vm8 = vcmask 851744   ;;  %vm87_vm9 = vcmask 818944   ;;  %vm97_vm10 = vcmask 786144  }
  0x1d   :  { %vm107_vm11 = vcmask 753344   ;;  %vm117_vm12 = vcmask 720544   ;;  %vm127_vm13 = vcmask 687744   ;;  %vm137_vm14 = vcmask 654944  }
  0x1e   :  { %vm147_vm15 = vcmask 622144   ;;  %vm157_vm0 = vcmask 589344   ;;  %vm167_vm1 = vcmask 556544  }
  0x20   :  { %155 = vrot.lane.b32.xlu0 %v154_v48, %s442_s9  ;;  %165 = vrot.lane.b32.xlu1 %v164_v50, %s443_s10  ;;  %s448_s10 = smov 44  }
  0x24   :  { %175 = vrot.lane.b32.xlu0 %v174_v55, %s444_s19  ;;  %185 = vrot.lane.b32.xlu1 %v184_v56, %s445_s20  ;;  %s450_s20 = smov 36  }
  0x28   :  { %195 = vrot.lane.b32.xlu0 %v194_v61, %s446_s29  ;;  %205 = vrot.lane.b32.xlu1 %v204_v62, %s447_s30  ;;  %s452_s30 = smov 28  }
  0x2c   :  { %215 = vrot.lane.b32.xlu0 %v214_v3, %s448_s10  ;;  %225 = vrot.lane.b32.xlu1 %v224_v4, %s449_s11  ;;  %s454_s11 = smov 20  }
  0x30   :  { %235 = vrot.lane.b32.xlu0 %v234_v9, %s450_s20  ;;  %245 = vrot.lane.b32.xlu1 %v244_v10, %s451_s21 }
  0x34   :  { %255 = vrot.lane.b32.xlu0 %v254_v15, %s452_s30  ;;  %265 = vrot.lane.b32.xlu1 %v264_v16, %s453_s2 }
  0x38   :  { %275 = vrot.lane.b32.xlu0 %v274_v21, %s454_s11  ;;  %285 = vrot.lane.b32.xlu1 %v284_v22, %s455_s12 }
  0x3c   :  { %295 = vrot.lane.b32.xlu0 %v294_v27, %s456_s0  ;;  %305 = vrot.lane.b32.xlu1 %v304_v28, %s457_s17 }
  0x40   :  { %315 = vrot.lane.b32.xlu0 %v314_v31, %s458_s18 }
  0x76   :  { %v16_v32 = vpop.permute.xlu0 %15   ;;  %v36_v33 = vpop.permute.xlu1 %35  }
  0x77   :  { %18 = vst.msk [vmem:[#allocation0] ss:$8 sm:$0x3] %vm17_vm2, %v16_v32   ;;  %vm177_vm2 = vcmask 523744  }
  0x7a   :  { %v26_v34 = vpop.permute.xlu0 %25   ;;  %v46_v35 = vpop.permute.xlu1 %45  }
  0x7b   :  { %28 = vst.msk [vmem:[#allocation0] ss:$8 sm:$0x3] %vm27_vm3, %v26_v34   ;;  %vm187_vm3 = vcmask 490944  }
  0x7c   :  { %38 = vst.msk [vmem:[#allocation0] ss:$8 sm:$0x3] %vm37_vm4, %v36_v33   ;;  %vm197_vm4 = vcmask 458144  }
  0x7d   :  { %48 = vst.msk [vmem:[#allocation0] ss:$8 sm:$0x3] %vm47_vm5, %v46_v35   ;;  %vm207_vm5 = vcmask 425344  }
  0x7e   :  { %v56_v36 = vpop.permute.xlu0 %55   ;;  %v66_v37 = vpop.permute.xlu1 %65  }
  0x7f   :  { %58 = vst.msk [vmem:[#allocation0] ss:$8 sm:$0x3] %vm57_vm6, %v56_v36   ;;  %vm217_vm6 = vcmask 392544  }
  0x80   :  { %68 = vst.msk [vmem:[#allocation0] ss:$8 sm:$0x3] %vm67_vm7, %v66_v37   ;;  %vm227_vm7 = vcmask 359744  }
  0x82   :  { %v76_v38 = vpop.permute.xlu0 %75   ;;  %v86_v39 = vpop.permute.xlu1 %85  }
  0x83   :  { %78 = vst.msk [vmem:[#allocation0] ss:$8 sm:$0x3] %vm77_vm8, %v76_v38   ;;  %vm237_vm8 = vcmask 326944  }
  0x84   :  { %88 = vst.msk [vmem:[#allocation0] ss:$8 sm:$0x3] %vm87_vm9, %v86_v39   ;;  %vm247_vm9 = vcmask 294144  }
  0x86   :  { %v96_v40 = vpop.permute.xlu0 %95   ;;  %v106_v41 = vpop.permute.xlu1 %105  }
  0x87   :  { %98 = vst.msk [vmem:[#allocation0] ss:$8 sm:$0x3] %vm97_vm10, %v96_v40   ;;  %vm257_vm10 = vcmask 261344  }
  0x88   :  { %108 = vst.msk [vmem:[#allocation0] ss:$8 sm:$0x3] %vm107_vm11, %v106_v41   ;;  %vm267_vm11 = vcmask 228544  }
  0x8a   :  { %v116_v42 = vpop.permute.xlu0 %115   ;;  %v126_v43 = vpop.permute.xlu1 %125  }
  0x8b   :  { %118 = vst.msk [vmem:[#allocation0] ss:$8 sm:$0x3] %vm117_vm12, %v116_v42   ;;  %vm277_vm12 = vcmask 195744  }
  0x8c   :  { %128 = vst.msk [vmem:[#allocation0] ss:$8 sm:$0x3] %vm127_vm13, %v126_v43   ;;  %vm287_vm13 = vcmask 162944  }
  0x8e   :  { %v136_v44 = vpop.permute.xlu0 %135   ;;  %v146_v45 = vpop.permute.xlu1 %145  }
  0x8f   :  { %138 = vst.msk [vmem:[#allocation0] ss:$8 sm:$0x3] %vm137_vm14, %v136_v44   ;;  %vm297_vm14 = vcmask 130144  }
  0x90   :  { %148 = vst.msk [vmem:[#allocation0] ss:$8 sm:$0x3] %vm147_vm15, %v146_v45   ;;  %vm307_vm15 = vcmask 97344  }
  0x92   :  { %v156_v46 = vpop.permute.xlu0 %155   ;;  %v166_v47 = vpop.permute.xlu1 %165  }
  0x93   :  { %158 = vst.msk [vmem:[#allocation0] ss:$8 sm:$0x3] %vm157_vm0, %v156_v46   ;;  %vm317_vm0 = vcmask 64544  }
  0x94   :  { %168 = vst.msk [vmem:[#allocation0] ss:$8 sm:$0x3] %vm167_vm1, %v166_v47  }
  0x96   :  { %v176_v48 = vpop.permute.xlu0 %175   ;;  %v186_v49 = vpop.permute.xlu1 %185  }
  0x97   :  { %178 = vst.msk [vmem:[#allocation0] ss:$8 sm:$0x3] %vm177_vm2, %v176_v48  }
  0x98   :  { %188 = vst.msk [vmem:[#allocation0] ss:$8 sm:$0x3] %vm187_vm3, %v186_v49  }
  0x9a   :  { %v196_v50 = vpop.permute.xlu0 %195   ;;  %v206_v51 = vpop.permute.xlu1 %205  }
  0x9b   :  { %198 = vst.msk [vmem:[#allocation0] ss:$8 sm:$0x3] %vm197_vm4, %v196_v50  }
  0x9c   :  { %208 = vst.msk [vmem:[#allocation0] ss:$8 sm:$0x3] %vm207_vm5, %v206_v51  }
  0x9e   :  { %v216_v52 = vpop.permute.xlu0 %215   ;;  %v226_v53 = vpop.permute.xlu1 %225  }
  0x9f   :  { %218 = vst.msk [vmem:[#allocation0] ss:$8 sm:$0x3] %vm217_vm6, %v216_v52  }
  0xa0   :  { %228 = vst.msk [vmem:[#allocation0] ss:$8 sm:$0x3] %vm227_vm7, %v226_v53  }
  0xa2   :  { %v236_v54 = vpop.permute.xlu0 %235   ;;  %v246_v55 = vpop.permute.xlu1 %245  }
  0xa3   :  { %238 = vst.msk [vmem:[#allocation0] ss:$8 sm:$0x3] %vm237_vm8, %v236_v54  }
  0xa4   :  { %248 = vst.msk [vmem:[#allocation0] ss:$8 sm:$0x3] %vm247_vm9, %v246_v55  }
  0xa6   :  { %v256_v56 = vpop.permute.xlu0 %255   ;;  %v266_v57 = vpop.permute.xlu1 %265  }
  0xa7   :  { %258 = vst.msk [vmem:[#allocation0] ss:$8 sm:$0x3] %vm257_vm10, %v256_v56  }
  0xa8   :  { %268 = vst.msk [vmem:[#allocation0] ss:$8 sm:$0x3] %vm267_vm11, %v266_v57  }
  0xaa   :  { %v276_v58 = vpop.permute.xlu0 %275   ;;  %v286_v59 = vpop.permute.xlu1 %285  }
  0xab   :  { %278 = vst.msk [vmem:[#allocation0] ss:$8 sm:$0x3] %vm277_vm12, %v276_v58  }
  0xac   :  { %288 = vst.msk [vmem:[#allocation0] ss:$8 sm:$0x3] %vm287_vm13, %v286_v59  }
  0xae   :  { %v296_v60 = vpop.permute.xlu0 %295   ;;  %v306_v61 = vpop.permute.xlu1 %305  }
  0xaf   :  { %298 = vst.msk [vmem:[#allocation0] ss:$8 sm:$0x3] %vm297_vm14, %v296_v60  }
  0xb0   :  { %308 = vst.msk [vmem:[#allocation0] ss:$8 sm:$0x3] %vm307_vm15, %v306_v61  }
  0xb2   :  { %v316_v62 = vpop.permute.xlu0 %315  }
  0xb3   :  { %318 = vst.msk [vmem:[#allocation0] ss:$8 sm:$0x3] %vm317_vm0, %v316_v62  }
  0xba   :  { %v323_v63 = vld [vmem:[#allocation0] sm:$0x1]  ;;  %v328_v0 = vld [vmem:[#allocation0 + $0x8] sm:$0x1] }
  0xbb   :  { %326 = vst [vmem:[%s700_s1] sm:$0x1] %v323_v63  ;;  %396 = vst [vmem:[%s700_s1 + $0x1] sm:$0x1] %v328_v0 }

// kernel: oct_up_forward.9
= control target key start
LH: loop header
LB: loop body
LE: loop exit
PB: predicated region body
PF: predicated region fallthrough
CT: control target
= control target key end

     0   :  { %vm94_vm0 = vcmask 1043456   ;;  %v318_v1 = vmov 0.0   ;;  %vm45_vm1 = vcmask 31744   ;;  %v33_v19 = vlaneseq  ;;  %s541_s1 = inlined_call_operand.vmem [shape: f32[4,256], index: 1, kind: input, shape index: {}]   ;;  %s542_s0 = inlined_call_operand.vmem [shape: f32[128,4], index: 0, kind: input, shape index: {}]   ;;  %s543_s2 = inlined_call_operand.vmem [shape: f32[1,256], index: 2, kind: input, shape index: {}]   ;;  %s544_s3 = inlined_call_operand.vmem [shape: f32[128,256], index: 3, kind: output, shape index: {}]  }
   0x1   :  { %v30_v0 = vld [vmem:[%s541_s1] sm:$0xff]  ;;  %163 = vmatprep.mubr.f32.mxu0 %v318_v1  ;;  %211 = vmatprep.mubr.f32.mxu1 %v318_v1  ;;  %v15_v5 = vld [vmem:[%s542_s0 + $0x8] sm:$0xff]  ;;  %v16_v7 = vld [vmem:[%s542_s0 + $0x10] sm:$0xff] }
   0x2   :  { %v44_v2 = vcombine.high %v30_v0, %v30_v0  ;;  %v14_v3 = vld [vmem:[%s542_s0] sm:$0xff]  ;;  %v23_v6 = vld [vmem:[%s542_s0 + $0x48] sm:$0xff]  ;;  %v24_v8 = vld [vmem:[%s542_s0 + $0x50] sm:$0xff]  ;;  %v34_v20 = vshrl.u32 %v33_v19, 7 }
   0x3   :  { %v22_v4 = vld [vmem:[%s542_s0 + $0x40] sm:$0xff]  ;;  %v17_v9 = vld [vmem:[%s542_s0 + $0x18] sm:$0xff]  ;;  %v19_v13 = vld [vmem:[%s542_s0 + $0x28] sm:$0xff] }
   0x4   :  { %296 = vmatprep.subr.msk.mxu0 %vm94_vm0, %v44_v2  ;;  %314 = vmatprep.subr.msk.mxu1 %vm94_vm0, %v44_v2  ;;  %v25_v10 = vld [vmem:[%s542_s0 + $0x58] sm:$0xff]  ;;  %v18_v11 = vld [vmem:[%s542_s0 + $0x20] sm:$0xff]  ;;  %v27_v14 = vld [vmem:[%s542_s0 + $0x68] sm:$0xff]  ;;  %v35_v21 = vsub.s32 0, %v34_v20  ;;  %v39_v23 = vsub.s32 1, %v34_v20 }
   0x5   :  { %297 = vmatpush1.msk.msra.mxu0 %vm94_vm0, %v30_v0  ;;  %315 = vmatpush1.msk.msra.mxu1 %vm94_vm0, %v30_v0  ;;  %v26_v12 = vld [vmem:[%s542_s0 + $0x60] sm:$0xff]  ;;  %v20_v15 = vld [vmem:[%s542_s0 + $0x30] sm:$0xff]  ;;  %v21_v17 = vld [vmem:[%s542_s0 + $0x38] sm:$0xff] }
   0x6   :  { %298 = vmatmul.mubr.msk.f32.vlgmr.msra.gmra.mxu0 %vm45_vm1, %v14_v3  ;;  %306 = vmatmul.mubr.msk.f32.vlgmr.msra.gmra.mxu1 %vm45_vm1, %v22_v4  ;;  %v28_v16 = vld [vmem:[%s542_s0 + $0x70] sm:$0xff]  ;;  %v29_v18 = vld [vmem:[%s542_s0 + $0x78] sm:$0xff]  ;;  %v31_v22 = vld [vmem:[%s543_s2] sm:$0x3] }
   0x7   :  { %169 = vmatprep.mubr.f32.mxu0 %v318_v1  ;;  %217 = vmatprep.mubr.f32.mxu1 %v318_v1  ;;  %v409_v24 = vrot.slane %v31_v22, %v35_v21  ;;  %v411_v25 = vrot.slane %v31_v22, %v39_v23 }
   0xa   :  { %299 = vmatmul.mubr.msk.f32.gmra.mxu0 %vm45_vm1, %v15_v5  ;;  %307 = vmatmul.mubr.msk.f32.gmra.mxu1 %vm45_vm1, %v23_v6 }
   0xb   :  { %175 = vmatprep.mubr.f32.mxu0 %v318_v1  ;;  %223 = vmatprep.mubr.f32.mxu1 %v318_v1 }
   0xe   :  { %300 = vmatmul.mubr.msk.f32.gmra.mxu0 %vm45_vm1, %v16_v7  ;;  %308 = vmatmul.mubr.msk.f32.gmra.mxu1 %vm45_vm1, %v24_v8 }
   0xf   :  { %181 = vmatprep.mubr.f32.mxu0 %v318_v1  ;;  %229 = vmatprep.mubr.f32.mxu1 %v318_v1 }
  0x12   :  { %301 = vmatmul.mubr.msk.f32.gmra.mxu0 %vm45_vm1, %v17_v9  ;;  %309 = vmatmul.mubr.msk.f32.gmra.mxu1 %vm45_vm1, %v25_v10 }
  0x13   :  { %187 = vmatprep.mubr.f32.mxu0 %v318_v1  ;;  %235 = vmatprep.mubr.f32.mxu1 %v318_v1 }
  0x16   :  { %302 = vmatmul.mubr.msk.f32.gmra.mxu0 %vm45_vm1, %v18_v11  ;;  %310 = vmatmul.mubr.msk.f32.gmra.mxu1 %vm45_vm1, %v26_v12 }
  0x17   :  { %193 = vmatprep.mubr.f32.mxu0 %v318_v1  ;;  %241 = vmatprep.mubr.f32.mxu1 %v318_v1 }
  0x1a   :  { %303 = vmatmul.mubr.msk.f32.gmra.mxu0 %vm45_vm1, %v19_v13  ;;  %311 = vmatmul.mubr.msk.f32.gmra.mxu1 %vm45_vm1, %v27_v14 }
  0x1b   :  { %199 = vmatprep.mubr.f32.mxu0 %v318_v1  ;;  %247 = vmatprep.mubr.f32.mxu1 %v318_v1 }
  0x1e   :  { %304 = vmatmul.mubr.msk.f32.gmra.mxu0 %vm45_vm1, %v20_v15  ;;  %312 = vmatmul.mubr.msk.f32.gmra.mxu1 %vm45_vm1, %v28_v16 }
  0x1f   :  { %205 = vmatprep.mubr.f32.mxu0 %v318_v1  ;;  %253 = vmatprep.mubr.f32.mxu1 %v318_v1 }
  0x22   :  { %305 = vmatmul.mubr.msk.f32.gmra.mxu0 %vm45_vm1, %v21_v17  ;;  %313 = vmatmul.mubr.msk.f32.gmra.mxu1 %vm45_vm1, %v29_v18 }
  0xc6   :  { %v165_v26 = vpop.f32.mrf.mxu0  ;;  %v213_v27 = vpop.f32.mrf.mxu1 }
  0xc7   :  { %v166_v28 = vadd.f32 %v165_v26, %v409_v24  ;;  %v214_v29 = vadd.f32 %v213_v27, %v409_v24 }
  0xc8   :  { %v167_v30 = vpop.f32.mrf.mxu0  ;;  %v215_v31 = vpop.f32.mrf.mxu1 }
  0xc9   :  { %260 = vst [vmem:[%s544_s3] sm:$0xff] %v166_v28  ;;  %276 = vst [vmem:[%s544_s3 + $0x80] sm:$0xff] %v214_v29  ;;  %v168_v32 = vadd.f32 %v167_v30, %v411_v25  ;;  %v216_v33 = vadd.f32 %v215_v31, %v411_v25 }
  0xca   :  { %v171_v34 = vpop.f32.mrf.mxu0  ;;  %v219_v35 = vpop.f32.mrf.mxu1 }
  0xcb   :  { %261 = vst [vmem:[%s544_s3 + $0x8] sm:$0xff] %v168_v32  ;;  %277 = vst [vmem:[%s544_s3 + $0x88] sm:$0xff] %v216_v33  ;;  %v172_v36 = vadd.f32 %v171_v34, %v409_v24  ;;  %v220_v37 = vadd.f32 %v219_v35, %v409_v24 }
  0xcc   :  { %v173_v38 = vpop.f32.mrf.mxu0  ;;  %v221_v39 = vpop.f32.mrf.mxu1 }
  0xcd   :  { %262 = vst [vmem:[%s544_s3 + $0x10] sm:$0xff] %v172_v36  ;;  %278 = vst [vmem:[%s544_s3 + $0x90] sm:$0xff] %v220_v37  ;;  %v174_v40 = vadd.f32 %v173_v38, %v411_v25  ;;  %v222_v41 = vadd.f32 %v221_v39, %v411_v25 }
  0xce   :  { %v177_v42 = vpop.f32.mrf.mxu0  ;;  %v225_v43 = vpop.f32.mrf.mxu1 }
  0xcf   :  { %263 = vst [vmem:[%s544_s3 + $0x18] sm:$0xff] %v174_v40  ;;  %279 = vst [vmem:[%s544_s3 + $0x98] sm:$0xff] %v222_v41  ;;  %v178_v44 = vadd.f32 %v177_v42, %v409_v24  ;;  %v226_v45 = vadd.f32 %v225_v43, %v409_v24 }
  0xd0   :  { %v179_v46 = vpop.f32.mrf.mxu0  ;;  %v227_v47 = vpop.f32.mrf.mxu1 }
  0xd1   :  { %264 = vst [vmem:[%s544_s3 + $0x20] sm:$0xff] %v178_v44  ;;  %280 = vst [vmem:[%s544_s3 + $0xa0] sm:$0xff] %v226_v45  ;;  %v180_v48 = vadd.f32 %v179_v46, %v411_v25  ;;  %v228_v49 = vadd.f32 %v227_v47, %v411_v25 }
  0xd2   :  { %v183_v50 = vpop.f32.mrf.mxu0  ;;  %v231_v51 = vpop.f32.mrf.mxu1 }
  0xd3   :  { %265 = vst [vmem:[%s544_s3 + $0x28] sm:$0xff] %v180_v48  ;;  %281 = vst [vmem:[%s544_s3 + $0xa8] sm:$0xff] %v228_v49  ;;  %v184_v52 = vadd.f32 %v183_v50, %v409_v24  ;;  %v232_v53 = vadd.f32 %v231_v51, %v409_v24 }
  0xd4   :  { %v185_v54 = vpop.f32.mrf.mxu0  ;;  %v233_v55 = vpop.f32.mrf.mxu1 }
  0xd5   :  { %266 = vst [vmem:[%s544_s3 + $0x30] sm:$0xff] %v184_v52  ;;  %282 = vst [vmem:[%s544_s3 + $0xb0] sm:$0xff] %v232_v53  ;;  %v186_v56 = vadd.f32 %v185_v54, %v411_v25  ;;  %v234_v57 = vadd.f32 %v233_v55, %v411_v25 }
  0xd6   :  { %v189_v58 = vpop.f32.mrf.mxu0  ;;  %v237_v59 = vpop.f32.mrf.mxu1 }
  0xd7   :  { %267 = vst [vmem:[%s544_s3 + $0x38] sm:$0xff] %v186_v56  ;;  %283 = vst [vmem:[%s544_s3 + $0xb8] sm:$0xff] %v234_v57  ;;  %v190_v60 = vadd.f32 %v189_v58, %v409_v24  ;;  %v238_v61 = vadd.f32 %v237_v59, %v409_v24 }
  0xd8   :  { %v191_v62 = vpop.f32.mrf.mxu0  ;;  %v239_v63 = vpop.f32.mrf.mxu1 }
  0xd9   :  { %268 = vst [vmem:[%s544_s3 + $0x40] sm:$0xff] %v190_v60  ;;  %284 = vst [vmem:[%s544_s3 + $0xc0] sm:$0xff] %v238_v61  ;;  %v192_v0 = vadd.f32 %v191_v62, %v411_v25  ;;  %v240_v1 = vadd.f32 %v239_v63, %v411_v25 }
  0xda   :  { %v195_v2 = vpop.f32.mrf.mxu0  ;;  %v243_v3 = vpop.f32.mrf.mxu1 }
  0xdb   :  { %269 = vst [vmem:[%s544_s3 + $0x48] sm:$0xff] %v192_v0  ;;  %285 = vst [vmem:[%s544_s3 + $0xc8] sm:$0xff] %v240_v1  ;;  %v196_v4 = vadd.f32 %v195_v2, %v409_v24  ;;  %v244_v5 = vadd.f32 %v243_v3, %v409_v24 }
  0xdc   :  { %v197_v6 = vpop.f32.mrf.mxu0  ;;  %v245_v7 = vpop.f32.mrf.mxu1 }
  0xdd   :  { %270 = vst [vmem:[%s544_s3 + $0x50] sm:$0xff] %v196_v4  ;;  %286 = vst [vmem:[%s544_s3 + $0xd0] sm:$0xff] %v244_v5  ;;  %v198_v8 = vadd.f32 %v197_v6, %v411_v25  ;;  %v246_v9 = vadd.f32 %v245_v7, %v411_v25 }
  0xde   :  { %v201_v10 = vpop.f32.mrf.mxu0  ;;  %v249_v11 = vpop.f32.mrf.mxu1 }
  0xdf   :  { %271 = vst [vmem:[%s544_s3 + $0x58] sm:$0xff] %v198_v8  ;;  %287 = vst [vmem:[%s544_s3 + $0xd8] sm:$0xff] %v246_v9  ;;  %v202_v12 = vadd.f32 %v201_v10, %v409_v24  ;;  %v250_v13 = vadd.f32 %v249_v11, %v409_v24 }
  0xe0   :  { %v203_v14 = vpop.f32.mrf.mxu0  ;;  %v251_v15 = vpop.f32.mrf.mxu1 }
  0xe1   :  { %272 = vst [vmem:[%s544_s3 + $0x60] sm:$0xff] %v202_v12  ;;  %288 = vst [vmem:[%s544_s3 + $0xe0] sm:$0xff] %v250_v13  ;;  %v204_v16 = vadd.f32 %v203_v14, %v411_v25  ;;  %v252_v17 = vadd.f32 %v251_v15, %v411_v25 }
  0xe2   :  { %v207_v18 = vpop.f32.mrf.mxu0  ;;  %v255_v19 = vpop.f32.mrf.mxu1 }
  0xe3   :  { %273 = vst [vmem:[%s544_s3 + $0x68] sm:$0xff] %v204_v16  ;;  %289 = vst [vmem:[%s544_s3 + $0xe8] sm:$0xff] %v252_v17  ;;  %v208_v20 = vadd.f32 %v207_v18, %v409_v24  ;;  %v256_v21 = vadd.f32 %v255_v19, %v409_v24 }
  0xe4   :  { %v209_v22 = vpop.f32.mrf.mxu0  ;;  %v257_v23 = vpop.f32.mrf.mxu1 }
  0xe5   :  { %274 = vst [vmem:[%s544_s3 + $0x70] sm:$0xff] %v208_v20  ;;  %290 = vst [vmem:[%s544_s3 + $0xf0] sm:$0xff] %v256_v21  ;;  %v210_v26 = vadd.f32 %v209_v22, %v411_v25  ;;  %v258_v27 = vadd.f32 %v257_v23, %v411_v25 }
  0xe7   :  { %275 = vst [vmem:[%s544_s3 + $0x78] sm:$0xff] %v210_v26  ;;  %291 = vst [vmem:[%s544_s3 + $0xf8] sm:$0xff] %v258_v27 }

// kernel: oct_up_forward.8
= control target key start
LH: loop header
LB: loop body
LE: loop exit
PB: predicated region body
PF: predicated region fallthrough
CT: control target
= control target key end

     0   :  { %vm535_vm0 = vcmask 1043456   ;;  %vm150_vm1 = vcmask 31744   ;;  %vm1244_vm2 = vcmask 261120   ;;  %s3012_s1 = inlined_call_operand.vmem [shape: f32[4,32], index: 1, kind: input, shape index: {}]   ;;  %s3013_s0 = inlined_call_operand.vmem [shape: f32[1024,4], index: 0, kind: input, shape index: {}]   ;;  %s3014_s2 = inlined_call_operand.vmem [shape: f32[1,32], index: 2, kind: input, shape index: {}]   ;;  %s3015_s3 = inlined_call_operand.vmem [shape: f32[1024,32], index: 3, kind: output, shape index: {}]  }
   0x1   :  { %v142_v0 = vld [vmem:[%s3012_s1] sm:$0xf]  ;;  %v15_v3 = vld [vmem:[%s3013_s0 + $0x8] sm:$0xff]  ;;  %v16_v5 = vld [vmem:[%s3013_s0 + $0x10] sm:$0xff] }
   0x2   :  { %v14_v1 = vld [vmem:[%s3013_s0] sm:$0xff]  ;;  %1636 = vmatprep.subr.msk.mxu0 %vm535_vm0, %v142_v0  ;;  %1830 = vmatprep.subr.msk.mxu1 %vm535_vm0, %v142_v0  ;;  %v79_v4 = vld [vmem:[%s3013_s0 + $0x208] sm:$0xff]  ;;  %v80_v6 = vld [vmem:[%s3013_s0 + $0x210] sm:$0xff] }
   0x3   :  { %v78_v2 = vld [vmem:[%s3013_s0 + $0x200] sm:$0xff]  ;;  %1637 = vmatpush3.msk.msra.mxu0 %vm535_vm0, %v142_v0  ;;  %1831 = vmatpush3.msk.msra.mxu1 %vm535_vm0, %v142_v0  ;;  %v17_v7 = vld [vmem:[%s3013_s0 + $0x18] sm:$0xff]  ;;  %v19_v11 = vld [vmem:[%s3013_s0 + $0x28] sm:$0xff] }
   0x4   :  { %1638 = vmatprep.mubr.msk.f32.mxu0 %vm150_vm1, %v14_v1  ;;  %1734 = vmatprep.mubr.msk.f32.mxu1 %vm150_vm1, %v78_v2  ;;  %v81_v8 = vld [vmem:[%s3013_s0 + $0x218] sm:$0xff]  ;;  %v18_v9 = vld [vmem:[%s3013_s0 + $0x20] sm:$0xff]  ;;  %v83_v12 = vld [vmem:[%s3013_s0 + $0x228] sm:$0xff] }
   0x5   :  { %1639 = vmatmul.mubr.msk.f32.vlgmr.msra.gmra.mxu0 %vm150_vm1, %v15_v3  ;;  %1735 = vmatmul.mubr.msk.f32.vlgmr.msra.gmra.mxu1 %vm150_vm1, %v79_v4  ;;  %v82_v10 = vld [vmem:[%s3013_s0 + $0x220] sm:$0xff]  ;;  %v20_v13 = vld [vmem:[%s3013_s0 + $0x30] sm:$0xff]  ;;  %v21_v15 = vld [vmem:[%s3013_s0 + $0x38] sm:$0xff] }
   0x6   :  { %1641 = vmatprep.mubr.msk.f32.mxu0 %vm150_vm1, %v16_v5  ;;  %1737 = vmatprep.mubr.msk.f32.mxu1 %vm150_vm1, %v80_v6  ;;  %v84_v14 = vld [vmem:[%s3013_s0 + $0x230] sm:$0xff]  ;;  %v85_v16 = vld [vmem:[%s3013_s0 + $0x238] sm:$0xff]  ;;  %v22_v17 = vld [vmem:[%s3013_s0 + $0x40] sm:$0xff] }
   0x7   :  { %v86_v18 = vld [vmem:[%s3013_s0 + $0x240] sm:$0xff]  ;;  %v23_v19 = vld [vmem:[%s3013_s0 + $0x48] sm:$0xff]  ;;  %v24_v21 = vld [vmem:[%s3013_s0 + $0x50] sm:$0xff] }
   0x8   :  { %v87_v20 = vld [vmem:[%s3013_s0 + $0x248] sm:$0xff]  ;;  %v88_v22 = vld [vmem:[%s3013_s0 + $0x250] sm:$0xff]  ;;  %v25_v23 = vld [vmem:[%s3013_s0 + $0x58] sm:$0xff] }
   0x9   :  { %1642 = vmatmul.mubr.msk.f32.gmra.mxu0 %vm150_vm1, %v17_v7  ;;  %1738 = vmatmul.mubr.msk.f32.gmra.mxu1 %vm150_vm1, %v81_v8  ;;  %v89_v24 = vld [vmem:[%s3013_s0 + $0x258] sm:$0xff]  ;;  %v26_v25 = vld [vmem:[%s3013_s0 + $0x60] sm:$0xff]  ;;  %v27_v27 = vld [vmem:[%s3013_s0 + $0x68] sm:$0xff] }
   0xa   :  { %1644 = vmatprep.mubr.msk.f32.mxu0 %vm150_vm1, %v18_v9  ;;  %1740 = vmatprep.mubr.msk.f32.mxu1 %vm150_vm1, %v82_v10  ;;  %v90_v26 = vld [vmem:[%s3013_s0 + $0x260] sm:$0xff]  ;;  %v91_v28 = vld [vmem:[%s3013_s0 + $0x268] sm:$0xff]  ;;  %v28_v29 = vld [vmem:[%s3013_s0 + $0x70] sm:$0xff] }
   0xb   :  { %v92_v30 = vld [vmem:[%s3013_s0 + $0x270] sm:$0xff]  ;;  %v29_v31 = vld [vmem:[%s3013_s0 + $0x78] sm:$0xff]  ;;  %v30_v33 = vld [vmem:[%s3013_s0 + $0x80] sm:$0xff] }
   0xc   :  { %v93_v32 = vld [vmem:[%s3013_s0 + $0x278] sm:$0xff]  ;;  %v94_v34 = vld [vmem:[%s3013_s0 + $0x280] sm:$0xff]  ;;  %v31_v35 = vld [vmem:[%s3013_s0 + $0x88] sm:$0xff] }
   0xd   :  { %1645 = vmatmul.mubr.msk.f32.gmra.mxu0 %vm150_vm1, %v19_v11  ;;  %1741 = vmatmul.mubr.msk.f32.gmra.mxu1 %vm150_vm1, %v83_v12  ;;  %v95_v36 = vld [vmem:[%s3013_s0 + $0x288] sm:$0xff]  ;;  %v32_v37 = vld [vmem:[%s3013_s0 + $0x90] sm:$0xff]  ;;  %v33_v39 = vld [vmem:[%s3013_s0 + $0x98] sm:$0xff] }
   0xe   :  { %1647 = vmatprep.mubr.msk.f32.mxu0 %vm150_vm1, %v20_v13  ;;  %1743 = vmatprep.mubr.msk.f32.mxu1 %vm150_vm1, %v84_v14  ;;  %v96_v38 = vld [vmem:[%s3013_s0 + $0x290] sm:$0xff]  ;;  %v97_v40 = vld [vmem:[%s3013_s0 + $0x298] sm:$0xff]  ;;  %v34_v41 = vld [vmem:[%s3013_s0 + $0xa0] sm:$0xff] }
   0xf   :  { %v98_v42 = vld [vmem:[%s3013_s0 + $0x2a0] sm:$0xff]  ;;  %v35_v43 = vld [vmem:[%s3013_s0 + $0xa8] sm:$0xff]  ;;  %v36_v45 = vld [vmem:[%s3013_s0 + $0xb0] sm:$0xff] }
  0x10   :  { %v99_v44 = vld [vmem:[%s3013_s0 + $0x2a8] sm:$0xff]  ;;  %v100_v46 = vld [vmem:[%s3013_s0 + $0x2b0] sm:$0xff]  ;;  %v37_v47 = vld [vmem:[%s3013_s0 + $0xb8] sm:$0xff] }
  0x11   :  { %1648 = vmatmul.mubr.msk.f32.gmra.mxu0 %vm150_vm1, %v21_v15  ;;  %1744 = vmatmul.mubr.msk.f32.gmra.mxu1 %vm150_vm1, %v85_v16  ;;  %v101_v48 = vld [vmem:[%s3013_s0 + $0x2b8] sm:$0xff]  ;;  %v38_v49 = vld [vmem:[%s3013_s0 + $0xc0] sm:$0xff]  ;;  %v39_v51 = vld [vmem:[%s3013_s0 + $0xc8] sm:$0xff] }
  0x12   :  { %1650 = vmatprep.mubr.msk.f32.mxu0 %vm150_vm1, %v22_v17  ;;  %1746 = vmatprep.mubr.msk.f32.mxu1 %vm150_vm1, %v86_v18  ;;  %v102_v50 = vld [vmem:[%s3013_s0 + $0x2c0] sm:$0xff]  ;;  %v103_v52 = vld [vmem:[%s3013_s0 + $0x2c8] sm:$0xff]  ;;  %v40_v53 = vld [vmem:[%s3013_s0 + $0xd0] sm:$0xff] }
  0x13   :  { %v104_v54 = vld [vmem:[%s3013_s0 + $0x2d0] sm:$0xff]  ;;  %v41_v55 = vld [vmem:[%s3013_s0 + $0xd8] sm:$0xff]  ;;  %v42_v57 = vld [vmem:[%s3013_s0 + $0xe0] sm:$0xff] }
  0x14   :  { %v105_v56 = vld [vmem:[%s3013_s0 + $0x2d8] sm:$0xff]  ;;  %v106_v58 = vld [vmem:[%s3013_s0 + $0x2e0] sm:$0xff]  ;;  %v43_v59 = vld [vmem:[%s3013_s0 + $0xe8] sm:$0xff] }
  0x15   :  { %1651 = vmatmul.mubr.msk.f32.gmra.mxu0 %vm150_vm1, %v23_v19  ;;  %1747 = vmatmul.mubr.msk.f32.gmra.mxu1 %vm150_vm1, %v87_v20  ;;  %v107_v60 = vld [vmem:[%s3013_s0 + $0x2e8] sm:$0xff]  ;;  %v44_v61 = vld [vmem:[%s3013_s0 + $0xf0] sm:$0xff]  ;;  %v45_v63 = vld [vmem:[%s3013_s0 + $0xf8] sm:$0xff] }
  0x16   :  { %1653 = vmatprep.mubr.msk.f32.mxu0 %vm150_vm1, %v24_v21  ;;  %1749 = vmatprep.mubr.msk.f32.mxu1 %vm150_vm1, %v88_v22  ;;  %v108_v62 = vld [vmem:[%s3013_s0 + $0x2f0] sm:$0xff]  ;;  %v109_v0 = vld [vmem:[%s3013_s0 + $0x2f8] sm:$0xff]  ;;  %v46_v1 = vld [vmem:[%s3013_s0 + $0x100] sm:$0xff] }
  0x17   :  { %v110_v2 = vld [vmem:[%s3013_s0 + $0x300] sm:$0xff]  ;;  %v47_v3 = vld [vmem:[%s3013_s0 + $0x108] sm:$0xff]  ;;  %v48_v5 = vld [vmem:[%s3013_s0 + $0x110] sm:$0xff] }
  0x18   :  { %v111_v4 = vld [vmem:[%s3013_s0 + $0x308] sm:$0xff]  ;;  %v112_v6 = vld [vmem:[%s3013_s0 + $0x310] sm:$0xff]  ;;  %v49_v7 = vld [vmem:[%s3013_s0 + $0x118] sm:$0xff] }
  0x19   :  { %1654 = vmatmul.mubr.msk.f32.gmra.mxu0 %vm150_vm1, %v25_v23  ;;  %1750 = vmatmul.mubr.msk.f32.gmra.mxu1 %vm150_vm1, %v89_v24  ;;  %v113_v8 = vld [vmem:[%s3013_s0 + $0x318] sm:$0xff]  ;;  %v50_v9 = vld [vmem:[%s3013_s0 + $0x120] sm:$0xff]  ;;  %v51_v11 = vld [vmem:[%s3013_s0 + $0x128] sm:$0xff] }
  0x1a   :  { %1656 = vmatprep.mubr.msk.f32.mxu0 %vm150_vm1, %v26_v25  ;;  %1752 = vmatprep.mubr.msk.f32.mxu1 %vm150_vm1, %v90_v26  ;;  %v114_v10 = vld [vmem:[%s3013_s0 + $0x320] sm:$0xff]  ;;  %v115_v12 = vld [vmem:[%s3013_s0 + $0x328] sm:$0xff]  ;;  %v52_v13 = vld [vmem:[%s3013_s0 + $0x130] sm:$0xff] }
  0x1b   :  { %v116_v14 = vld [vmem:[%s3013_s0 + $0x330] sm:$0xff]  ;;  %v53_v15 = vld [vmem:[%s3013_s0 + $0x138] sm:$0xff]  ;;  %v54_v17 = vld [vmem:[%s3013_s0 + $0x140] sm:$0xff] }
  0x1c   :  { %v117_v16 = vld [vmem:[%s3013_s0 + $0x338] sm:$0xff]  ;;  %v118_v18 = vld [vmem:[%s3013_s0 + $0x340] sm:$0xff]  ;;  %v55_v19 = vld [vmem:[%s3013_s0 + $0x148] sm:$0xff] }
  0x1d   :  { %1657 = vmatmul.mubr.msk.f32.gmra.mxu0 %vm150_vm1, %v27_v27  ;;  %1753 = vmatmul.mubr.msk.f32.gmra.mxu1 %vm150_vm1, %v91_v28  ;;  %v119_v20 = vld [vmem:[%s3013_s0 + $0x348] sm:$0xff]  ;;  %v56_v21 = vld [vmem:[%s3013_s0 + $0x150] sm:$0xff]  ;;  %v57_v23 = vld [vmem:[%s3013_s0 + $0x158] sm:$0xff] }
  0x1e   :  { %1659 = vmatprep.mubr.msk.f32.mxu0 %vm150_vm1, %v28_v29  ;;  %1755 = vmatprep.mubr.msk.f32.mxu1 %vm150_vm1, %v92_v30  ;;  %v120_v22 = vld [vmem:[%s3013_s0 + $0x350] sm:$0xff]  ;;  %v121_v24 = vld [vmem:[%s3013_s0 + $0x358] sm:$0xff]  ;;  %v58_v25 = vld [vmem:[%s3013_s0 + $0x160] sm:$0xff] }
  0x1f   :  { %v122_v26 = vld [vmem:[%s3013_s0 + $0x360] sm:$0xff]  ;;  %v59_v27 = vld [vmem:[%s3013_s0 + $0x168] sm:$0xff]  ;;  %v60_v29 = vld [vmem:[%s3013_s0 + $0x170] sm:$0xff] }
  0x20   :  { %v123_v28 = vld [vmem:[%s3013_s0 + $0x368] sm:$0xff]  ;;  %v124_v30 = vld [vmem:[%s3013_s0 + $0x370] sm:$0xff] }
  0x21   :  { %1660 = vmatmul.mubr.msk.f32.gmra.mxu0 %vm150_vm1, %v29_v31  ;;  %1756 = vmatmul.mubr.msk.f32.gmra.mxu1 %vm150_vm1, %v93_v32  ;;  %v61_v31 = vld [vmem:[%s3013_s0 + $0x178] sm:$0xff] }
  0x22   :  { %1662 = vmatprep.mubr.msk.f32.mxu0 %vm150_vm1, %v30_v33  ;;  %1758 = vmatprep.mubr.msk.f32.mxu1 %vm150_vm1, %v94_v34  ;;  %v125_v32 = vld [vmem:[%s3013_s0 + $0x378] sm:$0xff]  ;;  %v62_v33 = vld [vmem:[%s3013_s0 + $0x180] sm:$0xff] }
  0x23   :  { %v126_v34 = vld [vmem:[%s3013_s0 + $0x380] sm:$0xff] }
  0x25   :  { %1663 = vmatmul.mubr.msk.f32.gmra.mxu0 %vm150_vm1, %v31_v35  ;;  %1759 = vmatmul.mubr.msk.f32.gmra.mxu1 %vm150_vm1, %v95_v36  ;;  %v63_v35 = vld [vmem:[%s3013_s0 + $0x188] sm:$0xff] }
  0x26   :  { %1665 = vmatprep.mubr.msk.f32.mxu0 %vm150_vm1, %v32_v37  ;;  %1761 = vmatprep.mubr.msk.f32.mxu1 %vm150_vm1, %v96_v38  ;;  %v127_v36 = vld [vmem:[%s3013_s0 + $0x388] sm:$0xff]  ;;  %v64_v37 = vld [vmem:[%s3013_s0 + $0x190] sm:$0xff] }
  0x27   :  { %v128_v38 = vld [vmem:[%s3013_s0 + $0x390] sm:$0xff] }
  0x29   :  { %1666 = vmatmul.mubr.msk.f32.gmra.mxu0 %vm150_vm1, %v33_v39  ;;  %1762 = vmatmul.mubr.msk.f32.gmra.mxu1 %vm150_vm1, %v97_v40  ;;  %v65_v39 = vld [vmem:[%s3013_s0 + $0x198] sm:$0xff] }
  0x2a   :  { %1668 = vmatprep.mubr.msk.f32.mxu0 %vm150_vm1, %v34_v41  ;;  %1764 = vmatprep.mubr.msk.f32.mxu1 %vm150_vm1, %v98_v42  ;;  %v129_v40 = vld [vmem:[%s3013_s0 + $0x398] sm:$0xff]  ;;  %v66_v41 = vld [vmem:[%s3013_s0 + $0x1a0] sm:$0xff] }
  0x2b   :  { %v130_v42 = vld [vmem:[%s3013_s0 + $0x3a0] sm:$0xff] }
  0x2d   :  { %1669 = vmatmul.mubr.msk.f32.gmra.mxu0 %vm150_vm1, %v35_v43  ;;  %1765 = vmatmul.mubr.msk.f32.gmra.mxu1 %vm150_vm1, %v99_v44  ;;  %v67_v43 = vld [vmem:[%s3013_s0 + $0x1a8] sm:$0xff] }
  0x2e   :  { %1671 = vmatprep.mubr.msk.f32.mxu0 %vm150_vm1, %v36_v45  ;;  %1767 = vmatprep.mubr.msk.f32.mxu1 %vm150_vm1, %v100_v46  ;;  %v131_v44 = vld [vmem:[%s3013_s0 + $0x3a8] sm:$0xff]  ;;  %v68_v45 = vld [vmem:[%s3013_s0 + $0x1b0] sm:$0xff] }
  0x2f   :  { %v132_v46 = vld [vmem:[%s3013_s0 + $0x3b0] sm:$0xff] }
  0x31   :  { %1672 = vmatmul.mubr.msk.f32.gmra.mxu0 %vm150_vm1, %v37_v47  ;;  %1768 = vmatmul.mubr.msk.f32.gmra.mxu1 %vm150_vm1, %v101_v48  ;;  %v69_v47 = vld [vmem:[%s3013_s0 + $0x1b8] sm:$0xff] }
  0x32   :  { %1674 = vmatprep.mubr.msk.f32.mxu0 %vm150_vm1, %v38_v49  ;;  %1770 = vmatprep.mubr.msk.f32.mxu1 %vm150_vm1, %v102_v50  ;;  %v133_v48 = vld [vmem:[%s3013_s0 + $0x3b8] sm:$0xff]  ;;  %v70_v49 = vld [vmem:[%s3013_s0 + $0x1c0] sm:$0xff] }
  0x33   :  { %v134_v50 = vld [vmem:[%s3013_s0 + $0x3c0] sm:$0xff] }
  0x35   :  { %1675 = vmatmul.mubr.msk.f32.gmra.mxu0 %vm150_vm1, %v39_v51  ;;  %1771 = vmatmul.mubr.msk.f32.gmra.mxu1 %vm150_vm1, %v103_v52  ;;  %v71_v51 = vld [vmem:[%s3013_s0 + $0x1c8] sm:$0xff] }
  0x36   :  { %1677 = vmatprep.mubr.msk.f32.mxu0 %vm150_vm1, %v40_v53  ;;  %1773 = vmatprep.mubr.msk.f32.mxu1 %vm150_vm1, %v104_v54  ;;  %v135_v52 = vld [vmem:[%s3013_s0 + $0x3c8] sm:$0xff]  ;;  %v72_v53 = vld [vmem:[%s3013_s0 + $0x1d0] sm:$0xff] }
  0x37   :  { %v136_v54 = vld [vmem:[%s3013_s0 + $0x3d0] sm:$0xff] }
  0x39   :  { %1678 = vmatmul.mubr.msk.f32.gmra.mxu0 %vm150_vm1, %v41_v55  ;;  %1774 = vmatmul.mubr.msk.f32.gmra.mxu1 %vm150_vm1, %v105_v56  ;;  %v73_v55 = vld [vmem:[%s3013_s0 + $0x1d8] sm:$0xff] }
  0x3a   :  { %1680 = vmatprep.mubr.msk.f32.mxu0 %vm150_vm1, %v42_v57  ;;  %1776 = vmatprep.mubr.msk.f32.mxu1 %vm150_vm1, %v106_v58  ;;  %v137_v56 = vld [vmem:[%s3013_s0 + $0x3d8] sm:$0xff]  ;;  %v74_v57 = vld [vmem:[%s3013_s0 + $0x1e0] sm:$0xff] }
  0x3b   :  { %v138_v58 = vld [vmem:[%s3013_s0 + $0x3e0] sm:$0xff] }
  0x3d   :  { %1681 = vmatmul.mubr.msk.f32.gmra.mxu0 %vm150_vm1, %v43_v59  ;;  %1777 = vmatmul.mubr.msk.f32.gmra.mxu1 %vm150_vm1, %v107_v60  ;;  %v75_v59 = vld [vmem:[%s3013_s0 + $0x1e8] sm:$0xff] }
  0x3e   :  { %1683 = vmatprep.mubr.msk.f32.mxu0 %vm150_vm1, %v44_v61  ;;  %1779 = vmatprep.mubr.msk.f32.mxu1 %vm150_vm1, %v108_v62  ;;  %v139_v60 = vld [vmem:[%s3013_s0 + $0x3e8] sm:$0xff]  ;;  %v76_v61 = vld [vmem:[%s3013_s0 + $0x1f0] sm:$0xff] }
  0x3f   :  { %v140_v62 = vld [vmem:[%s3013_s0 + $0x3f0] sm:$0xff] }
  0x41   :  { %1684 = vmatmul.mubr.msk.f32.gmra.mxu0 %vm150_vm1, %v45_v63  ;;  %1780 = vmatmul.mubr.msk.f32.gmra.mxu1 %vm150_vm1, %v109_v0  ;;  %v77_v63 = vld [vmem:[%s3013_s0 + $0x1f8] sm:$0xff] }
  0x42   :  { %1686 = vmatprep.mubr.msk.f32.mxu0 %vm150_vm1, %v46_v1  ;;  %1782 = vmatprep.mubr.msk.f32.mxu1 %vm150_vm1, %v110_v2  ;;  %v141_v0 = vld [vmem:[%s3013_s0 + $0x3f8] sm:$0xff]  ;;  %v2370_v1 = vld [vmem:[%s3014_s2] ss:$0 sm:$0xff] }
  0x45   :  { %1687 = vmatmul.mubr.msk.f32.gmra.mxu0 %vm150_vm1, %v47_v3  ;;  %1783 = vmatmul.mubr.msk.f32.gmra.mxu1 %vm150_vm1, %v111_v4 }
  0x46   :  { %1689 = vmatprep.mubr.msk.f32.mxu0 %vm150_vm1, %v48_v5  ;;  %1785 = vmatprep.mubr.msk.f32.mxu1 %vm150_vm1, %v112_v6 }
  0x49   :  { %1690 = vmatmul.mubr.msk.f32.gmra.mxu0 %vm150_vm1, %v49_v7  ;;  %1786 = vmatmul.mubr.msk.f32.gmra.mxu1 %vm150_vm1, %v113_v8 }
  0x4a   :  { %1692 = vmatprep.mubr.msk.f32.mxu0 %vm150_vm1, %v50_v9  ;;  %1788 = vmatprep.mubr.msk.f32.mxu1 %vm150_vm1, %v114_v10 }
  0x4d   :  { %1693 = vmatmul.mubr.msk.f32.gmra.mxu0 %vm150_vm1, %v51_v11  ;;  %1789 = vmatmul.mubr.msk.f32.gmra.mxu1 %vm150_vm1, %v115_v12 }
  0x4e   :  { %1695 = vmatprep.mubr.msk.f32.mxu0 %vm150_vm1, %v52_v13  ;;  %1791 = vmatprep.mubr.msk.f32.mxu1 %vm150_vm1, %v116_v14 }
  0x51   :  { %1696 = vmatmul.mubr.msk.f32.gmra.mxu0 %vm150_vm1, %v53_v15  ;;  %1792 = vmatmul.mubr.msk.f32.gmra.mxu1 %vm150_vm1, %v117_v16 }
  0x52   :  { %1698 = vmatprep.mubr.msk.f32.mxu0 %vm150_vm1, %v54_v17  ;;  %1794 = vmatprep.mubr.msk.f32.mxu1 %vm150_vm1, %v118_v18 }
  0x55   :  { %1699 = vmatmul.mubr.msk.f32.gmra.mxu0 %vm150_vm1, %v55_v19  ;;  %1795 = vmatmul.mubr.msk.f32.gmra.mxu1 %vm150_vm1, %v119_v20 }
  0x56   :  { %1701 = vmatprep.mubr.msk.f32.mxu0 %vm150_vm1, %v56_v21  ;;  %1797 = vmatprep.mubr.msk.f32.mxu1 %vm150_vm1, %v120_v22 }
  0x59   :  { %1702 = vmatmul.mubr.msk.f32.gmra.mxu0 %vm150_vm1, %v57_v23  ;;  %1798 = vmatmul.mubr.msk.f32.gmra.mxu1 %vm150_vm1, %v121_v24 }
  0x5a   :  { %1704 = vmatprep.mubr.msk.f32.mxu0 %vm150_vm1, %v58_v25  ;;  %1800 = vmatprep.mubr.msk.f32.mxu1 %vm150_vm1, %v122_v26 }
  0x5d   :  { %1705 = vmatmul.mubr.msk.f32.gmra.mxu0 %vm150_vm1, %v59_v27  ;;  %1801 = vmatmul.mubr.msk.f32.gmra.mxu1 %vm150_vm1, %v123_v28 }
  0x5e   :  { %1707 = vmatprep.mubr.msk.f32.mxu0 %vm150_vm1, %v60_v29  ;;  %1803 = vmatprep.mubr.msk.f32.mxu1 %vm150_vm1, %v124_v30 }
  0x61   :  { %1708 = vmatmul.mubr.msk.f32.gmra.mxu0 %vm150_vm1, %v61_v31  ;;  %1804 = vmatmul.mubr.msk.f32.gmra.mxu1 %vm150_vm1, %v125_v32 }
  0x62   :  { %1710 = vmatprep.mubr.msk.f32.mxu0 %vm150_vm1, %v62_v33  ;;  %1806 = vmatprep.mubr.msk.f32.mxu1 %vm150_vm1, %v126_v34 }
  0x65   :  { %1711 = vmatmul.mubr.msk.f32.gmra.mxu0 %vm150_vm1, %v63_v35  ;;  %1807 = vmatmul.mubr.msk.f32.gmra.mxu1 %vm150_vm1, %v127_v36 }
  0x66   :  { %1713 = vmatprep.mubr.msk.f32.mxu0 %vm150_vm1, %v64_v37  ;;  %1809 = vmatprep.mubr.msk.f32.mxu1 %vm150_vm1, %v128_v38 }
  0x69   :  { %1714 = vmatmul.mubr.msk.f32.gmra.mxu0 %vm150_vm1, %v65_v39  ;;  %1810 = vmatmul.mubr.msk.f32.gmra.mxu1 %vm150_vm1, %v129_v40 }
  0x6a   :  { %1716 = vmatprep.mubr.msk.f32.mxu0 %vm150_vm1, %v66_v41  ;;  %1812 = vmatprep.mubr.msk.f32.mxu1 %vm150_vm1, %v130_v42 }
  0x6d   :  { %1717 = vmatmul.mubr.msk.f32.gmra.mxu0 %vm150_vm1, %v67_v43  ;;  %1813 = vmatmul.mubr.msk.f32.gmra.mxu1 %vm150_vm1, %v131_v44 }
  0x6e   :  { %1719 = vmatprep.mubr.msk.f32.mxu0 %vm150_vm1, %v68_v45  ;;  %1815 = vmatprep.mubr.msk.f32.mxu1 %vm150_vm1, %v132_v46 }
  0x71   :  { %1720 = vmatmul.mubr.msk.f32.gmra.mxu0 %vm150_vm1, %v69_v47  ;;  %1816 = vmatmul.mubr.msk.f32.gmra.mxu1 %vm150_vm1, %v133_v48 }
  0x72   :  { %1722 = vmatprep.mubr.msk.f32.mxu0 %vm150_vm1, %v70_v49  ;;  %1818 = vmatprep.mubr.msk.f32.mxu1 %vm150_vm1, %v134_v50 }
  0x75   :  { %1723 = vmatmul.mubr.msk.f32.gmra.mxu0 %vm150_vm1, %v71_v51  ;;  %1819 = vmatmul.mubr.msk.f32.gmra.mxu1 %vm150_vm1, %v135_v52 }
  0x76   :  { %1725 = vmatprep.mubr.msk.f32.mxu0 %vm150_vm1, %v72_v53  ;;  %1821 = vmatprep.mubr.msk.f32.mxu1 %vm150_vm1, %v136_v54 }
  0x79   :  { %1726 = vmatmul.mubr.msk.f32.gmra.mxu0 %vm150_vm1, %v73_v55  ;;  %1822 = vmatmul.mubr.msk.f32.gmra.mxu1 %vm150_vm1, %v137_v56 }
  0x7a   :  { %1728 = vmatprep.mubr.msk.f32.mxu0 %vm150_vm1, %v74_v57  ;;  %1824 = vmatprep.mubr.msk.f32.mxu1 %vm150_vm1, %v138_v58 }
  0x7d   :  { %1729 = vmatmul.mubr.msk.f32.gmra.mxu0 %vm150_vm1, %v75_v59  ;;  %1825 = vmatmul.mubr.msk.f32.gmra.mxu1 %vm150_vm1, %v139_v60 }
  0x7e   :  { %1731 = vmatprep.mubr.msk.f32.mxu0 %vm150_vm1, %v76_v61  ;;  %1827 = vmatprep.mubr.msk.f32.mxu1 %vm150_vm1, %v140_v62 }
  0x81   :  { %1732 = vmatmul.mubr.msk.f32.gmra.mxu0 %vm150_vm1, %v77_v63  ;;  %1828 = vmatmul.mubr.msk.f32.gmra.mxu1 %vm150_vm1, %v141_v0 }
  0xc5   :  { %v1640_v2 = vpop.f32.mrf.mxu0  ;;  %v1736_v3 = vpop.f32.mrf.mxu1 }
  0xc6   :  { %v611_v4 = vadd.f32 %v1640_v2, %v2370_v1  ;;  %v931_v5 = vadd.f32 %v1736_v3, %v2370_v1 }
  0xc7   :  { %v605_v6 = vpop.f32.mrf.mxu0  ;;  %v925_v7 = vpop.f32.mrf.mxu1 }
  0xc8   :  { %1246 = vst.msk [vmem:[%s3015_s3 + $0x8] sm:$0xff] %vm1244_vm2, %v611_v4  ;;  %1310 = vst.msk [vmem:[%s3015_s3 + $0x208] sm:$0xff] %vm1244_vm2, %v931_v5  ;;  %v606_v8 = vadd.f32 %v2370_v1, %v605_v6  ;;  %v926_v9 = vadd.f32 %v2370_v1, %v925_v7 }
  0xc9   :  { %v1643_v10 = vpop.f32.mrf.mxu0  ;;  %v1739_v11 = vpop.f32.mrf.mxu1 }
  0xca   :  { %1245 = vst.msk [vmem:[%s3015_s3] sm:$0xff] %vm1244_vm2, %v606_v8  ;;  %1309 = vst.msk [vmem:[%s3015_s3 + $0x200] sm:$0xff] %vm1244_vm2, %v926_v9  ;;  %v621_v12 = vadd.f32 %v1643_v10, %v2370_v1  ;;  %v941_v13 = vadd.f32 %v1739_v11, %v2370_v1 }
  0xcb   :  { %v615_v14 = vpop.f32.mrf.mxu0  ;;  %v935_v15 = vpop.f32.mrf.mxu1 }
  0xcc   :  { %1248 = vst.msk [vmem:[%s3015_s3 + $0x18] sm:$0xff] %vm1244_vm2, %v621_v12  ;;  %1312 = vst.msk [vmem:[%s3015_s3 + $0x218] sm:$0xff] %vm1244_vm2, %v941_v13  ;;  %v616_v16 = vadd.f32 %v2370_v1, %v615_v14  ;;  %v936_v17 = vadd.f32 %v2370_v1, %v935_v15 }
  0xcd   :  { %v1646_v18 = vpop.f32.mrf.mxu0  ;;  %v1742_v19 = vpop.f32.mrf.mxu1 }
  0xce   :  { %1247 = vst.msk [vmem:[%s3015_s3 + $0x10] sm:$0xff] %vm1244_vm2, %v616_v16  ;;  %1311 = vst.msk [vmem:[%s3015_s3 + $0x210] sm:$0xff] %vm1244_vm2, %v936_v17  ;;  %v631_v20 = vadd.f32 %v1646_v18, %v2370_v1  ;;  %v951_v21 = vadd.f32 %v1742_v19, %v2370_v1 }
  0xcf   :  { %v625_v22 = vpop.f32.mrf.mxu0  ;;  %v945_v23 = vpop.f32.mrf.mxu1 }
  0xd0   :  { %1250 = vst.msk [vmem:[%s3015_s3 + $0x28] sm:$0xff] %vm1244_vm2, %v631_v20  ;;  %1314 = vst.msk [vmem:[%s3015_s3 + $0x228] sm:$0xff] %vm1244_vm2, %v951_v21  ;;  %v626_v24 = vadd.f32 %v2370_v1, %v625_v22  ;;  %v946_v25 = vadd.f32 %v2370_v1, %v945_v23 }
  0xd1   :  { %v1649_v26 = vpop.f32.mrf.mxu0  ;;  %v1745_v27 = vpop.f32.mrf.mxu1 }
  0xd2   :  { %1249 = vst.msk [vmem:[%s3015_s3 + $0x20] sm:$0xff] %vm1244_vm2, %v626_v24  ;;  %1313 = vst.msk [vmem:[%s3015_s3 + $0x220] sm:$0xff] %vm1244_vm2, %v946_v25  ;;  %v641_v28 = vadd.f32 %v1649_v26, %v2370_v1  ;;  %v961_v29 = vadd.f32 %v1745_v27, %v2370_v1 }
  0xd3   :  { %v635_v30 = vpop.f32.mrf.mxu0  ;;  %v955_v31 = vpop.f32.mrf.mxu1 }
  0xd4   :  { %1252 = vst.msk [vmem:[%s3015_s3 + $0x38] sm:$0xff] %vm1244_vm2, %v641_v28  ;;  %1316 = vst.msk [vmem:[%s3015_s3 + $0x238] sm:$0xff] %vm1244_vm2, %v961_v29  ;;  %v636_v32 = vadd.f32 %v2370_v1, %v635_v30  ;;  %v956_v33 = vadd.f32 %v2370_v1, %v955_v31 }
  0xd5   :  { %v1652_v34 = vpop.f32.mrf.mxu0  ;;  %v1748_v35 = vpop.f32.mrf.mxu1 }
  0xd6   :  { %1251 = vst.msk [vmem:[%s3015_s3 + $0x30] sm:$0xff] %vm1244_vm2, %v636_v32  ;;  %1315 = vst.msk [vmem:[%s3015_s3 + $0x230] sm:$0xff] %vm1244_vm2, %v956_v33  ;;  %v651_v36 = vadd.f32 %v1652_v34, %v2370_v1  ;;  %v971_v37 = vadd.f32 %v1748_v35, %v2370_v1 }
  0xd7   :  { %v645_v38 = vpop.f32.mrf.mxu0  ;;  %v965_v39 = vpop.f32.mrf.mxu1 }
  0xd8   :  { %1254 = vst.msk [vmem:[%s3015_s3 + $0x48] sm:$0xff] %vm1244_vm2, %v651_v36  ;;  %1318 = vst.msk [vmem:[%s3015_s3 + $0x248] sm:$0xff] %vm1244_vm2, %v971_v37  ;;  %v646_v40 = vadd.f32 %v2370_v1, %v645_v38  ;;  %v966_v41 = vadd.f32 %v2370_v1, %v965_v39 }
  0xd9   :  { %v1655_v42 = vpop.f32.mrf.mxu0  ;;  %v1751_v43 = vpop.f32.mrf.mxu1 }
  0xda   :  { %1253 = vst.msk [vmem:[%s3015_s3 + $0x40] sm:$0xff] %vm1244_vm2, %v646_v40  ;;  %1317 = vst.msk [vmem:[%s3015_s3 + $0x240] sm:$0xff] %vm1244_vm2, %v966_v41  ;;  %v661_v44 = vadd.f32 %v1655_v42, %v2370_v1  ;;  %v981_v45 = vadd.f32 %v1751_v43, %v2370_v1 }
  0xdb   :  { %v655_v46 = vpop.f32.mrf.mxu0  ;;  %v975_v47 = vpop.f32.mrf.mxu1 }
  0xdc   :  { %1256 = vst.msk [vmem:[%s3015_s3 + $0x58] sm:$0xff] %vm1244_vm2, %v661_v44  ;;  %1320 = vst.msk [vmem:[%s3015_s3 + $0x258] sm:$0xff] %vm1244_vm2, %v981_v45  ;;  %v656_v48 = vadd.f32 %v2370_v1, %v655_v46  ;;  %v976_v49 = vadd.f32 %v2370_v1, %v975_v47 }
  0xdd   :  { %v1658_v50 = vpop.f32.mrf.mxu0  ;;  %v1754_v51 = vpop.f32.mrf.mxu1 }
  0xde   :  { %1255 = vst.msk [vmem:[%s3015_s3 + $0x50] sm:$0xff] %vm1244_vm2, %v656_v48  ;;  %1319 = vst.msk [vmem:[%s3015_s3 + $0x250] sm:$0xff] %vm1244_vm2, %v976_v49  ;;  %v671_v52 = vadd.f32 %v1658_v50, %v2370_v1  ;;  %v991_v53 = vadd.f32 %v1754_v51, %v2370_v1 }
  0xdf   :  { %v665_v54 = vpop.f32.mrf.mxu0  ;;  %v985_v55 = vpop.f32.mrf.mxu1 }
  0xe0   :  { %1258 = vst.msk [vmem:[%s3015_s3 + $0x68] sm:$0xff] %vm1244_vm2, %v671_v52  ;;  %1322 = vst.msk [vmem:[%s3015_s3 + $0x268] sm:$0xff] %vm1244_vm2, %v991_v53  ;;  %v666_v56 = vadd.f32 %v2370_v1, %v665_v54  ;;  %v986_v57 = vadd.f32 %v2370_v1, %v985_v55 }
  0xe1   :  { %v1661_v58 = vpop.f32.mrf.mxu0  ;;  %v1757_v59 = vpop.f32.mrf.mxu1 }
  0xe2   :  { %1257 = vst.msk [vmem:[%s3015_s3 + $0x60] sm:$0xff] %vm1244_vm2, %v666_v56  ;;  %1321 = vst.msk [vmem:[%s3015_s3 + $0x260] sm:$0xff] %vm1244_vm2, %v986_v57  ;;  %v681_v60 = vadd.f32 %v1661_v58, %v2370_v1  ;;  %v1001_v61 = vadd.f32 %v1757_v59, %v2370_v1 }
  0xe3   :  { %v675_v62 = vpop.f32.mrf.mxu0  ;;  %v995_v63 = vpop.f32.mrf.mxu1 }
  0xe4   :  { %1260 = vst.msk [vmem:[%s3015_s3 + $0x78] sm:$0xff] %vm1244_vm2, %v681_v60  ;;  %1324 = vst.msk [vmem:[%s3015_s3 + $0x278] sm:$0xff] %vm1244_vm2, %v1001_v61  ;;  %v676_v0 = vadd.f32 %v2370_v1, %v675_v62  ;;  %v996_v2 = vadd.f32 %v2370_v1, %v995_v63 }
  0xe5   :  { %v1664_v3 = vpop.f32.mrf.mxu0  ;;  %v1760_v4 = vpop.f32.mrf.mxu1 }
  0xe6   :  { %1259 = vst.msk [vmem:[%s3015_s3 + $0x70] sm:$0xff] %vm1244_vm2, %v676_v0  ;;  %1323 = vst.msk [vmem:[%s3015_s3 + $0x270] sm:$0xff] %vm1244_vm2, %v996_v2  ;;  %v691_v5 = vadd.f32 %v1664_v3, %v2370_v1  ;;  %v1011_v6 = vadd.f32 %v1760_v4, %v2370_v1 }
  0xe7   :  { %v685_v7 = vpop.f32.mrf.mxu0  ;;  %v1005_v8 = vpop.f32.mrf.mxu1 }
  0xe8   :  { %1262 = vst.msk [vmem:[%s3015_s3 + $0x88] sm:$0xff] %vm1244_vm2, %v691_v5  ;;  %1326 = vst.msk [vmem:[%s3015_s3 + $0x288] sm:$0xff] %vm1244_vm2, %v1011_v6  ;;  %v686_v9 = vadd.f32 %v2370_v1, %v685_v7  ;;  %v1006_v10 = vadd.f32 %v2370_v1, %v1005_v8 }
  0xe9   :  { %v1667_v11 = vpop.f32.mrf.mxu0  ;;  %v1763_v12 = vpop.f32.mrf.mxu1 }
  0xea   :  { %1261 = vst.msk [vmem:[%s3015_s3 + $0x80] sm:$0xff] %vm1244_vm2, %v686_v9  ;;  %1325 = vst.msk [vmem:[%s3015_s3 + $0x280] sm:$0xff] %vm1244_vm2, %v1006_v10  ;;  %v701_v13 = vadd.f32 %v1667_v11, %v2370_v1  ;;  %v1021_v14 = vadd.f32 %v1763_v12, %v2370_v1 }
  0xeb   :  { %v695_v15 = vpop.f32.mrf.mxu0  ;;  %v1015_v16 = vpop.f32.mrf.mxu1 }
  0xec   :  { %1264 = vst.msk [vmem:[%s3015_s3 + $0x98] sm:$0xff] %vm1244_vm2, %v701_v13  ;;  %1328 = vst.msk [vmem:[%s3015_s3 + $0x298] sm:$0xff] %vm1244_vm2, %v1021_v14  ;;  %v696_v17 = vadd.f32 %v2370_v1, %v695_v15  ;;  %v1016_v18 = vadd.f32 %v2370_v1, %v1015_v16 }
  0xed   :  { %v1670_v19 = vpop.f32.mrf.mxu0  ;;  %v1766_v20 = vpop.f32.mrf.mxu1 }
  0xee   :  { %1263 = vst.msk [vmem:[%s3015_s3 + $0x90] sm:$0xff] %vm1244_vm2, %v696_v17  ;;  %1327 = vst.msk [vmem:[%s3015_s3 + $0x290] sm:$0xff] %vm1244_vm2, %v1016_v18  ;;  %v711_v21 = vadd.f32 %v1670_v19, %v2370_v1  ;;  %v1031_v22 = vadd.f32 %v1766_v20, %v2370_v1 }
  0xef   :  { %v705_v23 = vpop.f32.mrf.mxu0  ;;  %v1025_v24 = vpop.f32.mrf.mxu1 }
  0xf0   :  { %1266 = vst.msk [vmem:[%s3015_s3 + $0xa8] sm:$0xff] %vm1244_vm2, %v711_v21  ;;  %1330 = vst.msk [vmem:[%s3015_s3 + $0x2a8] sm:$0xff] %vm1244_vm2, %v1031_v22  ;;  %v706_v25 = vadd.f32 %v2370_v1, %v705_v23  ;;  %v1026_v26 = vadd.f32 %v2370_v1, %v1025_v24 }
  0xf1   :  { %v1673_v27 = vpop.f32.mrf.mxu0  ;;  %v1769_v28 = vpop.f32.mrf.mxu1 }
  0xf2   :  { %1265 = vst.msk [vmem:[%s3015_s3 + $0xa0] sm:$0xff] %vm1244_vm2, %v706_v25  ;;  %1329 = vst.msk [vmem:[%s3015_s3 + $0x2a0] sm:$0xff] %vm1244_vm2, %v1026_v26  ;;  %v721_v29 = vadd.f32 %v1673_v27, %v2370_v1  ;;  %v1041_v30 = vadd.f32 %v1769_v28, %v2370_v1 }
  0xf3   :  { %v715_v31 = vpop.f32.mrf.mxu0  ;;  %v1035_v32 = vpop.f32.mrf.mxu1 }
  0xf4   :  { %1268 = vst.msk [vmem:[%s3015_s3 + $0xb8] sm:$0xff] %vm1244_vm2, %v721_v29  ;;  %1332 = vst.msk [vmem:[%s3015_s3 + $0x2b8] sm:$0xff] %vm1244_vm2, %v1041_v30  ;;  %v716_v33 = vadd.f32 %v2370_v1, %v715_v31  ;;  %v1036_v34 = vadd.f32 %v2370_v1, %v1035_v32 }
  0xf5   :  { %v1676_v35 = vpop.f32.mrf.mxu0  ;;  %v1772_v36 = vpop.f32.mrf.mxu1 }
  0xf6   :  { %1267 = vst.msk [vmem:[%s3015_s3 + $0xb0] sm:$0xff] %vm1244_vm2, %v716_v33  ;;  %1331 = vst.msk [vmem:[%s3015_s3 + $0x2b0] sm:$0xff] %vm1244_vm2, %v1036_v34  ;;  %v731_v37 = vadd.f32 %v1676_v35, %v2370_v1  ;;  %v1051_v38 = vadd.f32 %v1772_v36, %v2370_v1 }
  0xf7   :  { %v725_v39 = vpop.f32.mrf.mxu0  ;;  %v1045_v40 = vpop.f32.mrf.mxu1 }
  0xf8   :  { %1270 = vst.msk [vmem:[%s3015_s3 + $0xc8] sm:$0xff] %vm1244_vm2, %v731_v37  ;;  %1334 = vst.msk [vmem:[%s3015_s3 + $0x2c8] sm:$0xff] %vm1244_vm2, %v1051_v38  ;;  %v726_v41 = vadd.f32 %v2370_v1, %v725_v39  ;;  %v1046_v42 = vadd.f32 %v2370_v1, %v1045_v40 }
  0xf9   :  { %v1679_v43 = vpop.f32.mrf.mxu0  ;;  %v1775_v44 = vpop.f32.mrf.mxu1 }
  0xfa   :  { %1269 = vst.msk [vmem:[%s3015_s3 + $0xc0] sm:$0xff] %vm1244_vm2, %v726_v41  ;;  %1333 = vst.msk [vmem:[%s3015_s3 + $0x2c0] sm:$0xff] %vm1244_vm2, %v1046_v42  ;;  %v741_v45 = vadd.f32 %v1679_v43, %v2370_v1  ;;  %v1061_v46 = vadd.f32 %v1775_v44, %v2370_v1 }
  0xfb   :  { %v735_v47 = vpop.f32.mrf.mxu0  ;;  %v1055_v48 = vpop.f32.mrf.mxu1 }
  0xfc   :  { %1272 = vst.msk [vmem:[%s3015_s3 + $0xd8] sm:$0xff] %vm1244_vm2, %v741_v45  ;;  %1336 = vst.msk [vmem:[%s3015_s3 + $0x2d8] sm:$0xff] %vm1244_vm2, %v1061_v46  ;;  %v736_v49 = vadd.f32 %v2370_v1, %v735_v47  ;;  %v1056_v50 = vadd.f32 %v2370_v1, %v1055_v48 }
  0xfd   :  { %v1682_v51 = vpop.f32.mrf.mxu0  ;;  %v1778_v52 = vpop.f32.mrf.mxu1 }
  0xfe   :  { %1271 = vst.msk [vmem:[%s3015_s3 + $0xd0] sm:$0xff] %vm1244_vm2, %v736_v49  ;;  %1335 = vst.msk [vmem:[%s3015_s3 + $0x2d0] sm:$0xff] %vm1244_vm2, %v1056_v50  ;;  %v751_v53 = vadd.f32 %v1682_v51, %v2370_v1  ;;  %v1071_v54 = vadd.f32 %v1778_v52, %v2370_v1 }
  0xff   :  { %v745_v55 = vpop.f32.mrf.mxu0  ;;  %v1065_v56 = vpop.f32.mrf.mxu1 }
 0x100   :  { %1274 = vst.msk [vmem:[%s3015_s3 + $0xe8] sm:$0xff] %vm1244_vm2, %v751_v53  ;;  %1338 = vst.msk [vmem:[%s3015_s3 + $0x2e8] sm:$0xff] %vm1244_vm2, %v1071_v54  ;;  %v746_v57 = vadd.f32 %v2370_v1, %v745_v55  ;;  %v1066_v58 = vadd.f32 %v2370_v1, %v1065_v56 }
 0x101   :  { %v1685_v59 = vpop.f32.mrf.mxu0  ;;  %v1781_v60 = vpop.f32.mrf.mxu1 }
 0x102   :  { %1273 = vst.msk [vmem:[%s3015_s3 + $0xe0] sm:$0xff] %vm1244_vm2, %v746_v57  ;;  %1337 = vst.msk [vmem:[%s3015_s3 + $0x2e0] sm:$0xff] %vm1244_vm2, %v1066_v58  ;;  %v761_v61 = vadd.f32 %v1685_v59, %v2370_v1  ;;  %v1081_v62 = vadd.f32 %v1781_v60, %v2370_v1 }
 0x103   :  { %v755_v63 = vpop.f32.mrf.mxu0  ;;  %v1075_v0 = vpop.f32.mrf.mxu1 }
 0x104   :  { %1276 = vst.msk [vmem:[%s3015_s3 + $0xf8] sm:$0xff] %vm1244_vm2, %v761_v61  ;;  %1340 = vst.msk [vmem:[%s3015_s3 + $0x2f8] sm:$0xff] %vm1244_vm2, %v1081_v62  ;;  %v756_v2 = vadd.f32 %v2370_v1, %v755_v63  ;;  %v1076_v3 = vadd.f32 %v2370_v1, %v1075_v0 }
 0x105   :  { %v1688_v4 = vpop.f32.mrf.mxu0  ;;  %v1784_v5 = vpop.f32.mrf.mxu1 }
 0x106   :  { %1275 = vst.msk [vmem:[%s3015_s3 + $0xf0] sm:$0xff] %vm1244_vm2, %v756_v2  ;;  %1339 = vst.msk [vmem:[%s3015_s3 + $0x2f0] sm:$0xff] %vm1244_vm2, %v1076_v3  ;;  %v771_v6 = vadd.f32 %v1688_v4, %v2370_v1  ;;  %v1091_v7 = vadd.f32 %v1784_v5, %v2370_v1 }
 0x107   :  { %v765_v8 = vpop.f32.mrf.mxu0  ;;  %v1085_v9 = vpop.f32.mrf.mxu1 }
 0x108   :  { %1278 = vst.msk [vmem:[%s3015_s3 + $0x108] sm:$0xff] %vm1244_vm2, %v771_v6  ;;  %1342 = vst.msk [vmem:[%s3015_s3 + $0x308] sm:$0xff] %vm1244_vm2, %v1091_v7  ;;  %v766_v10 = vadd.f32 %v2370_v1, %v765_v8  ;;  %v1086_v11 = vadd.f32 %v2370_v1, %v1085_v9 }
 0x109   :  { %v1691_v12 = vpop.f32.mrf.mxu0  ;;  %v1787_v13 = vpop.f32.mrf.mxu1 }
 0x10a   :  { %1277 = vst.msk [vmem:[%s3015_s3 + $0x100] sm:$0xff] %vm1244_vm2, %v766_v10  ;;  %1341 = vst.msk [vmem:[%s3015_s3 + $0x300] sm:$0xff] %vm1244_vm2, %v1086_v11  ;;  %v781_v14 = vadd.f32 %v1691_v12, %v2370_v1  ;;  %v1101_v15 = vadd.f32 %v1787_v13, %v2370_v1 }
 0x10b   :  { %v775_v16 = vpop.f32.mrf.mxu0  ;;  %v1095_v17 = vpop.f32.mrf.mxu1 }
 0x10c   :  { %1280 = vst.msk [vmem:[%s3015_s3 + $0x118] sm:$0xff] %vm1244_vm2, %v781_v14  ;;  %1344 = vst.msk [vmem:[%s3015_s3 + $0x318] sm:$0xff] %vm1244_vm2, %v1101_v15  ;;  %v776_v18 = vadd.f32 %v2370_v1, %v775_v16  ;;  %v1096_v19 = vadd.f32 %v2370_v1, %v1095_v17 }
 0x10d   :  { %v1694_v20 = vpop.f32.mrf.mxu0  ;;  %v1790_v21 = vpop.f32.mrf.mxu1 }
 0x10e   :  { %1279 = vst.msk [vmem:[%s3015_s3 + $0x110] sm:$0xff] %vm1244_vm2, %v776_v18  ;;  %1343 = vst.msk [vmem:[%s3015_s3 + $0x310] sm:$0xff] %vm1244_vm2, %v1096_v19  ;;  %v791_v22 = vadd.f32 %v1694_v20, %v2370_v1  ;;  %v1111_v23 = vadd.f32 %v1790_v21, %v2370_v1 }
 0x10f   :  { %v785_v24 = vpop.f32.mrf.mxu0  ;;  %v1105_v25 = vpop.f32.mrf.mxu1 }
 0x110   :  { %1282 = vst.msk [vmem:[%s3015_s3 + $0x128] sm:$0xff] %vm1244_vm2, %v791_v22  ;;  %1346 = vst.msk [vmem:[%s3015_s3 + $0x328] sm:$0xff] %vm1244_vm2, %v1111_v23  ;;  %v786_v26 = vadd.f32 %v2370_v1, %v785_v24  ;;  %v1106_v27 = vadd.f32 %v2370_v1, %v1105_v25 }
 0x111   :  { %v1697_v28 = vpop.f32.mrf.mxu0  ;;  %v1793_v29 = vpop.f32.mrf.mxu1 }
 0x112   :  { %1281 = vst.msk [vmem:[%s3015_s3 + $0x120] sm:$0xff] %vm1244_vm2, %v786_v26  ;;  %1345 = vst.msk [vmem:[%s3015_s3 + $0x320] sm:$0xff] %vm1244_vm2, %v1106_v27  ;;  %v801_v30 = vadd.f32 %v1697_v28, %v2370_v1  ;;  %v1121_v31 = vadd.f32 %v1793_v29, %v2370_v1 }
 0x113   :  { %v795_v32 = vpop.f32.mrf.mxu0  ;;  %v1115_v33 = vpop.f32.mrf.mxu1 }
 0x114   :  { %1284 = vst.msk [vmem:[%s3015_s3 + $0x138] sm:$0xff] %vm1244_vm2, %v801_v30  ;;  %1348 = vst.msk [vmem:[%s3015_s3 + $0x338] sm:$0xff] %vm1244_vm2, %v1121_v31  ;;  %v796_v34 = vadd.f32 %v2370_v1, %v795_v32  ;;  %v1116_v35 = vadd.f32 %v2370_v1, %v1115_v33 }
 0x115   :  { %v1700_v36 = vpop.f32.mrf.mxu0  ;;  %v1796_v37 = vpop.f32.mrf.mxu1 }
 0x116   :  { %1283 = vst.msk [vmem:[%s3015_s3 + $0x130] sm:$0xff] %vm1244_vm2, %v796_v34  ;;  %1347 = vst.msk [vmem:[%s3015_s3 + $0x330] sm:$0xff] %vm1244_vm2, %v1116_v35  ;;  %v811_v38 = vadd.f32 %v1700_v36, %v2370_v1  ;;  %v1131_v39 = vadd.f32 %v1796_v37, %v2370_v1 }
 0x117   :  { %v805_v40 = vpop.f32.mrf.mxu0  ;;  %v1125_v41 = vpop.f32.mrf.mxu1 }
 0x118   :  { %1286 = vst.msk [vmem:[%s3015_s3 + $0x148] sm:$0xff] %vm1244_vm2, %v811_v38  ;;  %1350 = vst.msk [vmem:[%s3015_s3 + $0x348] sm:$0xff] %vm1244_vm2, %v1131_v39  ;;  %v806_v42 = vadd.f32 %v2370_v1, %v805_v40  ;;  %v1126_v43 = vadd.f32 %v2370_v1, %v1125_v41 }
 0x119   :  { %v1703_v44 = vpop.f32.mrf.mxu0  ;;  %v1799_v45 = vpop.f32.mrf.mxu1 }
 0x11a   :  { %1285 = vst.msk [vmem:[%s3015_s3 + $0x140] sm:$0xff] %vm1244_vm2, %v806_v42  ;;  %1349 = vst.msk [vmem:[%s3015_s3 + $0x340] sm:$0xff] %vm1244_vm2, %v1126_v43  ;;  %v821_v46 = vadd.f32 %v1703_v44, %v2370_v1  ;;  %v1141_v47 = vadd.f32 %v1799_v45, %v2370_v1 }
 0x11b   :  { %v815_v48 = vpop.f32.mrf.mxu0  ;;  %v1135_v49 = vpop.f32.mrf.mxu1 }
 0x11c   :  { %1288 = vst.msk [vmem:[%s3015_s3 + $0x158] sm:$0xff] %vm1244_vm2, %v821_v46  ;;  %1352 = vst.msk [vmem:[%s3015_s3 + $0x358] sm:$0xff] %vm1244_vm2, %v1141_v47  ;;  %v816_v50 = vadd.f32 %v2370_v1, %v815_v48  ;;  %v1136_v51 = vadd.f32 %v2370_v1, %v1135_v49 }
 0x11d   :  { %v1706_v52 = vpop.f32.mrf.mxu0  ;;  %v1802_v53 = vpop.f32.mrf.mxu1 }
 0x11e   :  { %1287 = vst.msk [vmem:[%s3015_s3 + $0x150] sm:$0xff] %vm1244_vm2, %v816_v50  ;;  %1351 = vst.msk [vmem:[%s3015_s3 + $0x350] sm:$0xff] %vm1244_vm2, %v1136_v51  ;;  %v831_v54 = vadd.f32 %v1706_v52, %v2370_v1  ;;  %v1151_v55 = vadd.f32 %v1802_v53, %v2370_v1 }
 0x11f   :  { %v825_v56 = vpop.f32.mrf.mxu0  ;;  %v1145_v57 = vpop.f32.mrf.mxu1 }
 0x120   :  { %1290 = vst.msk [vmem:[%s3015_s3 + $0x168] sm:$0xff] %vm1244_vm2, %v831_v54  ;;  %1354 = vst.msk [vmem:[%s3015_s3 + $0x368] sm:$0xff] %vm1244_vm2, %v1151_v55  ;;  %v826_v58 = vadd.f32 %v2370_v1, %v825_v56  ;;  %v1146_v59 = vadd.f32 %v2370_v1, %v1145_v57 }
 0x121   :  { %v1709_v60 = vpop.f32.mrf.mxu0  ;;  %v1805_v61 = vpop.f32.mrf.mxu1 }
 0x122   :  { %1289 = vst.msk [vmem:[%s3015_s3 + $0x160] sm:$0xff] %vm1244_vm2, %v826_v58  ;;  %1353 = vst.msk [vmem:[%s3015_s3 + $0x360] sm:$0xff] %vm1244_vm2, %v1146_v59  ;;  %v841_v62 = vadd.f32 %v1709_v60, %v2370_v1  ;;  %v1161_v63 = vadd.f32 %v1805_v61, %v2370_v1 }
 0x123   :  { %v835_v0 = vpop.f32.mrf.mxu0  ;;  %v1155_v2 = vpop.f32.mrf.mxu1 }
 0x124   :  { %1292 = vst.msk [vmem:[%s3015_s3 + $0x178] sm:$0xff] %vm1244_vm2, %v841_v62  ;;  %1356 = vst.msk [vmem:[%s3015_s3 + $0x378] sm:$0xff] %vm1244_vm2, %v1161_v63  ;;  %v836_v3 = vadd.f32 %v2370_v1, %v835_v0  ;;  %v1156_v4 = vadd.f32 %v2370_v1, %v1155_v2 }
 0x125   :  { %v1712_v5 = vpop.f32.mrf.mxu0  ;;  %v1808_v6 = vpop.f32.mrf.mxu1 }
 0x126   :  { %1291 = vst.msk [vmem:[%s3015_s3 + $0x170] sm:$0xff] %vm1244_vm2, %v836_v3  ;;  %1355 = vst.msk [vmem:[%s3015_s3 + $0x370] sm:$0xff] %vm1244_vm2, %v1156_v4  ;;  %v851_v7 = vadd.f32 %v1712_v5, %v2370_v1  ;;  %v1171_v8 = vadd.f32 %v1808_v6, %v2370_v1 }
 0x127   :  { %v845_v9 = vpop.f32.mrf.mxu0  ;;  %v1165_v10 = vpop.f32.mrf.mxu1 }
 0x128   :  { %1294 = vst.msk [vmem:[%s3015_s3 + $0x188] sm:$0xff] %vm1244_vm2, %v851_v7  ;;  %1358 = vst.msk [vmem:[%s3015_s3 + $0x388] sm:$0xff] %vm1244_vm2, %v1171_v8  ;;  %v846_v11 = vadd.f32 %v2370_v1, %v845_v9  ;;  %v1166_v12 = vadd.f32 %v2370_v1, %v1165_v10 }
 0x129   :  { %v1715_v13 = vpop.f32.mrf.mxu0  ;;  %v1811_v14 = vpop.f32.mrf.mxu1 }
 0x12a   :  { %1293 = vst.msk [vmem:[%s3015_s3 + $0x180] sm:$0xff] %vm1244_vm2, %v846_v11  ;;  %1357 = vst.msk [vmem:[%s3015_s3 + $0x380] sm:$0xff] %vm1244_vm2, %v1166_v12  ;;  %v861_v15 = vadd.f32 %v1715_v13, %v2370_v1  ;;  %v1181_v16 = vadd.f32 %v1811_v14, %v2370_v1 }
 0x12b   :  { %v855_v17 = vpop.f32.mrf.mxu0  ;;  %v1175_v18 = vpop.f32.mrf.mxu1 }
 0x12c   :  { %1296 = vst.msk [vmem:[%s3015_s3 + $0x198] sm:$0xff] %vm1244_vm2, %v861_v15  ;;  %1360 = vst.msk [vmem:[%s3015_s3 + $0x398] sm:$0xff] %vm1244_vm2, %v1181_v16  ;;  %v856_v19 = vadd.f32 %v2370_v1, %v855_v17  ;;  %v1176_v20 = vadd.f32 %v2370_v1, %v1175_v18 }
 0x12d   :  { %v1718_v21 = vpop.f32.mrf.mxu0  ;;  %v1814_v22 = vpop.f32.mrf.mxu1 }
 0x12e   :  { %1295 = vst.msk [vmem:[%s3015_s3 + $0x190] sm:$0xff] %vm1244_vm2, %v856_v19  ;;  %1359 = vst.msk [vmem:[%s3015_s3 + $0x390] sm:$0xff] %vm1244_vm2, %v1176_v20  ;;  %v871_v23 = vadd.f32 %v1718_v21, %v2370_v1  ;;  %v1191_v24 = vadd.f32 %v1814_v22, %v2370_v1 }
 0x12f   :  { %v865_v25 = vpop.f32.mrf.mxu0  ;;  %v1185_v26 = vpop.f32.mrf.mxu1 }
 0x130   :  { %1298 = vst.msk [vmem:[%s3015_s3 + $0x1a8] sm:$0xff] %vm1244_vm2, %v871_v23  ;;  %1362 = vst.msk [vmem:[%s3015_s3 + $0x3a8] sm:$0xff] %vm1244_vm2, %v1191_v24  ;;  %v866_v27 = vadd.f32 %v2370_v1, %v865_v25  ;;  %v1186_v28 = vadd.f32 %v2370_v1, %v1185_v26 }
 0x131   :  { %v1721_v29 = vpop.f32.mrf.mxu0  ;;  %v1817_v30 = vpop.f32.mrf.mxu1 }
 0x132   :  { %1297 = vst.msk [vmem:[%s3015_s3 + $0x1a0] sm:$0xff] %vm1244_vm2, %v866_v27  ;;  %1361 = vst.msk [vmem:[%s3015_s3 + $0x3a0] sm:$0xff] %vm1244_vm2, %v1186_v28  ;;  %v881_v31 = vadd.f32 %v1721_v29, %v2370_v1  ;;  %v1201_v32 = vadd.f32 %v1817_v30, %v2370_v1 }
 0x133   :  { %v875_v33 = vpop.f32.mrf.mxu0  ;;  %v1195_v34 = vpop.f32.mrf.mxu1 }
 0x134   :  { %1300 = vst.msk [vmem:[%s3015_s3 + $0x1b8] sm:$0xff] %vm1244_vm2, %v881_v31  ;;  %1364 = vst.msk [vmem:[%s3015_s3 + $0x3b8] sm:$0xff] %vm1244_vm2, %v1201_v32  ;;  %v876_v35 = vadd.f32 %v2370_v1, %v875_v33  ;;  %v1196_v36 = vadd.f32 %v2370_v1, %v1195_v34 }
 0x135   :  { %v1724_v37 = vpop.f32.mrf.mxu0  ;;  %v1820_v38 = vpop.f32.mrf.mxu1 }
 0x136   :  { %1299 = vst.msk [vmem:[%s3015_s3 + $0x1b0] sm:$0xff] %vm1244_vm2, %v876_v35  ;;  %1363 = vst.msk [vmem:[%s3015_s3 + $0x3b0] sm:$0xff] %vm1244_vm2, %v1196_v36  ;;  %v891_v39 = vadd.f32 %v1724_v37, %v2370_v1  ;;  %v1211_v40 = vadd.f32 %v1820_v38, %v2370_v1 }
 0x137   :  { %v885_v41 = vpop.f32.mrf.mxu0  ;;  %v1205_v42 = vpop.f32.mrf.mxu1 }
 0x138   :  { %1302 = vst.msk [vmem:[%s3015_s3 + $0x1c8] sm:$0xff] %vm1244_vm2, %v891_v39  ;;  %1366 = vst.msk [vmem:[%s3015_s3 + $0x3c8] sm:$0xff] %vm1244_vm2, %v1211_v40  ;;  %v886_v43 = vadd.f32 %v2370_v1, %v885_v41  ;;  %v1206_v44 = vadd.f32 %v2370_v1, %v1205_v42 }
 0x139   :  { %v1727_v45 = vpop.f32.mrf.mxu0  ;;  %v1823_v46 = vpop.f32.mrf.mxu1 }
 0x13a   :  { %1301 = vst.msk [vmem:[%s3015_s3 + $0x1c0] sm:$0xff] %vm1244_vm2, %v886_v43  ;;  %1365 = vst.msk [vmem:[%s3015_s3 + $0x3c0] sm:$0xff] %vm1244_vm2, %v1206_v44  ;;  %v901_v47 = vadd.f32 %v1727_v45, %v2370_v1  ;;  %v1221_v48 = vadd.f32 %v1823_v46, %v2370_v1 }
 0x13b   :  { %v895_v49 = vpop.f32.mrf.mxu0  ;;  %v1215_v50 = vpop.f32.mrf.mxu1 }
 0x13c   :  { %1304 = vst.msk [vmem:[%s3015_s3 + $0x1d8] sm:$0xff] %vm1244_vm2, %v901_v47  ;;  %1368 = vst.msk [vmem:[%s3015_s3 + $0x3d8] sm:$0xff] %vm1244_vm2, %v1221_v48  ;;  %v896_v51 = vadd.f32 %v2370_v1, %v895_v49  ;;  %v1216_v52 = vadd.f32 %v2370_v1, %v1215_v50 }
 0x13d   :  { %v1730_v53 = vpop.f32.mrf.mxu0  ;;  %v1826_v54 = vpop.f32.mrf.mxu1 }
 0x13e   :  { %1303 = vst.msk [vmem:[%s3015_s3 + $0x1d0] sm:$0xff] %vm1244_vm2, %v896_v51  ;;  %1367 = vst.msk [vmem:[%s3015_s3 + $0x3d0] sm:$0xff] %vm1244_vm2, %v1216_v52  ;;  %v911_v55 = vadd.f32 %v1730_v53, %v2370_v1  ;;  %v1231_v56 = vadd.f32 %v1826_v54, %v2370_v1 }
 0x13f   :  { %v905_v57 = vpop.f32.mrf.mxu0  ;;  %v1225_v58 = vpop.f32.mrf.mxu1 }
 0x140   :  { %1306 = vst.msk [vmem:[%s3015_s3 + $0x1e8] sm:$0xff] %vm1244_vm2, %v911_v55  ;;  %1370 = vst.msk [vmem:[%s3015_s3 + $0x3e8] sm:$0xff] %vm1244_vm2, %v1231_v56  ;;  %v906_v59 = vadd.f32 %v2370_v1, %v905_v57  ;;  %v1226_v60 = vadd.f32 %v2370_v1, %v1225_v58 }
 0x141   :  { %v1733_v61 = vpop.f32.mrf.mxu0  ;;  %v1829_v62 = vpop.f32.mrf.mxu1 }
 0x142   :  { %1305 = vst.msk [vmem:[%s3015_s3 + $0x1e0] sm:$0xff] %vm1244_vm2, %v906_v59  ;;  %1369 = vst.msk [vmem:[%s3015_s3 + $0x3e0] sm:$0xff] %vm1244_vm2, %v1226_v60  ;;  %v921_v63 = vadd.f32 %v1733_v61, %v2370_v1  ;;  %v1241_v0 = vadd.f32 %v1829_v62, %v2370_v1 }
 0x143   :  { %v915_v2 = vpop.f32.mrf.mxu0  ;;  %v1235_v3 = vpop.f32.mrf.mxu1 }
 0x144   :  { %1308 = vst.msk [vmem:[%s3015_s3 + $0x1f8] sm:$0xff] %vm1244_vm2, %v921_v63  ;;  %1372 = vst.msk [vmem:[%s3015_s3 + $0x3f8] sm:$0xff] %vm1244_vm2, %v1241_v0  ;;  %v916_v4 = vadd.f32 %v2370_v1, %v915_v2  ;;  %v1236_v5 = vadd.f32 %v2370_v1, %v1235_v3 }
 0x146   :  { %1307 = vst.msk [vmem:[%s3015_s3 + $0x1f0] sm:$0xff] %vm1244_vm2, %v916_v4  ;;  %1371 = vst.msk [vmem:[%s3015_s3 + $0x3f0] sm:$0xff] %vm1244_vm2, %v1236_v5 }

// kernel: oct_up_forward.12
= control target key start
LH: loop header
LB: loop body
LE: loop exit
PB: predicated region body
PF: predicated region fallthrough
CT: control target
= control target key end

     0   :  { %s432_s0 = inlined_call_operand.vmem [shape: f32[256,128], index: 0, kind: input, shape index: {}]   ;;  %s433_s1 = inlined_call_operand.vmem [shape: f32[256,128], index: 1, kind: input, shape index: {}]   ;;  %s434_s2 = inlined_call_operand.vmem [shape: f32[2,128], index: 2, kind: output, shape index: {}]  }
   0x1   :  { %v11_v0 = vld [vmem:[%s432_s0] sm:$0xff]  ;;  %v12_v1 = vld [vmem:[%s432_s0 + $0x8] sm:$0xff]  ;;  %v13_v3 = vld [vmem:[%s432_s0 + $0x10] sm:$0xff] }
   0x2   :  { %v43_v2 = vld [vmem:[%s433_s1] sm:$0xff]  ;;  %v44_v4 = vld [vmem:[%s433_s1 + $0x8] sm:$0xff]  ;;  %v45_v5 = vld [vmem:[%s433_s1 + $0x10] sm:$0xff] }
   0x3   :  { %v75_v6 = vadd.f32 %v43_v2, %v11_v0  ;;  %v76_v7 = vadd.f32 %v44_v4, %v12_v1  ;;  %v14_v8 = vld [vmem:[%s432_s0 + $0x18] sm:$0xff]  ;;  %v77_v10 = vadd.f32 %v45_v5, %v13_v3  ;;  %v15_v12 = vld [vmem:[%s432_s0 + $0x20] sm:$0xff]  ;;  %v16_v16 = vld [vmem:[%s432_s0 + $0x28] sm:$0xff] }
   0x4   :  { %v46_v9 = vld [vmem:[%s433_s1 + $0x18] sm:$0xff]  ;;  %v47_v13 = vld [vmem:[%s433_s1 + $0x20] sm:$0xff]  ;;  %v48_v17 = vld [vmem:[%s433_s1 + $0x28] sm:$0xff] }
   0x5   :  { %v107_v11 = vadd.f32 %v76_v7, %v75_v6  ;;  %v78_v14 = vadd.f32 %v46_v9, %v14_v8  ;;  %v79_v18 = vadd.f32 %v47_v13, %v15_v12  ;;  %v17_v20 = vld [vmem:[%s432_s0 + $0x30] sm:$0xff]  ;;  %v80_v22 = vadd.f32 %v48_v17, %v16_v16  ;;  %v18_v24 = vld [vmem:[%s432_s0 + $0x38] sm:$0xff]  ;;  %v19_v28 = vld [vmem:[%s432_s0 + $0x40] sm:$0xff] }
   0x6   :  { %v49_v21 = vld [vmem:[%s433_s1 + $0x30] sm:$0xff]  ;;  %v50_v25 = vld [vmem:[%s433_s1 + $0x38] sm:$0xff]  ;;  %v51_v29 = vld [vmem:[%s433_s1 + $0x40] sm:$0xff]  ;;  %v145_v36 = vmul.f32 %v75_v6, %v75_v6  ;;  %v146_v37 = vmul.f32 %v76_v7, %v76_v7  ;;  %v147_v42 = vmul.f32 %v77_v10, %v77_v10 }
   0x7   :  { %v108_v15 = vadd.f32 %v107_v11, %v77_v10  ;;  %v81_v26 = vadd.f32 %v49_v21, %v17_v20  ;;  %v82_v30 = vadd.f32 %v50_v25, %v18_v24  ;;  %v20_v32 = vld [vmem:[%s432_s0 + $0x48] sm:$0xff]  ;;  %v83_v34 = vadd.f32 %v51_v29, %v19_v28  ;;  %v21_v38 = vld [vmem:[%s432_s0 + $0x50] sm:$0xff]  ;;  %v22_v43 = vld [vmem:[%s432_s0 + $0x58] sm:$0xff] }
   0x8   :  { %v52_v33 = vld [vmem:[%s433_s1 + $0x48] sm:$0xff]  ;;  %v53_v39 = vld [vmem:[%s433_s1 + $0x50] sm:$0xff]  ;;  %v54_v44 = vld [vmem:[%s433_s1 + $0x58] sm:$0xff]  ;;  %v148_v47 = vmul.f32 %v78_v14, %v78_v14  ;;  %v177_v48 = vadd.f32 %v146_v37, %v145_v36  ;;  %v149_v53 = vmul.f32 %v79_v18, %v79_v18  ;;  %v150_v59 = vmul.f32 %v80_v22, %v80_v22 }
   0x9   :  { %v109_v19 = vadd.f32 %v108_v15, %v78_v14  ;;  %v84_v40 = vadd.f32 %v52_v33, %v20_v32  ;;  %v85_v45 = vadd.f32 %v53_v39, %v21_v38  ;;  %v23_v49 = vld [vmem:[%s432_s0 + $0x60] sm:$0xff]  ;;  %v86_v51 = vadd.f32 %v54_v44, %v22_v43  ;;  %v24_v55 = vld [vmem:[%s432_s0 + $0x68] sm:$0xff]  ;;  %v25_v61 = vld [vmem:[%s432_s0 + $0x70] sm:$0xff] }
   0xa   :  { %v55_v50 = vld [vmem:[%s433_s1 + $0x60] sm:$0xff]  ;;  %v178_v54 = vadd.f32 %v177_v48, %v147_v42  ;;  %v56_v56 = vld [vmem:[%s433_s1 + $0x68] sm:$0xff]  ;;  %v57_v62 = vld [vmem:[%s433_s1 + $0x70] sm:$0xff]  ;;  %v151_v1 = vmul.f32 %v81_v26, %v81_v26  ;;  %v152_v7 = vmul.f32 %v82_v30, %v82_v30  ;;  %v153_v13 = vmul.f32 %v83_v34, %v83_v34 }
   0xb   :  { %v110_v23 = vadd.f32 %v109_v19, %v79_v18  ;;  %v87_v57 = vadd.f32 %v55_v50, %v23_v49  ;;  %v88_v63 = vadd.f32 %v56_v56, %v24_v55  ;;  %v26_v3 = vld [vmem:[%s432_s0 + $0x78] sm:$0xff]  ;;  %v89_v5 = vadd.f32 %v57_v62, %v25_v61  ;;  %v27_v9 = vld [vmem:[%s432_s0 + $0x80] sm:$0xff]  ;;  %v28_v15 = vld [vmem:[%s432_s0 + $0x88] sm:$0xff] }
   0xc   :  { %v179_v60 = vadd.f32 %v178_v54, %v148_v47  ;;  %v58_v4 = vld [vmem:[%s433_s1 + $0x78] sm:$0xff]  ;;  %v59_v10 = vld [vmem:[%s433_s1 + $0x80] sm:$0xff]  ;;  %v60_v16 = vld [vmem:[%s433_s1 + $0x88] sm:$0xff]  ;;  %v154_v19 = vmul.f32 %v84_v40, %v84_v40  ;;  %v155_v25 = vmul.f32 %v85_v45, %v85_v45 }
   0xd   :  { %v111_v27 = vadd.f32 %v110_v23, %v80_v22  ;;  %v90_v11 = vadd.f32 %v58_v4, %v26_v3  ;;  %v91_v17 = vadd.f32 %v59_v10, %v27_v9  ;;  %v29_v21 = vld [vmem:[%s432_s0 + $0x90] sm:$0xff]  ;;  %v92_v23 = vadd.f32 %v60_v16, %v28_v15  ;;  %v62_v28 = vld [vmem:[%s433_s1 + $0x98] sm:$0xff]  ;;  %v31_v33 = vld [vmem:[%s432_s0 + $0xa0] sm:$0xff] }
   0xe   :  { %v180_v2 = vadd.f32 %v179_v60, %v149_v53  ;;  %v61_v22 = vld [vmem:[%s433_s1 + $0x90] sm:$0xff]  ;;  %v157_v37 = vmul.f32 %v87_v57, %v87_v57  ;;  %v32_v39 = vld [vmem:[%s432_s0 + $0xa8] sm:$0xff]  ;;  %v158_v43 = vmul.f32 %v88_v63, %v88_v63  ;;  %v159_v49 = vmul.f32 %v89_v5, %v89_v5 }
   0xf   :  { %v112_v31 = vadd.f32 %v111_v27, %v81_v26  ;;  %v30_v27 = vld [vmem:[%s432_s0 + $0x98] sm:$0xff]  ;;  %v93_v29 = vadd.f32 %v61_v22, %v29_v21  ;;  %v160_v55 = vmul.f32 %v90_v11, %v90_v11  ;;  %v161_v61 = vmul.f32 %v91_v17, %v91_v17 }
  0x10   :  { %v181_v8 = vadd.f32 %v180_v2, %v150_v59  ;;  %v162_v3 = vmul.f32 %v92_v23, %v92_v23 }
  0x11   :  { %v113_v35 = vadd.f32 %v112_v31, %v82_v30  ;;  %v156_v31 = vmul.f32 %v86_v51, %v86_v51  ;;  %v163_v9 = vmul.f32 %v93_v29, %v93_v29 }
  0x12   :  { %v182_v14 = vadd.f32 %v181_v8, %v151_v1 }
  0x13   :  { %v114_v41 = vadd.f32 %v113_v35, %v83_v34  ;;  %v63_v34 = vld [vmem:[%s433_s1 + $0xa0] sm:$0xff]  ;;  %v94_v35 = vadd.f32 %v62_v28, %v30_v27 }
  0x14   :  { %v183_v20 = vadd.f32 %v182_v14, %v152_v7 }
  0x15   :  { %v115_v46 = vadd.f32 %v114_v41, %v84_v40  ;;  %v64_v40 = vld [vmem:[%s433_s1 + $0xa8] sm:$0xff]  ;;  %v95_v41 = vadd.f32 %v63_v34, %v31_v33  ;;  %v164_v15 = vmul.f32 %v94_v35, %v94_v35 }
  0x16   :  { %v184_v26 = vadd.f32 %v183_v20, %v153_v13  ;;  %v96_v47 = vadd.f32 %v64_v40, %v32_v39 }
  0x17   :  { %v116_v52 = vadd.f32 %v115_v46, %v85_v45  ;;  %v33_v45 = vld [vmem:[%s432_s0 + $0xb0] sm:$0xff]  ;;  %v165_v21 = vmul.f32 %v95_v41, %v95_v41 }
  0x18   :  { %v185_v32 = vadd.f32 %v184_v26, %v154_v19  ;;  %v65_v46 = vld [vmem:[%s433_s1 + $0xb0] sm:$0xff]  ;;  %v166_v27 = vmul.f32 %v96_v47, %v96_v47 }
  0x19   :  { %v117_v58 = vadd.f32 %v116_v52, %v86_v51  ;;  %v34_v51 = vld [vmem:[%s432_s0 + $0xb8] sm:$0xff]  ;;  %v97_v53 = vadd.f32 %v65_v46, %v33_v45 }
  0x1a   :  { %v186_v38 = vadd.f32 %v185_v32, %v155_v25  ;;  %v66_v52 = vld [vmem:[%s433_s1 + $0xb8] sm:$0xff] }
  0x1b   :  { %v118_v0 = vadd.f32 %v117_v58, %v87_v57  ;;  %v35_v57 = vld [vmem:[%s432_s0 + $0xc0] sm:$0xff]  ;;  %v98_v59 = vadd.f32 %v66_v52, %v34_v51  ;;  %v167_v33 = vmul.f32 %v97_v53, %v97_v53 }
  0x1c   :  { %v187_v44 = vadd.f32 %v186_v38, %v156_v31  ;;  %v67_v58 = vld [vmem:[%s433_s1 + $0xc0] sm:$0xff] }
  0x1d   :  { %v119_v6 = vadd.f32 %v118_v0, %v88_v63  ;;  %v36_v63 = vld [vmem:[%s432_s0 + $0xc8] sm:$0xff]  ;;  %v99_v1 = vadd.f32 %v67_v58, %v35_v57  ;;  %v168_v39 = vmul.f32 %v98_v59, %v98_v59 }
  0x1e   :  { %v188_v50 = vadd.f32 %v187_v44, %v157_v37  ;;  %v68_v0 = vld [vmem:[%s433_s1 + $0xc8] sm:$0xff] }
  0x1f   :  { %v120_v12 = vadd.f32 %v119_v6, %v89_v5  ;;  %v37_v5 = vld [vmem:[%s432_s0 + $0xd0] sm:$0xff]  ;;  %v100_v7 = vadd.f32 %v68_v0, %v36_v63 }
  0x20   :  { %v189_v56 = vadd.f32 %v188_v50, %v158_v43  ;;  %v69_v6 = vld [vmem:[%s433_s1 + $0xd0] sm:$0xff]  ;;  %v169_v43 = vmul.f32 %v99_v1, %v99_v1 }
  0x21   :  { %v121_v18 = vadd.f32 %v120_v12, %v90_v11  ;;  %v38_v11 = vld [vmem:[%s432_s0 + $0xd8] sm:$0xff]  ;;  %v101_v13 = vadd.f32 %v69_v6, %v37_v5  ;;  %v170_v46 = vmul.f32 %v100_v7, %v100_v7 }
  0x22   :  { %v190_v62 = vadd.f32 %v189_v56, %v159_v49  ;;  %v70_v12 = vld [vmem:[%s433_s1 + $0xd8] sm:$0xff] }
  0x23   :  { %v122_v24 = vadd.f32 %v121_v18, %v91_v17  ;;  %v39_v17 = vld [vmem:[%s432_s0 + $0xe0] sm:$0xff]  ;;  %v102_v19 = vadd.f32 %v70_v12, %v38_v11  ;;  %v171_v49 = vmul.f32 %v101_v13, %v101_v13 }
  0x24   :  { %v191_v4 = vadd.f32 %v190_v62, %v160_v55  ;;  %v71_v18 = vld [vmem:[%s433_s1 + $0xe0] sm:$0xff] }
  0x25   :  { %v123_v30 = vadd.f32 %v122_v24, %v92_v23  ;;  %v40_v23 = vld [vmem:[%s432_s0 + $0xe8] sm:$0xff]  ;;  %v103_v25 = vadd.f32 %v71_v18, %v39_v17  ;;  %v172_v52 = vmul.f32 %v102_v19, %v102_v19 }
  0x26   :  { %v192_v10 = vadd.f32 %v191_v4, %v161_v61  ;;  %v72_v24 = vld [vmem:[%s433_s1 + $0xe8] sm:$0xff] }
  0x27   :  { %v124_v36 = vadd.f32 %v123_v30, %v93_v29  ;;  %v41_v29 = vld [vmem:[%s432_s0 + $0xf0] sm:$0xff]  ;;  %v104_v31 = vadd.f32 %v72_v24, %v40_v23  ;;  %v173_v55 = vmul.f32 %v103_v25, %v103_v25 }
  0x28   :  { %v193_v16 = vadd.f32 %v192_v10, %v162_v3  ;;  %v73_v30 = vld [vmem:[%s433_s1 + $0xf0] sm:$0xff] }
  0x29   :  { %v125_v42 = vadd.f32 %v124_v36, %v94_v35  ;;  %v42_v35 = vld [vmem:[%s432_s0 + $0xf8] sm:$0xff]  ;;  %v105_v37 = vadd.f32 %v73_v30, %v41_v29  ;;  %v174_v58 = vmul.f32 %v104_v31, %v104_v31 }
  0x2a   :  { %v194_v22 = vadd.f32 %v193_v16, %v163_v9  ;;  %v74_v36 = vld [vmem:[%s433_s1 + $0xf8] sm:$0xff] }
  0x2b   :  { %v126_v48 = vadd.f32 %v125_v42, %v95_v41  ;;  %v106_v41 = vadd.f32 %v74_v36, %v42_v35  ;;  %v175_v61 = vmul.f32 %v105_v37, %v105_v37 }
  0x2c   :  { %v195_v28 = vadd.f32 %v194_v22, %v164_v15 }
  0x2d   :  { %v127_v54 = vadd.f32 %v126_v48, %v96_v47  ;;  %v176_v0 = vmul.f32 %v106_v41, %v106_v41 }
  0x2e   :  { %v196_v34 = vadd.f32 %v195_v28, %v165_v21 }
  0x2f   :  { %v128_v60 = vadd.f32 %v127_v54, %v97_v53 }
  0x30   :  { %v197_v40 = vadd.f32 %v196_v34, %v166_v27 }
  0x31   :  { %v129_v2 = vadd.f32 %v128_v60, %v98_v59 }
  0x32   :  { %v198_v44 = vadd.f32 %v197_v40, %v167_v33 }
  0x33   :  { %v130_v8 = vadd.f32 %v129_v2, %v99_v1 }
  0x34   :  { %v199_v47 = vadd.f32 %v198_v44, %v168_v39 }
  0x35   :  { %v131_v14 = vadd.f32 %v130_v8, %v100_v7 }
  0x36   :  { %v200_v50 = vadd.f32 %v199_v47, %v169_v43 }
  0x37   :  { %v132_v20 = vadd.f32 %v131_v14, %v101_v13 }
  0x38   :  { %v201_v53 = vadd.f32 %v200_v50, %v170_v46 }
  0x39   :  { %v133_v26 = vadd.f32 %v132_v20, %v102_v19 }
  0x3a   :  { %v202_v56 = vadd.f32 %v201_v53, %v171_v49 }
  0x3b   :  { %v134_v32 = vadd.f32 %v133_v26, %v103_v25 }
  0x3c   :  { %v203_v59 = vadd.f32 %v202_v56, %v172_v52 }
  0x3d   :  { %v135_v38 = vadd.f32 %v134_v32, %v104_v31 }
  0x3e   :  { %v204_v62 = vadd.f32 %v203_v59, %v173_v55 }
  0x3f   :  { %v136_v42 = vadd.f32 %v135_v38, %v105_v37 }
  0x40   :  { %v205_v1 = vadd.f32 %v204_v62, %v174_v58 }
  0x41   :  { %v137_v45 = vadd.f32 %v136_v42, %v106_v41 }
  0x42   :  { %v206_v2 = vadd.f32 %v205_v1, %v175_v61 }
  0x43   :  { %v138_v48 = vrot.slane %v137_v45, 4 }
  0x44   :  { %v207_v3 = vadd.f32 %v206_v2, %v176_v0 }
  0x45   :  { %v139_v51 = vadd.f32 %v138_v48, %v137_v45 }
  0x46   :  { %v208_v4 = vrot.slane %v207_v3, 4 }
  0x47   :  { %v140_v54 = vrot.slane %v139_v51, 2 }
  0x48   :  { %v209_v5 = vadd.f32 %v208_v4, %v207_v3 }
  0x49   :  { %v141_v57 = vadd.f32 %v140_v54, %v139_v51 }
  0x4a   :  { %v210_v6 = vrot.slane %v209_v5, 2 }
  0x4b   :  { %v142_v60 = vrot.slane %v141_v57, 1 }
  0x4c   :  { %v211_v7 = vadd.f32 %v210_v6, %v209_v5 }
  0x4d   :  { %v143_v63 = vadd.f32 %v142_v60, %v141_v57 }
  0x4e   :  { %v212_v8 = vrot.slane %v211_v7, 1 }
  0x4f   :  { %144 = vst [vmem:[%s434_s2] sm:$0x1] %v143_v63 }
  0x50   :  { %v213_v9 = vadd.f32 %v212_v8, %v211_v7 }
  0x52   :  { %214 = vst [vmem:[%s434_s2 + $0x1] sm:$0x1] %v213_v9 }

// kernel: oct_up_forward.13
= control target key start
LH: loop header
LB: loop body
LE: loop exit
PB: predicated region body
PF: predicated region fallthrough
CT: control target
= control target key end

     0   :  { %s648_s0 = inlined_call_operand.vmem [shape: f32[256,128], index: 0, kind: input, shape index: {}]   ;;  %s649_s1 = inlined_call_operand.vmem [shape: f32[256,128], index: 1, kind: input, shape index: {}]   ;;  %s650_s2 = inlined_call_operand.vmem [shape: f32[1,128], index: 2, kind: input, shape index: {}]   ;;  %s651_s3 = inlined_call_operand.vmem [shape: f32[1,128], index: 3, kind: input, shape index: {}]   ;;  %s652_s4 = inlined_call_operand.vmem [shape: f32[256,128], index: 4, kind: output, shape index: {}]  }
   0x1   :  { %v17_v0 = vld [vmem:[%s648_s0] sm:$0xff]  ;;  %v18_v5 = vld [vmem:[%s648_s0 + $0x8] sm:$0xff]  ;;  %v19_v8 = vld [vmem:[%s648_s0 + $0x10] sm:$0xff] }
   0x2   :  { %v49_v1 = vld [vmem:[%s649_s1] sm:$0xff]  ;;  %v50_v6 = vld [vmem:[%s649_s1 + $0x8] sm:$0xff]  ;;  %v51_v9 = vld [vmem:[%s649_s1 + $0x10] sm:$0xff] }
   0x3   :  { %v295_v2 = vld [vmem:[%s650_s2] ss:$0 sm:$0xff]  ;;  %v81_v3 = vadd.f32 %v49_v1, %v17_v0  ;;  %v82_v7 = vadd.f32 %v50_v6, %v18_v5  ;;  %v20_v10 = vld [vmem:[%s648_s0 + $0x18] sm:$0xff]  ;;  %v83_v12 = vadd.f32 %v51_v9, %v19_v8  ;;  %v22_v19 = vld [vmem:[%s648_s0 + $0x28] sm:$0xff] }
   0x4   :  { %v300_v4 = vld [vmem:[%s651_s3] ss:$0 sm:$0xff]  ;;  %v52_v13 = vld [vmem:[%s649_s1 + $0x18] sm:$0xff]  ;;  %v54_v20 = vld [vmem:[%s649_s1 + $0x28] sm:$0xff] }
   0x5   :  { %v120_v11 = vmul.f32 %v295_v2, %v81_v3  ;;  %v21_v14 = vld [vmem:[%s648_s0 + $0x20] sm:$0xff]  ;;  %v121_v16 = vmul.f32 %v295_v2, %v82_v7  ;;  %v84_v17 = vadd.f32 %v52_v13, %v20_v10  ;;  %v23_v21 = vld [vmem:[%s648_s0 + $0x30] sm:$0xff]  ;;  %v122_v23 = vmul.f32 %v295_v2, %v83_v12  ;;  %v24_v26 = vld [vmem:[%s648_s0 + $0x38] sm:$0xff] }
   0x6   :  { %v53_v15 = vld [vmem:[%s649_s1 + $0x20] sm:$0xff]  ;;  %v86_v24 = vadd.f32 %v54_v20, %v22_v19  ;;  %v55_v25 = vld [vmem:[%s649_s1 + $0x30] sm:$0xff]  ;;  %v56_v27 = vld [vmem:[%s649_s1 + $0x38] sm:$0xff] }
   0x7   :  { %v85_v18 = vadd.f32 %v53_v15, %v21_v14  ;;  %v159_v22 = vadd.f32 %v300_v4, %v120_v11  ;;  %v160_v28 = vadd.f32 %v300_v4, %v121_v16  ;;  %v123_v29 = vmul.f32 %v295_v2, %v84_v17  ;;  %v25_v32 = vld [vmem:[%s648_s0 + $0x40] sm:$0xff]  ;;  %v26_v38 = vld [vmem:[%s648_s0 + $0x48] sm:$0xff]  ;;  %v27_v44 = vld [vmem:[%s648_s0 + $0x50] sm:$0xff] }
   0x8   :  { %v87_v31 = vadd.f32 %v55_v25, %v23_v21  ;;  %v57_v33 = vld [vmem:[%s649_s1 + $0x40] sm:$0xff]  ;;  %v161_v35 = vadd.f32 %v300_v4, %v122_v23  ;;  %v125_v36 = vmul.f32 %v295_v2, %v86_v24  ;;  %v88_v37 = vadd.f32 %v56_v27, %v24_v26  ;;  %v58_v39 = vld [vmem:[%s649_s1 + $0x48] sm:$0xff]  ;;  %v59_v45 = vld [vmem:[%s649_s1 + $0x50] sm:$0xff] }
   0x9   :  { %v124_v30 = vmul.f32 %v295_v2, %v85_v18  ;;  %v191_v34 = vmax.f32 %v159_v22, 0.0  ;;  %v192_v40 = vmax.f32 %v160_v28, 0.0  ;;  %v162_v41 = vadd.f32 %v300_v4, %v123_v29  ;;  %v28_v46 = vld [vmem:[%s648_s0 + $0x58] sm:$0xff]  ;;  %v29_v52 = vld [vmem:[%s648_s0 + $0x60] sm:$0xff]  ;;  %v30_v58 = vld [vmem:[%s648_s0 + $0x68] sm:$0xff] }
   0xa   :  { %v126_v43 = vmul.f32 %v295_v2, %v87_v31  ;;  %v193_v47 = vmax.f32 %v161_v35, 0.0  ;;  %v164_v48 = vadd.f32 %v300_v4, %v125_v36  ;;  %v127_v49 = vmul.f32 %v295_v2, %v88_v37  ;;  %v60_v51 = vld [vmem:[%s649_s1 + $0x58] sm:$0xff]  ;;  %v61_v53 = vld [vmem:[%s649_s1 + $0x60] sm:$0xff]  ;;  %v62_v59 = vld [vmem:[%s649_s1 + $0x68] sm:$0xff] }
   0xb   :  { %v163_v42 = vadd.f32 %v300_v4, %v124_v30  ;;  %223 = vst [vmem:[%s652_s4] sm:$0xff] %v191_v34  ;;  %v89_v50 = vadd.f32 %v57_v33, %v25_v32  ;;  %224 = vst [vmem:[%s652_s4 + $0x8] sm:$0xff] %v192_v40  ;;  %v194_v54 = vmax.f32 %v162_v41, 0.0  ;;  %v90_v57 = vadd.f32 %v58_v39, %v26_v38  ;;  %v31_v0 = vld [vmem:[%s648_s0 + $0x70] sm:$0xff]  ;;  %v32_v8 = vld [vmem:[%s648_s0 + $0x78] sm:$0xff] }
   0xc   :  { %v165_v56 = vadd.f32 %v300_v4, %v126_v43  ;;  %225 = vst [vmem:[%s652_s4 + $0x10] sm:$0xff] %v193_v47  ;;  %v196_v60 = vmax.f32 %v164_v48, 0.0  ;;  %v166_v61 = vadd.f32 %v300_v4, %v127_v49  ;;  %v91_v63 = vadd.f32 %v59_v45, %v27_v44  ;;  %v63_v1 = vld [vmem:[%s649_s1 + $0x70] sm:$0xff]  ;;  %v64_v9 = vld [vmem:[%s649_s1 + $0x78] sm:$0xff]  ;;  %v33_v18 = vld [vmem:[%s648_s0 + $0x80] sm:$0xff] }
   0xd   :  { %v195_v55 = vmax.f32 %v163_v42, 0.0  ;;  %v128_v62 = vmul.f32 %v295_v2, %v89_v50  ;;  %226 = vst [vmem:[%s652_s4 + $0x18] sm:$0xff] %v194_v54  ;;  %v129_v5 = vmul.f32 %v295_v2, %v90_v57  ;;  %v92_v6 = vadd.f32 %v60_v51, %v28_v46  ;;  %v65_v19 = vld [vmem:[%s649_s1 + $0x80] sm:$0xff]  ;;  %v34_v24 = vld [vmem:[%s648_s0 + $0x88] sm:$0xff]  ;;  %v35_v30 = vld [vmem:[%s648_s0 + $0x90] sm:$0xff] }
   0xe   :  { %v197_v3 = vmax.f32 %v165_v56, 0.0  ;;  %v93_v7 = vadd.f32 %v61_v53, %v29_v52  ;;  %228 = vst [vmem:[%s652_s4 + $0x28] sm:$0xff] %v196_v60  ;;  %v198_v10 = vmax.f32 %v166_v61, 0.0  ;;  %v130_v12 = vmul.f32 %v295_v2, %v91_v63  ;;  %v66_v25 = vld [vmem:[%s649_s1 + $0x88] sm:$0xff]  ;;  %v67_v31 = vld [vmem:[%s649_s1 + $0x90] sm:$0xff]  ;;  %v36_v32 = vld [vmem:[%s648_s0 + $0x98] sm:$0xff] }
   0xf   :  { %227 = vst [vmem:[%s652_s4 + $0x20] sm:$0xff] %v195_v55  ;;  %v167_v11 = vadd.f32 %v300_v4, %v128_v62  ;;  %v94_v13 = vadd.f32 %v62_v59, %v30_v58  ;;  %v168_v14 = vadd.f32 %v300_v4, %v129_v5  ;;  %v131_v15 = vmul.f32 %v295_v2, %v92_v6  ;;  %v68_v37 = vld [vmem:[%s649_s1 + $0x98] sm:$0xff]  ;;  %v37_v38 = vld [vmem:[%s648_s0 + $0xa0] sm:$0xff]  ;;  %v38_v44 = vld [vmem:[%s648_s0 + $0xa8] sm:$0xff] }
  0x10   :  { %229 = vst [vmem:[%s652_s4 + $0x30] sm:$0xff] %v197_v3  ;;  %v132_v16 = vmul.f32 %v295_v2, %v93_v7  ;;  %v95_v17 = vadd.f32 %v63_v1, %v31_v0  ;;  %230 = vst [vmem:[%s652_s4 + $0x38] sm:$0xff] %v198_v10  ;;  %v169_v21 = vadd.f32 %v300_v4, %v130_v12  ;;  %v69_v39 = vld [vmem:[%s649_s1 + $0xa0] sm:$0xff]  ;;  %v70_v45 = vld [vmem:[%s649_s1 + $0xa8] sm:$0xff] }
  0x11   :  { %v199_v20 = vmax.f32 %v167_v11, 0.0  ;;  %v133_v22 = vmul.f32 %v295_v2, %v94_v13  ;;  %v96_v23 = vadd.f32 %v64_v9, %v32_v8  ;;  %v200_v26 = vmax.f32 %v168_v14, 0.0  ;;  %v39_v50 = vld [vmem:[%s648_s0 + $0xb0] sm:$0xff]  ;;  %v40_v56 = vld [vmem:[%s648_s0 + $0xb8] sm:$0xff]  ;;  %v41_v3 = vld [vmem:[%s648_s0 + $0xc0] sm:$0xff] }
  0x12   :  { %v170_v27 = vadd.f32 %v300_v4, %v131_v15  ;;  %v171_v28 = vadd.f32 %v300_v4, %v132_v16  ;;  %v134_v29 = vmul.f32 %v295_v2, %v95_v17  ;;  %v201_v33 = vmax.f32 %v169_v21, 0.0  ;;  %v71_v51 = vld [vmem:[%s649_s1 + $0xb0] sm:$0xff]  ;;  %v72_v57 = vld [vmem:[%s649_s1 + $0xb8] sm:$0xff]  ;;  %v73_v5 = vld [vmem:[%s649_s1 + $0xc0] sm:$0xff] }
  0x13   :  { %231 = vst [vmem:[%s652_s4 + $0x40] sm:$0xff] %v199_v20  ;;  %v172_v34 = vadd.f32 %v300_v4, %v133_v22  ;;  %v135_v35 = vmul.f32 %v295_v2, %v96_v23  ;;  %v97_v36 = vadd.f32 %v65_v19, %v33_v18  ;;  %232 = vst [vmem:[%s652_s4 + $0x48] sm:$0xff] %v200_v26  ;;  %v42_v10 = vld [vmem:[%s648_s0 + $0xc8] sm:$0xff]  ;;  %v43_v16 = vld [vmem:[%s648_s0 + $0xd0] sm:$0xff] }
  0x14   :  { %v202_v40 = vmax.f32 %v170_v27, 0.0  ;;  %v203_v41 = vmax.f32 %v171_v28, 0.0  ;;  %v173_v42 = vadd.f32 %v300_v4, %v134_v29  ;;  %v98_v43 = vadd.f32 %v66_v25, %v34_v24  ;;  %233 = vst [vmem:[%s652_s4 + $0x50] sm:$0xff] %v201_v33  ;;  %v74_v11 = vld [vmem:[%s649_s1 + $0xc8] sm:$0xff]  ;;  %v75_v17 = vld [vmem:[%s649_s1 + $0xd0] sm:$0xff]  ;;  %v44_v18 = vld [vmem:[%s648_s0 + $0xd8] sm:$0xff] }
  0x15   :  { %v204_v46 = vmax.f32 %v172_v34, 0.0  ;;  %v174_v47 = vadd.f32 %v300_v4, %v135_v35  ;;  %v136_v48 = vmul.f32 %v295_v2, %v97_v36  ;;  %v99_v49 = vadd.f32 %v67_v31, %v35_v30  ;;  %v76_v23 = vld [vmem:[%s649_s1 + $0xd8] sm:$0xff]  ;;  %v45_v24 = vld [vmem:[%s648_s0 + $0xe0] sm:$0xff]  ;;  %v46_v30 = vld [vmem:[%s648_s0 + $0xe8] sm:$0xff] }
  0x16   :  { %234 = vst [vmem:[%s652_s4 + $0x58] sm:$0xff] %v202_v40  ;;  %235 = vst [vmem:[%s652_s4 + $0x60] sm:$0xff] %v203_v41  ;;  %v205_v52 = vmax.f32 %v173_v42, 0.0  ;;  %v137_v53 = vmul.f32 %v295_v2, %v98_v43  ;;  %v100_v54 = vadd.f32 %v68_v37, %v36_v32  ;;  %v101_v55 = vadd.f32 %v69_v39, %v37_v38  ;;  %v77_v25 = vld [vmem:[%s649_s1 + $0xe0] sm:$0xff]  ;;  %v78_v31 = vld [vmem:[%s649_s1 + $0xe8] sm:$0xff] }
  0x17   :  { %236 = vst [vmem:[%s652_s4 + $0x68] sm:$0xff] %v204_v46  ;;  %v206_v58 = vmax.f32 %v174_v47, 0.0  ;;  %v175_v59 = vadd.f32 %v300_v4, %v136_v48  ;;  %v138_v60 = vmul.f32 %v295_v2, %v99_v49  ;;  %v102_v61 = vadd.f32 %v70_v45, %v38_v44  ;;  %v47_v36 = vld [vmem:[%s648_s0 + $0xf0] sm:$0xff]  ;;  %v48_v42 = vld [vmem:[%s648_s0 + $0xf8] sm:$0xff] }
  0x18   :  { %237 = vst [vmem:[%s652_s4 + $0x70] sm:$0xff] %v205_v52  ;;  %v176_v62 = vadd.f32 %v300_v4, %v137_v53  ;;  %v139_v63 = vmul.f32 %v295_v2, %v100_v54  ;;  %v140_v0 = vmul.f32 %v295_v2, %v101_v55  ;;  %v103_v1 = vadd.f32 %v71_v51, %v39_v50  ;;  %v79_v37 = vld [vmem:[%s649_s1 + $0xf0] sm:$0xff]  ;;  %v80_v43 = vld [vmem:[%s649_s1 + $0xf8] sm:$0xff] }
  0x19   :  { %238 = vst [vmem:[%s652_s4 + $0x78] sm:$0xff] %v206_v58  ;;  %v207_v6 = vmax.f32 %v175_v59, 0.0  ;;  %v177_v7 = vadd.f32 %v300_v4, %v138_v60  ;;  %v141_v8 = vmul.f32 %v295_v2, %v102_v61  ;;  %v104_v9 = vadd.f32 %v72_v57, %v40_v56 }
  0x1a   :  { %v208_v12 = vmax.f32 %v176_v62, 0.0  ;;  %v178_v13 = vadd.f32 %v300_v4, %v139_v63  ;;  %v179_v14 = vadd.f32 %v300_v4, %v140_v0  ;;  %v142_v15 = vmul.f32 %v295_v2, %v103_v1 }
  0x1b   :  { %239 = vst [vmem:[%s652_s4 + $0x80] sm:$0xff] %v207_v6  ;;  %v209_v19 = vmax.f32 %v177_v7, 0.0  ;;  %v180_v20 = vadd.f32 %v300_v4, %v141_v8  ;;  %v143_v21 = vmul.f32 %v295_v2, %v104_v9  ;;  %v105_v22 = vadd.f32 %v73_v5, %v41_v3 }
  0x1c   :  { %240 = vst [vmem:[%s652_s4 + $0x88] sm:$0xff] %v208_v12  ;;  %v210_v26 = vmax.f32 %v178_v13, 0.0  ;;  %v211_v27 = vmax.f32 %v179_v14, 0.0  ;;  %v181_v28 = vadd.f32 %v300_v4, %v142_v15  ;;  %v106_v29 = vadd.f32 %v74_v11, %v42_v10 }
  0x1d   :  { %241 = vst [vmem:[%s652_s4 + $0x90] sm:$0xff] %v209_v19  ;;  %v212_v32 = vmax.f32 %v180_v20, 0.0  ;;  %v182_v33 = vadd.f32 %v300_v4, %v143_v21  ;;  %v144_v34 = vmul.f32 %v295_v2, %v105_v22  ;;  %v107_v35 = vadd.f32 %v75_v17, %v43_v16 }
  0x1e   :  { %242 = vst [vmem:[%s652_s4 + $0x98] sm:$0xff] %v210_v26  ;;  %243 = vst [vmem:[%s652_s4 + $0xa0] sm:$0xff] %v211_v27  ;;  %v213_v38 = vmax.f32 %v181_v28, 0.0  ;;  %v145_v39 = vmul.f32 %v295_v2, %v106_v29  ;;  %v108_v40 = vadd.f32 %v76_v23, %v44_v18  ;;  %v109_v41 = vadd.f32 %v77_v25, %v45_v24 }
  0x1f   :  { %244 = vst [vmem:[%s652_s4 + $0xa8] sm:$0xff] %v212_v32  ;;  %v214_v44 = vmax.f32 %v182_v33, 0.0  ;;  %v183_v45 = vadd.f32 %v300_v4, %v144_v34  ;;  %v146_v46 = vmul.f32 %v295_v2, %v107_v35  ;;  %v110_v47 = vadd.f32 %v78_v31, %v46_v30 }
  0x20   :  { %245 = vst [vmem:[%s652_s4 + $0xb0] sm:$0xff] %v213_v38  ;;  %v184_v48 = vadd.f32 %v300_v4, %v145_v39  ;;  %v147_v49 = vmul.f32 %v295_v2, %v108_v40  ;;  %v148_v50 = vmul.f32 %v295_v2, %v109_v41  ;;  %v111_v51 = vadd.f32 %v79_v37, %v47_v36 }
  0x21   :  { %246 = vst [vmem:[%s652_s4 + $0xb8] sm:$0xff] %v214_v44  ;;  %v215_v52 = vmax.f32 %v183_v45, 0.0  ;;  %v185_v53 = vadd.f32 %v300_v4, %v146_v46  ;;  %v149_v54 = vmul.f32 %v295_v2, %v110_v47  ;;  %v112_v55 = vadd.f32 %v80_v43, %v48_v42 }
  0x22   :  { %v216_v56 = vmax.f32 %v184_v48, 0.0  ;;  %v186_v57 = vadd.f32 %v300_v4, %v147_v49  ;;  %v187_v58 = vadd.f32 %v300_v4, %v148_v50  ;;  %v150_v59 = vmul.f32 %v295_v2, %v111_v51 }
  0x23   :  { %247 = vst [vmem:[%s652_s4 + $0xc0] sm:$0xff] %v215_v52  ;;  %v217_v60 = vmax.f32 %v185_v53, 0.0  ;;  %v188_v61 = vadd.f32 %v300_v4, %v149_v54  ;;  %v151_v62 = vmul.f32 %v295_v2, %v112_v55 }
  0x24   :  { %248 = vst [vmem:[%s652_s4 + $0xc8] sm:$0xff] %v216_v56  ;;  %v218_v63 = vmax.f32 %v186_v57, 0.0  ;;  %v219_v0 = vmax.f32 %v187_v58, 0.0  ;;  %v189_v1 = vadd.f32 %v300_v4, %v150_v59 }
  0x25   :  { %249 = vst [vmem:[%s652_s4 + $0xd0] sm:$0xff] %v217_v60  ;;  %v220_v3 = vmax.f32 %v188_v61, 0.0  ;;  %v190_v5 = vadd.f32 %v300_v4, %v151_v62 }
  0x26   :  { %250 = vst [vmem:[%s652_s4 + $0xd8] sm:$0xff] %v218_v63  ;;  %251 = vst [vmem:[%s652_s4 + $0xe0] sm:$0xff] %v219_v0  ;;  %v221_v2 = vmax.f32 %v189_v1, 0.0 }
  0x27   :  { %252 = vst [vmem:[%s652_s4 + $0xe8] sm:$0xff] %v220_v3  ;;  %v222_v6 = vmax.f32 %v190_v5, 0.0 }
  0x28   :  { %253 = vst [vmem:[%s652_s4 + $0xf0] sm:$0xff] %v221_v2 }
  0x29   :  { %254 = vst [vmem:[%s652_s4 + $0xf8] sm:$0xff] %v222_v6 }

</bundles_post_ra>
